<compile_context>
chip_gen: v6e
topology: v6e:2x2x1
jax: 0.10.0
libtpu: 0.0.40
codegen_flags: <defaults>
</compile_context>

<pallas_src>
import math

import jax
import jax.numpy as jnp
from jax.experimental import pallas as pl
from jax.experimental.pallas import tpu as pltpu

# ---- small-config "bert-base-uncased" (same architecture, scaled-down dims) ----
BATCH = 2
SEQ = 8
HIDDEN = 128
HEADS = 2
HEAD_DIM = HIDDEN // HEADS
INTERMEDIATE = 512
LAYERS = 2
VOCAB = 1000
TYPE_VOCAB = 2
MAX_POS = 16
NUM_LABELS = 30
PADDED_LABELS = 128          # lane-dense classifier output; slice to 30 outside the kernel
LN_EPS = 1e-12
ATTN_SCALE = 1.0 / math.sqrt(HEAD_DIM)
F32 = jnp.float32
BF16 = jnp.bfloat16

_VMEM = pl.BlockSpec(memory_space=pltpu.MemorySpace.VMEM)
# Explicit VMEM budget (safe on v5e/v6e/v7x; these kernels use well under 1 MiB anyway).
_COMPILER_PARAMS = pltpu.CompilerParams(vmem_limit_bytes=32 * 1024 * 1024)


# -------------------------- in-kernel helpers (f32 VPU/EUP math) --------------------------

def _layernorm(x, g, b):
    mean = jnp.mean(x, axis=-1, keepdims=True)
    centered = x - mean
    var = jnp.mean(centered * centered, axis=-1, keepdims=True)
    return centered * jax.lax.rsqrt(var + LN_EPS) * g + b


def _gelu(x):
    # tanh-approximate GELU (HF BERT default is erf-based; deviation ~1e-3, documented).
    c = math.sqrt(2.0 / math.pi)
    return 0.5 * x * (1.0 + jnp.tanh(c * (x + 0.044715 * x * x * x)))


# -------------------------- Pallas kernels --------------------------

def _layernorm_kernel(x_ref, g_ref, b_ref, o_ref):
    """Residual-free LayerNorm for the embedding output."""
    o_ref[...] = _layernorm(x_ref[...], g_ref[...], b_ref[...])


def pallas_layernorm(x, gamma, beta):
    m, h = x.shape
    return pl.pallas_call(
        _layernorm_kernel,
        out_shape=jax.ShapeDtypeStruct((m, h), F32),
        in_specs=[_VMEM, _VMEM, _VMEM],
        out_specs=_VMEM,
        compiler_params=_COMPILER_PARAMS,
    )(x, gamma, beta)


def _encoder_layer_kernel(x_ref, mask_ref,
                          wqkv_ref, bqkv_ref, wo_ref, bo_ref,
                          ln1_g_ref, ln1_b_ref,
                          w1_ref, b1_ref, w2_ref, b2_ref,
                          ln2_g_ref, ln2_b_ref,
                          o_ref):
    """One full BERT encoder layer, fused into a single kernel.

    x:(B*S,H) f32, mask:(B,S) f32, weights bf16, biases/LN params f32.
    """
    x = x_ref[...]                       # (B*S, H) f32 residual stream
    xb = x.astype(BF16)                  # bf16 MXU operand

    # --- fused QKV projection: one MXU call produces Q|K|V side by side on lanes ---
    qkv = jnp.dot(xb, wqkv_ref[...], preferred_element_type=F32) + bqkv_ref[...]   # (B*S, 3H)

    # --- multi-head self-attention: batches on sublanes, heads sliced on the lane axis ---
    ctx_rows = []
    for b in range(BATCH):
        rows = slice(b * SEQ, (b + 1) * SEQ)
        # additive mask bias computed in-kernel from the (B, S) mask row
        bias = (1.0 - mask_ref[pl.ds(b, 1), :]) * (-1e9)            # (1, S)
        head_outs = []
        for h in range(HEADS):
            lo = h * HEAD_DIM
            q = qkv[rows, lo:lo + HEAD_DIM].astype(BF16)                       # (S, D)
            k = qkv[rows, HIDDEN + lo:HIDDEN + lo + HEAD_DIM].astype(BF16)     # (S, D)
            v = qkv[rows, 2 * HIDDEN + lo:2 * HIDDEN + lo + HEAD_DIM].astype(BF16)
            s = jax.lax.dot_general(q, k, (((1,), (1,)), ((), ())),
                                    preferred_element_type=F32)                # (S, S)
            s = s * ATTN_SCALE + bias
            m = jnp.max(s, axis=-1, keepdims=True)
            p = jnp.exp(s - m)
            p = p * pl.reciprocal(jnp.sum(p, axis=-1, keepdims=True), approx=True)
            head_outs.append(jnp.dot(p.astype(BF16), v, preferred_element_type=F32))
        ctx_rows.append(jnp.concatenate(head_outs, axis=-1))                   # (S, H)
    ctx = jnp.concatenate(ctx_rows, axis=0)                                    # (B*S, H) f32

    # --- attention output projection + residual add + LayerNorm (fused) ---
    attn = jnp.dot(ctx.astype(BF16), wo_ref[...], preferred_element_type=F32) + bo_ref[...]
    x1 = _layernorm(attn + x, ln1_g_ref[...], ln1_b_ref[...])

    # --- feed-forward (GELU) + residual add + LayerNorm (fused) ---
    inter = jnp.dot(x1.astype(BF16), w1_ref[...], preferred_element_type=F32) + b1_ref[...]
    inter = _gelu(inter)
    ffn = jnp.dot(inter.astype(BF16), w2_ref[...], preferred_element_type=F32) + b2_ref[...]
    o_ref[...] = _layernorm(ffn + x1, ln2_g_ref[...], ln2_b_ref[...])


def pallas_encoder_layer(x, mask_f32, lp):
    m, h = x.shape
    return pl.pallas_call(
        _encoder_layer_kernel,
        out_shape=jax.ShapeDtypeStruct((m, h), F32),
        in_specs=[_VMEM] * 14,
        out_specs=_VMEM,
        compiler_params=_COMPILER_PARAMS,
    )(x, mask_f32,
      lp["wqkv"], lp["bqkv"], lp["wo"], lp["bo"],
      lp["attn_ln_g"], lp["attn_ln_b"],
      lp["w1"], lp["b1"], lp["w2"], lp["b2"],
      lp["ffn_ln_g"], lp["ffn_ln_b"])


def _pooler_classifier_kernel(x_ref, pw_ref, pb_ref, ow_ref, ob_ref, o_ref):
    """pooled = tanh([CLS] @ pool_w + pool_b); logits = pooled @ out_w + out_b (lane-padded)."""
    # Gather the [CLS] row of every sequence with static pl.ds slices (no XLA gather).
    cls = jnp.concatenate([x_ref[pl.ds(b * SEQ, 1), :] for b in range(BATCH)], axis=0)  # (B, H)
    pooled = jnp.tanh(jnp.dot(cls.astype(BF16), pw_ref[...],
                              preferred_element_type=F32) + pb_ref[...])
    # self.bert_drop = nn.Dropout(0.3): identity in eval mode (deterministic forward).
    # TODO(synk): train-mode dropout would use pltpu.prng_seed + pltpu.stateful_bernoulli here.
    o_ref[...] = (jnp.dot(pooled.astype(BF16), ow_ref[...],
                          preferred_element_type=F32) + ob_ref[...])


def pallas_pooler_classifier(x, pool_w, pool_b, out_w, out_b):
    return pl.pallas_call(
        _pooler_classifier_kernel,
        out_shape=jax.ShapeDtypeStruct((BATCH, PADDED_LABELS), F32),
        in_specs=[_VMEM] * 5,
        out_specs=_VMEM,
        compiler_params=_COMPILER_PARAMS,
    )(x, pool_w, pool_b, out_w, out_b)


# -------------------------- parameters --------------------------

def init_params(seed=0):
    key = jax.random.PRNGKey(seed)
    counter = [0]

    def nxt():
        counter[0] += 1
        return jax.random.fold_in(key, counter[0])

    def w(shape, dtype=BF16):
        # weights stored bf16 (MXU operand dtype); draw in f32 then cast
        return (0.02 * jax.random.normal(nxt(), shape, dtype=F32)).astype(dtype)

    zeros = lambda shape: jnp.zeros(shape, F32)
    ones = lambda shape: jnp.ones(shape, F32)

    # classifier weight zero-padded to a lane-dense 128-wide output
    out_w_core = 0.02 * jax.random.normal(nxt(), (HIDDEN, NUM_LABELS), dtype=F32)
    out_w = jnp.zeros((HIDDEN, PADDED_LABELS), F32).at[:, :NUM_LABELS].set(out_w_core).astype(BF16)

    params = {
        # embeddings stay f32 (used by the XLA-side gather + sum)
        "word_emb": w((VOCAB, HIDDEN), F32),
        "pos_emb": w((MAX_POS, HIDDEN), F32),
        "type_emb": w((TYPE_VOCAB, HIDDEN), F32),
        "emb_ln_g": ones((1, HIDDEN)), "emb_ln_b": zeros((1, HIDDEN)),
        "layers": [],
        "pool_w": w((HIDDEN, HIDDEN)), "pool_b": zeros((1, HIDDEN)),
        "out_w": out_w, "out_b": zeros((1, PADDED_LABELS)),
    }
    for _ in range(LAYERS):
        params["layers"].append({
            # fused QKV weight: [Wq | Wk | Wv] on the lane axis
            "wqkv": w((HIDDEN, 3 * HIDDEN)), "bqkv": zeros((1, 3 * HIDDEN)),
            "wo": w((HIDDEN, HIDDEN)), "bo": zeros((1, HIDDEN)),
            "attn_ln_g": ones((1, HIDDEN)), "attn_ln_b": zeros((1, HIDDEN)),
            "w1": w((HIDDEN, INTERMEDIATE)), "b1": zeros((1, INTERMEDIATE)),
            "w2": w((INTERMEDIATE, HIDDEN)), "b2": zeros((1, HIDDEN)),
            "ffn_ln_g": ones((1, HIDDEN)), "ffn_ln_b": zeros((1, HIDDEN)),
        })
    return params


# -------------------------- forward pass --------------------------

def bert_base_uncased_forward(params, ids, mask, token_type_ids):
    b, s = ids.shape
    h = HIDDEN

    # Embedding lookups are glue (gather) in plain JAX; everything after is Pallas.
    emb = (params["word_emb"][ids]
           + params["pos_emb"][jnp.arange(s)][None, :, :]
           + params["type_emb"][token_type_ids])
    x = emb.reshape(b * s, h).astype(F32)
    x = pallas_layernorm(x, params["emb_ln_g"], params["emb_ln_b"])

    mask_f32 = mask.astype(F32)                      # (B, S); additive bias built in-kernel

    for lp in params["layers"]:
        x = pallas_encoder_layer(x, mask_f32, lp)    # one fused kernel per layer

    # BertModel pooled output o2 -> Dropout(0.3) (eval identity) -> Linear(H, 30), fused.
    logits_padded = pallas_pooler_classifier(x, params["pool_w"], params["pool_b"],
                                             params["out_w"], params["out_b"])
    return logits_padded[:, :NUM_LABELS]             # (B, 30)


if __name__ == "__main__":
    key = jax.random.PRNGKey(0)
    params = init_params(0)

    ids = jax.random.randint(jax.random.fold_in(key, 100), (BATCH, SEQ), 0, VOCAB,
                             dtype=jnp.int32)
    mask = jnp.ones((BATCH, SEQ), dtype=jnp.int32).at[1, -2:].set(0)
    token_type_ids = jnp.zeros((BATCH, SEQ), dtype=jnp.int32)

    logits = jax.jit(bert_base_uncased_forward)(params, ids, mask, token_type_ids)
    logits = jax.block_until_ready(logits)
    assert logits.shape == (BATCH, NUM_LABELS)
    assert bool(jnp.all(jnp.isfinite(logits)))
    print("KERNEL_OK")
</pallas_src>

<mosaic_0001>
module attributes {stable_mosaic.version = 11 : i64} {
  func.func @_layernorm_kernel(%arg0: memref<16x128xf32, #tpu.memory_space<vmem>>, %arg1: memref<1x128xf32, #tpu.memory_space<vmem>>, %arg2: memref<1x128xf32, #tpu.memory_space<vmem>>, %arg3: memref<16x128xf32, #tpu.memory_space<vmem>>) attributes {dimension_semantics = [], scalar_prefetch = 0 : i64, scratch_operands = 0 : i64, tpu.core_type = #tpu.core_type<tc>} {
    %c0 = arith.constant 0 : index
    %c0_0 = arith.constant 0 : index
    %0 = vector.load %arg0[%c0, %c0_0] : memref<16x128xf32, #tpu.memory_space<vmem>>, vector<16x128xf32>
    %c0_1 = arith.constant 0 : index
    %c0_2 = arith.constant 0 : index
    %1 = vector.load %arg1[%c0_1, %c0_2] : memref<1x128xf32, #tpu.memory_space<vmem>>, vector<1x128xf32>
    %c0_3 = arith.constant 0 : index
    %c0_4 = arith.constant 0 : index
    %2 = vector.load %arg2[%c0_3, %c0_4] : memref<1x128xf32, #tpu.memory_space<vmem>>, vector<1x128xf32>
    %cst = arith.constant dense<0.000000e+00> : vector<16xf32>
    %3 = vector.multi_reduction <add>, %0, %cst [1] : vector<16x128xf32> to vector<16xf32>
    %4 = vector.shape_cast %3 : vector<16xf32> to vector<16x1xf32>
    %cst_5 = arith.constant 1.280000e+02 : f32
    %5 = vector.broadcast %cst_5 : f32 to vector<16x1xf32>
    %6 = arith.divf %4, %5 : vector<16x1xf32>
    %7 = vector.broadcast %6 : vector<16x1xf32> to vector<16x128xf32>
    %8 = arith.subf %0, %7 : vector<16x128xf32>
    %9 = arith.mulf %8, %8 : vector<16x128xf32>
    %cst_6 = arith.constant dense<0.000000e+00> : vector<16xf32>
    %10 = vector.multi_reduction <add>, %9, %cst_6 [1] : vector<16x128xf32> to vector<16xf32>
    %11 = vector.shape_cast %10 : vector<16xf32> to vector<16x1xf32>
    %cst_7 = arith.constant 1.280000e+02 : f32
    %12 = vector.broadcast %cst_7 : f32 to vector<16x1xf32>
    %13 = arith.divf %11, %12 : vector<16x1xf32>
    %cst_8 = arith.constant 9.99999996E-13 : f32
    %14 = vector.broadcast %cst_8 : f32 to vector<16x1xf32>
    %15 = arith.addf %13, %14 : vector<16x1xf32>
    %16 = math.rsqrt %15 : vector<16x1xf32>
    %17 = vector.broadcast %16 : vector<16x1xf32> to vector<16x128xf32>
    %18 = arith.mulf %8, %17 : vector<16x128xf32>
    %19 = vector.broadcast %1 : vector<1x128xf32> to vector<16x128xf32>
    %20 = arith.mulf %18, %19 : vector<16x128xf32>
    %21 = vector.broadcast %2 : vector<1x128xf32> to vector<16x128xf32>
    %22 = arith.addf %20, %21 : vector<16x128xf32>
    %c0_9 = arith.constant 0 : index
    %c0_10 = arith.constant 0 : index
    %23 = vector.load %arg3[%c0_9, %c0_10] : memref<16x128xf32, #tpu.memory_space<vmem>>, vector<16x128xf32>
    tpu.vector_store %arg3[%c0_9, %c0_10], %22 {strides = array<i32>} : memref<16x128xf32, #tpu.memory_space<vmem>>, vector<16x128xf32>,
    return
  }
}

module attributes {stable_mosaic.version = 11 : i64} {
  func.func @_pooler_classifier_kernel(%arg0: memref<16x128xf32, #tpu.memory_space<vmem>>, %arg1: memref<128x128xbf16, #tpu.memory_space<vmem>>, %arg2: memref<1x128xf32, #tpu.memory_space<vmem>>, %arg3: memref<128x128xbf16, #tpu.memory_space<vmem>>, %arg4: memref<1x128xf32, #tpu.memory_space<vmem>>, %arg5: memref<2x128xf32, #tpu.memory_space<vmem>>) attributes {dimension_semantics = [], scalar_prefetch = 0 : i64, scratch_operands = 0 : i64, tpu.core_type = #tpu.core_type<tc>} {
    %c0 = arith.constant 0 : index
    %c0_0 = arith.constant 0 : index
    %0 = vector.load %arg0[%c0, %c0_0] : memref<16x128xf32, #tpu.memory_space<vmem>>, vector<1x128xf32>
    %c8 = arith.constant 8 : index
    %c0_1 = arith.constant 0 : index
    %1 = vector.load %arg0[%c8, %c0_1] : memref<16x128xf32, #tpu.memory_space<vmem>>, vector<1x128xf32>
    %2 = tpu.concatenate %0, %1 in 0 : vector<1x128xf32>, vector<1x128xf32> -> vector<2x128xf32>
    %3 = arith.truncf %2 : vector<2x128xf32> to vector<2x128xbf16>
    %c0_2 = arith.constant 0 : index
    %c0_3 = arith.constant 0 : index
    %4 = vector.load %arg1[%c0_2, %c0_3] : memref<128x128xbf16, #tpu.memory_space<vmem>>, vector<128x128xbf16>
    %cst = arith.constant dense<0.000000e+00> : vector<2x128xf32>
    %5 = tpu.matmul %3, %4, %cst {dimension_numbers = #tpu.dot_dimension_numbers<[1], [0], [0], [1], [0, 0, 1, 1], [], []>} : vector<2x128xbf16>, vector<128x128xbf16>, vector<2x128xf32> -> vector<2x128xf32>
    %c0_4 = arith.constant 0 : index
    %c0_5 = arith.constant 0 : index
    %6 = vector.load %arg2[%c0_4, %c0_5] : memref<1x128xf32, #tpu.memory_space<vmem>>, vector<1x128xf32>
    %7 = vector.broadcast %6 : vector<1x128xf32> to vector<2x128xf32>
    %8 = arith.addf %5, %7 : vector<2x128xf32>
    %9 = math.tanh %8 : vector<2x128xf32>
    %10 = arith.truncf %9 : vector<2x128xf32> to vector<2x128xbf16>
    %c0_6 = arith.constant 0 : index
    %c0_7 = arith.constant 0 : index
    %11 = vector.load %arg3[%c0_6, %c0_7] : memref<128x128xbf16, #tpu.memory_space<vmem>>, vector<128x128xbf16>
    %cst_8 = arith.constant dense<0.000000e+00> : vector<2x128xf32>
    %12 = tpu.matmul %10, %11, %cst_8 {dimension_numbers = #tpu.dot_dimension_numbers<[1], [0], [0], [1], [0, 0, 1, 1], [], []>} : vector<2x128xbf16>, vector<128x128xbf16>, vector<2x128xf32> -> vector<2x128xf32>
    %c0_9 = arith.constant 0 : index
    %c0_10 = arith.constant 0 : index
    %13 = vector.load %arg4[%c0_9, %c0_10] : memref<1x128xf32, #tpu.memory_space<vmem>>, vector<1x128xf32>
    %14 = vector.broadcast %13 : vector<1x128xf32> to vector<2x128xf32>
    %15 = arith.addf %12, %14 : vector<2x128xf32>
    %c0_11 = arith.constant 0 : index
    %c0_12 = arith.constant 0 : index
    %16 = vector.load %arg5[%c0_11, %c0_12] : memref<2x128xf32, #tpu.memory_space<vmem>>, vector<2x128xf32>
    tpu.vector_store %arg5[%c0_11, %c0_12], %15 {strides = array<i32>} : memref<2x128xf32, #tpu.memory_space<vmem>>, vector<2x128xf32>,
    return
  }
}

module attributes {stable_mosaic.version = 11 : i64} {
  func.func @_encoder_layer_kernel(%arg0: memref<16x128xf32, #tpu.memory_space<vmem>>, %arg1: memref<2x8xf32, #tpu.memory_space<vmem>>, %arg2: memref<128x384xbf16, #tpu.memory_space<vmem>>, %arg3: memref<1x384xf32, #tpu.memory_space<vmem>>, %arg4: memref<128x128xbf16, #tpu.memory_space<vmem>>, %arg5: memref<1x128xf32, #tpu.memory_space<vmem>>, %arg6: memref<1x128xf32, #tpu.memory_space<vmem>>, %arg7: memref<1x128xf32, #tpu.memory_space<vmem>>, %arg8: memref<128x512xbf16, #tpu.memory_space<vmem>>, %arg9: memref<1x512xf32, #tpu.memory_space<vmem>>, %arg10: memref<512x128xbf16, #tpu.memory_space<vmem>>, %arg11: memref<1x128xf32, #tpu.memory_space<vmem>>, %arg12: memref<1x128xf32, #tpu.memory_space<vmem>>, %arg13: memref<1x128xf32, #tpu.memory_space<vmem>>, %arg14: memref<16x128xf32, #tpu.memory_space<vmem>>) attributes {dimension_semantics = [], scalar_prefetch = 0 : i64, scratch_operands = 0 : i64, tpu.core_type = #tpu.core_type<tc>} {
    %c0 = arith.constant 0 : index
    %c0_0 = arith.constant 0 : index
    %0 = vector.load %arg0[%c0, %c0_0] : memref<16x128xf32, #tpu.memory_space<vmem>>, vector<16x128xf32>
    %1 = arith.truncf %0 : vector<16x128xf32> to vector<16x128xbf16>
    %c0_1 = arith.constant 0 : index
    %c0_2 = arith.constant 0 : index
    %2 = vector.load %arg2[%c0_1, %c0_2] : memref<128x384xbf16, #tpu.memory_space<vmem>>, vector<128x384xbf16>
    %cst = arith.constant dense<0.000000e+00> : vector<16x384xf32>
    %3 = tpu.matmul %1, %2, %cst {dimension_numbers = #tpu.dot_dimension_numbers<[1], [0], [0], [1], [0, 0, 1, 1], [], []>} : vector<16x128xbf16>, vector<128x384xbf16>, vector<16x384xf32> -> vector<16x384xf32>
    %c0_3 = arith.constant 0 : index
    %c0_4 = arith.constant 0 : index
    %4 = vector.load %arg3[%c0_3, %c0_4] : memref<1x384xf32, #tpu.memory_space<vmem>>, vector<1x384xf32>
    %5 = vector.broadcast %4 : vector<1x384xf32> to vector<16x384xf32>
    %6 = arith.addf %3, %5 : vector<16x384xf32>
    %c0_5 = arith.constant 0 : index
    %c0_6 = arith.constant 0 : index
    %7 = vector.load %arg1[%c0_5, %c0_6] : memref<2x8xf32, #tpu.memory_space<vmem>>, vector<1x8xf32>
    %cst_7 = arith.constant 1.000000e+00 : f32
    %8 = vector.broadcast %cst_7 : f32 to vector<1x8xf32>
    %9 = arith.subf %8, %7 : vector<1x8xf32>
    %cst_8 = arith.constant -1.000000e+09 : f32
    %10 = vector.broadcast %cst_8 : f32 to vector<1x8xf32>
    %11 = arith.mulf %9, %10 : vector<1x8xf32>
    %12 = vector.extract_strided_slice %6 {offsets = [0, 0], sizes = [8, 64], strides = [1, 1]} : vector<16x384xf32> to vector<8x64xf32>
    %13 = arith.truncf %12 : vector<8x64xf32> to vector<8x64xbf16>
    %14 = vector.extract_strided_slice %6 {offsets = [0, 128], sizes = [8, 64], strides = [1, 1]} : vector<16x384xf32> to vector<8x64xf32>
    %15 = arith.truncf %14 : vector<8x64xf32> to vector<8x64xbf16>
    %16 = vector.extract_strided_slice %6 {offsets = [0, 256], sizes = [8, 64], strides = [1, 1]} : vector<16x384xf32> to vector<8x64xf32>
    %17 = arith.truncf %16 : vector<8x64xf32> to vector<8x64xbf16>
    %cst_9 = arith.constant dense<0.000000e+00> : vector<8x8xf32>
    %18 = tpu.matmul %13, %15, %cst_9 {dimension_numbers = #tpu.dot_dimension_numbers<[1], [1], [0], [0], [0, 0, 1, 0], [], []>} : vector<8x64xbf16>, vector<8x64xbf16>, vector<8x8xf32> -> vector<8x8xf32>
    %cst_10 = arith.constant 1.250000e-01 : f32
    %19 = vector.broadcast %cst_10 : f32 to vector<8x8xf32>
    %20 = arith.mulf %18, %19 : vector<8x8xf32>
    %21 = vector.broadcast %11 : vector<1x8xf32> to vector<8x8xf32>
    %22 = arith.addf %20, %21 : vector<8x8xf32>
    %cst_11 = arith.constant dense<0xFF800000> : vector<8xf32>
    %23 = vector.multi_reduction <maximumf>, %22, %cst_11 [1] : vector<8x8xf32> to vector<8xf32>
    %24 = vector.shape_cast %23 : vector<8xf32> to vector<8x1xf32>
    %25 = vector.broadcast %24 : vector<8x1xf32> to vector<8x8xf32>
    %26 = arith.subf %22, %25 : vector<8x8xf32>
    %27 = math.exp %26 : vector<8x8xf32>
    %cst_12 = arith.constant dense<0.000000e+00> : vector<8xf32>
    %28 = vector.multi_reduction <add>, %27, %cst_12 [1] : vector<8x8xf32> to vector<8xf32>
    %29 = vector.shape_cast %28 : vector<8xf32> to vector<8x1xf32>
    %30 = tpu.reciprocal %29 {approx = true} : vector<8x1xf32> -> vector<8x1xf32>
    %31 = vector.broadcast %30 : vector<8x1xf32> to vector<8x8xf32>
    %32 = arith.mulf %27, %31 : vector<8x8xf32>
    %33 = arith.truncf %32 : vector<8x8xf32> to vector<8x8xbf16>
    %cst_13 = arith.constant dense<0.000000e+00> : vector<8x64xf32>
    %34 = tpu.matmul %33, %17, %cst_13 {dimension_numbers = #tpu.dot_dimension_numbers<[1], [0], [0], [1], [0, 0, 1, 1], [], []>} : vector<8x8xbf16>, vector<8x64xbf16>, vector<8x64xf32> -> vector<8x64xf32>
    %35 = vector.extract_strided_slice %6 {offsets = [0, 64], sizes = [8, 64], strides = [1, 1]} : vector<16x384xf32> to vector<8x64xf32>
    %36 = arith.truncf %35 : vector<8x64xf32> to vector<8x64xbf16>
    %37 = vector.extract_strided_slice %6 {offsets = [0, 192], sizes = [8, 64], strides = [1, 1]} : vector<16x384xf32> to vector<8x64xf32>
    %38 = arith.truncf %37 : vector<8x64xf32> to vector<8x64xbf16>
    %39 = vector.extract_strided_slice %6 {offsets = [0, 320], sizes = [8, 64], strides = [1, 1]} : vector<16x384xf32> to vector<8x64xf32>
    %40 = arith.truncf %39 : vector<8x64xf32> to vector<8x64xbf16>
    %cst_14 = arith.constant dense<0.000000e+00> : vector<8x8xf32>
    %41 = tpu.matmul %36, %38, %cst_14 {dimension_numbers = #tpu.dot_dimension_numbers<[1], [1], [0], [0], [0, 0, 1, 0], [], []>} : vector<8x64xbf16>, vector<8x64xbf16>, vector<8x8xf32> -> vector<8x8xf32>
    %cst_15 = arith.constant 1.250000e-01 : f32
    %42 = vector.broadcast %cst_15 : f32 to vector<8x8xf32>
    %43 = arith.mulf %41, %42 : vector<8x8xf32>
    %44 = vector.broadcast %11 : vector<1x8xf32> to vector<8x8xf32>
    %45 = arith.addf %43, %44 : vector<8x8xf32>
    %cst_16 = arith.constant dense<0xFF800000> : vector<8xf32>
    %46 = vector.multi_reduction <maximumf>, %45, %cst_16 [1] : vector<8x8xf32> to vector<8xf32>
    %47 = vector.shape_cast %46 : vector<8xf32> to vector<8x1xf32>
    %48 = vector.broadcast %47 : vector<8x1xf32> to vector<8x8xf32>
    %49 = arith.subf %45, %48 : vector<8x8xf32>
    %50 = math.exp %49 : vector<8x8xf32>
    %cst_17 = arith.constant dense<0.000000e+00> : vector<8xf32>
    %51 = vector.multi_reduction <add>, %50, %cst_17 [1] : vector<8x8xf32> to vector<8xf32>
    %52 = vector.shape_cast %51 : vector<8xf32> to vector<8x1xf32>
    %53 = tpu.reciprocal %52 {approx = true} : vector<8x1xf32> -> vector<8x1xf32>
    %54 = vector.broadcast %53 : vector<8x1xf32> to vector<8x8xf32>
    %55 = arith.mulf %50, %54 : vector<8x8xf32>
    %56 = arith.truncf %55 : vector<8x8xf32> to vector<8x8xbf16>
    %cst_18 = arith.constant dense<0.000000e+00> : vector<8x64xf32>
    %57 = tpu.matmul %56, %40, %cst_18 {dimension_numbers = #tpu.dot_dimension_numbers<[1], [0], [0], [1], [0, 0, 1, 1], [], []>} : vector<8x8xbf16>, vector<8x64xbf16>, vector<8x64xf32> -> vector<8x64xf32>
    %58 = tpu.concatenate %34, %57 in 1 : vector<8x64xf32>, vector<8x64xf32> -> vector<8x128xf32>
    %c1 = arith.constant 1 : index
    %c0_19 = arith.constant 0 : index
    %59 = vector.load %arg1[%c1, %c0_19] : memref<2x8xf32, #tpu.memory_space<vmem>>, vector<1x8xf32>
    %cst_20 = arith.constant 1.000000e+00 : f32
    %60 = vector.broadcast %cst_20 : f32 to vector<1x8xf32>
    %61 = arith.subf %60, %59 : vector<1x8xf32>
    %cst_21 = arith.constant -1.000000e+09 : f32
    %62 = vector.broadcast %cst_21 : f32 to vector<1x8xf32>
    %63 = arith.mulf %61, %62 : vector<1x8xf32>
    %64 = vector.extract_strided_slice %6 {offsets = [8, 0], sizes = [8, 64], strides = [1, 1]} : vector<16x384xf32> to vector<8x64xf32>
    %65 = arith.truncf %64 : vector<8x64xf32> to vector<8x64xbf16>
    %66 = vector.extract_strided_slice %6 {offsets = [8, 128], sizes = [8, 64], strides = [1, 1]} : vector<16x384xf32> to vector<8x64xf32>
    %67 = arith.truncf %66 : vector<8x64xf32> to vector<8x64xbf16>
    %68 = vector.extract_strided_slice %6 {offsets = [8, 256], sizes = [8, 64], strides = [1, 1]} : vector<16x384xf32> to vector<8x64xf32>
    %69 = arith.truncf %68 : vector<8x64xf32> to vector<8x64xbf16>
    %cst_22 = arith.constant dense<0.000000e+00> : vector<8x8xf32>
    %70 = tpu.matmul %65, %67, %cst_22 {dimension_numbers = #tpu.dot_dimension_numbers<[1], [1], [0], [0], [0, 0, 1, 0], [], []>} : vector<8x64xbf16>, vector<8x64xbf16>, vector<8x8xf32> -> vector<8x8xf32>
    %cst_23 = arith.constant 1.250000e-01 : f32
    %71 = vector.broadcast %cst_23 : f32 to vector<8x8xf32>
    %72 = arith.mulf %70, %71 : vector<8x8xf32>
    %73 = vector.broadcast %63 : vector<1x8xf32> to vector<8x8xf32>
    %74 = arith.addf %72, %73 : vector<8x8xf32>
    %cst_24 = arith.constant dense<0xFF800000> : vector<8xf32>
    %75 = vector.multi_reduction <maximumf>, %74, %cst_24 [1] : vector<8x8xf32> to vector<8xf32>
    %76 = vector.shape_cast %75 : vector<8xf32> to vector<8x1xf32>
    %77 = vector.broadcast %76 : vector<8x1xf32> to vector<8x8xf32>
    %78 = arith.subf %74, %77 : vector<8x8xf32>
    %79 = math.exp %78 : vector<8x8xf32>
    %cst_25 = arith.constant dense<0.000000e+00> : vector<8xf32>
    %80 = vector.multi_reduction <add>, %79, %cst_25 [1] : vector<8x8xf32> to vector<8xf32>
    %81 = vector.shape_cast %80 : vector<8xf32> to vector<8x1xf32>
    %82 = tpu.reciprocal %81 {approx = true} : vector<8x1xf32> -> vector<8x1xf32>
    %83 = vector.broadcast %82 : vector<8x1xf32> to vector<8x8xf32>
    %84 = arith.mulf %79, %83 : vector<8x8xf32>
    %85 = arith.truncf %84 : vector<8x8xf32> to vector<8x8xbf16>
    %cst_26 = arith.constant dense<0.000000e+00> : vector<8x64xf32>
    %86 = tpu.matmul %85, %69, %cst_26 {dimension_numbers = #tpu.dot_dimension_numbers<[1], [0], [0], [1], [0, 0, 1, 1], [], []>} : vector<8x8xbf16>, vector<8x64xbf16>, vector<8x64xf32> -> vector<8x64xf32>
    %87 = vector.extract_strided_slice %6 {offsets = [8, 64], sizes = [8, 64], strides = [1, 1]} : vector<16x384xf32> to vector<8x64xf32>
    %88 = arith.truncf %87 : vector<8x64xf32> to vector<8x64xbf16>
    %89 = vector.extract_strided_slice %6 {offsets = [8, 192], sizes = [8, 64], strides = [1, 1]} : vector<16x384xf32> to vector<8x64xf32>
    %90 = arith.truncf %89 : vector<8x64xf32> to vector<8x64xbf16>
    %91 = vector.extract_strided_slice %6 {offsets = [8, 320], sizes = [8, 64], strides = [1, 1]} : vector<16x384xf32> to vector<8x64xf32>
    %92 = arith.truncf %91 : vector<8x64xf32> to vector<8x64xbf16>
    %cst_27 = arith.constant dense<0.000000e+00> : vector<8x8xf32>
    %93 = tpu.matmul %88, %90, %cst_27 {dimension_numbers = #tpu.dot_dimension_numbers<[1], [1], [0], [0], [0, 0, 1, 0], [], []>} : vector<8x64xbf16>, vector<8x64xbf16>, vector<8x8xf32> -> vector<8x8xf32>
    %cst_28 = arith.constant 1.250000e-01 : f32
    %94 = vector.broadcast %cst_28 : f32 to vector<8x8xf32>
    %95 = arith.mulf %93, %94 : vector<8x8xf32>
    %96 = vector.broadcast %63 : vector<1x8xf32> to vector<8x8xf32>
    %97 = arith.addf %95, %96 : vector<8x8xf32>
    %cst_29 = arith.constant dense<0xFF800000> : vector<8xf32>
    %98 = vector.multi_reduction <maximumf>, %97, %cst_29 [1] : vector<8x8xf32> to vector<8xf32>
    %99 = vector.shape_cast %98 : vector<8xf32> to vector<8x1xf32>
    %100 = vector.broadcast %99 : vector<8x1xf32> to vector<8x8xf32>
    %101 = arith.subf %97, %100 : vector<8x8xf32>
    %102 = math.exp %101 : vector<8x8xf32>
    %cst_30 = arith.constant dense<0.000000e+00> : vector<8xf32>
    %103 = vector.multi_reduction <add>, %102, %cst_30 [1] : vector<8x8xf32> to vector<8xf32>
    %104 = vector.shape_cast %103 : vector<8xf32> to vector<8x1xf32>
    %105 = tpu.reciprocal %104 {approx = true} : vector<8x1xf32> -> vector<8x1xf32>
    %106 = vector.broadcast %105 : vector<8x1xf32> to vector<8x8xf32>
    %107 = arith.mulf %102, %106 : vector<8x8xf32>
    %108 = arith.truncf %107 : vector<8x8xf32> to vector<8x8xbf16>
    %cst_31 = arith.constant dense<0.000000e+00> : vector<8x64xf32>
    %109 = tpu.matmul %108, %92, %cst_31 {dimension_numbers = #tpu.dot_dimension_numbers<[1], [0], [0], [1], [0, 0, 1, 1], [], []>} : vector<8x8xbf16>, vector<8x64xbf16>, vector<8x64xf32> -> vector<8x64xf32>
    %110 = tpu.concatenate %86, %109 in 1 : vector<8x64xf32>, vector<8x64xf32> -> vector<8x128xf32>
    %111 = tpu.concatenate %58, %110 in 0 : vector<8x128xf32>, vector<8x128xf32> -> vector<16x128xf32>
    %112 = arith.truncf %111 : vector<16x128xf32> to vector<16x128xbf16>
    %c0_32 = arith.constant 0 : index
    %c0_33 = arith.constant 0 : index
    %113 = vector.load %arg4[%c0_32, %c0_33] : memref<128x128xbf16, #tpu.memory_space<vmem>>, vector<128x128xbf16>
    %cst_34 = arith.constant dense<0.000000e+00> : vector<16x128xf32>
    %114 = tpu.matmul %112, %113, %cst_34 {dimension_numbers = #tpu.dot_dimension_numbers<[1], [0], [0], [1], [0, 0, 1, 1], [], []>} : vector<16x128xbf16>, vector<128x128xbf16>, vector<16x128xf32> -> vector<16x128xf32>
    %c0_35 = arith.constant 0 : index
    %c0_36 = arith.constant 0 : index
    %115 = vector.load %arg5[%c0_35, %c0_36] : memref<1x128xf32, #tpu.memory_space<vmem>>, vector<1x128xf32>
    %116 = vector.broadcast %115 : vector<1x128xf32> to vector<16x128xf32>
    %117 = arith.addf %114, %116 : vector<16x128xf32>
    %118 = arith.addf %117, %0 : vector<16x128xf32>
    %c0_37 = arith.constant 0 : index
    %c0_38 = arith.constant 0 : index
    %119 = vector.load %arg6[%c0_37, %c0_38] : memref<1x128xf32, #tpu.memory_space<vmem>>, vector<1x128xf32>
    %c0_39 = arith.constant 0 : index
    %c0_40 = arith.constant 0 : index
    %120 = vector.load %arg7[%c0_39, %c0_40] : memref<1x128xf32, #tpu.memory_space<vmem>>, vector<1x128xf32>
    %cst_41 = arith.constant dense<0.000000e+00> : vector<16xf32>
    %121 = vector.multi_reduction <add>, %118, %cst_41 [1] : vector<16x128xf32> to vector<16xf32>
    %122 = vector.shape_cast %121 : vector<16xf32> to vector<16x1xf32>
    %cst_42 = arith.constant 1.280000e+02 : f32
    %123 = vector.broadcast %cst_42 : f32 to vector<16x1xf32>
    %124 = arith.divf %122, %123 : vector<16x1xf32>
    %125 = vector.broadcast %124 : vector<16x1xf32> to vector<16x128xf32>
    %126 = arith.subf %118, %125 : vector<16x128xf32>
    %127 = arith.mulf %126, %126 : vector<16x128xf32>
    %cst_43 = arith.constant dense<0.000000e+00> : vector<16xf32>
    %128 = vector.multi_reduction <add>, %127, %cst_43 [1] : vector<16x128xf32> to vector<16xf32>
    %129 = vector.shape_cast %128 : vector<16xf32> to vector<16x1xf32>
    %cst_44 = arith.constant 1.280000e+02 : f32
    %130 = vector.broadcast %cst_44 : f32 to vector<16x1xf32>
    %131 = arith.divf %129, %130 : vector<16x1xf32>
    %cst_45 = arith.constant 9.99999996E-13 : f32
    %132 = vector.broadcast %cst_45 : f32 to vector<16x1xf32>
    %133 = arith.addf %131, %132 : vector<16x1xf32>
    %134 = math.rsqrt %133 : vector<16x1xf32>
    %135 = vector.broadcast %134 : vector<16x1xf32> to vector<16x128xf32>
    %136 = arith.mulf %126, %135 : vector<16x128xf32>
    %137 = vector.broadcast %119 : vector<1x128xf32> to vector<16x128xf32>
    %138 = arith.mulf %136, %137 : vector<16x128xf32>
    %139 = vector.broadcast %120 : vector<1x128xf32> to vector<16x128xf32>
    %140 = arith.addf %138, %139 : vector<16x128xf32>
    %141 = arith.truncf %140 : vector<16x128xf32> to vector<16x128xbf16>
    %c0_46 = arith.constant 0 : index
    %c0_47 = arith.constant 0 : index
    %142 = vector.load %arg8[%c0_46, %c0_47] : memref<128x512xbf16, #tpu.memory_space<vmem>>, vector<128x512xbf16>
    %cst_48 = arith.constant dense<0.000000e+00> : vector<16x512xf32>
    %143 = tpu.matmul %141, %142, %cst_48 {dimension_numbers = #tpu.dot_dimension_numbers<[1], [0], [0], [1], [0, 0, 1, 1], [], []>} : vector<16x128xbf16>, vector<128x512xbf16>, vector<16x512xf32> -> vector<16x512xf32>
    %c0_49 = arith.constant 0 : index
    %c0_50 = arith.constant 0 : index
    %144 = vector.load %arg9[%c0_49, %c0_50] : memref<1x512xf32, #tpu.memory_space<vmem>>, vector<1x512xf32>
    %145 = vector.broadcast %144 : vector<1x512xf32> to vector<16x512xf32>
    %146 = arith.addf %143, %145 : vector<16x512xf32>
    %cst_51 = arith.constant 5.000000e-01 : f32
    %147 = vector.broadcast %cst_51 : f32 to vector<16x512xf32>
    %148 = arith.mulf %147, %146 : vector<16x512xf32>
    %cst_52 = arith.constant 4.471500e-02 : f32
    %149 = vector.broadcast %cst_52 : f32 to vector<16x512xf32>
    %150 = arith.mulf %149, %146 : vector<16x512xf32>
    %151 = arith.mulf %150, %146 : vector<16x512xf32>
    %152 = arith.mulf %151, %146 : vector<16x512xf32>
    %153 = arith.addf %146, %152 : vector<16x512xf32>
    %cst_53 = arith.constant 0.797884583 : f32
    %154 = vector.broadcast %cst_53 : f32 to vector<16x512xf32>
    %155 = arith.mulf %154, %153 : vector<16x512xf32>
    %156 = math.tanh %155 : vector<16x512xf32>
    %cst_54 = arith.constant 1.000000e+00 : f32
    %157 = vector.broadcast %cst_54 : f32 to vector<16x512xf32>
    %158 = arith.addf %157, %156 : vector<16x512xf32>
    %159 = arith.mulf %148, %158 : vector<16x512xf32>
    %160 = arith.truncf %159 : vector<16x512xf32> to vector<16x512xbf16>
    %c0_55 = arith.constant 0 : index
    %c0_56 = arith.constant 0 : index
    %161 = vector.load %arg10[%c0_55, %c0_56] : memref<512x128xbf16, #tpu.memory_space<vmem>>, vector<512x128xbf16>
    %cst_57 = arith.constant dense<0.000000e+00> : vector<16x128xf32>
    %162 = tpu.matmul %160, %161, %cst_57 {dimension_numbers = #tpu.dot_dimension_numbers<[1], [0], [0], [1], [0, 0, 1, 1], [], []>} : vector<16x512xbf16>, vector<512x128xbf16>, vector<16x128xf32> -> vector<16x128xf32>
    %c0_58 = arith.constant 0 : index
    %c0_59 = arith.constant 0 : index
    %163 = vector.load %arg11[%c0_58, %c0_59] : memref<1x128xf32, #tpu.memory_space<vmem>>, vector<1x128xf32>
    %164 = vector.broadcast %163 : vector<1x128xf32> to vector<16x128xf32>
    %165 = arith.addf %162, %164 : vector<16x128xf32>
    %166 = arith.addf %165, %140 : vector<16x128xf32>
    %c0_60 = arith.constant 0 : index
    %c0_61 = arith.constant 0 : index
    %167 = vector.load %arg12[%c0_60, %c0_61] : memref<1x128xf32, #tpu.memory_space<vmem>>, vector<1x128xf32>
    %c0_62 = arith.constant 0 : index
    %c0_63 = arith.constant 0 : index
    %168 = vector.load %arg13[%c0_62, %c0_63] : memref<1x128xf32, #tpu.memory_space<vmem>>, vector<1x128xf32>
    %cst_64 = arith.constant dense<0.000000e+00> : vector<16xf32>
    %169 = vector.multi_reduction <add>, %166, %cst_64 [1] : vector<16x128xf32> to vector<16xf32>
    %170 = vector.shape_cast %169 : vector<16xf32> to vector<16x1xf32>
    %cst_65 = arith.constant 1.280000e+02 : f32
    %171 = vector.broadcast %cst_65 : f32 to vector<16x1xf32>
    %172 = arith.divf %170, %171 : vector<16x1xf32>
    %173 = vector.broadcast %172 : vector<16x1xf32> to vector<16x128xf32>
    %174 = arith.subf %166, %173 : vector<16x128xf32>
    %175 = arith.mulf %174, %174 : vector<16x128xf32>
    %cst_66 = arith.constant dense<0.000000e+00> : vector<16xf32>
    %176 = vector.multi_reduction <add>, %175, %cst_66 [1] : vector<16x128xf32> to vector<16xf32>
    %177 = vector.shape_cast %176 : vector<16xf32> to vector<16x1xf32>
    %cst_67 = arith.constant 1.280000e+02 : f32
    %178 = vector.broadcast %cst_67 : f32 to vector<16x1xf32>
    %179 = arith.divf %177, %178 : vector<16x1xf32>
    %cst_68 = arith.constant 9.99999996E-13 : f32
    %180 = vector.broadcast %cst_68 : f32 to vector<16x1xf32>
    %181 = arith.addf %179, %180 : vector<16x1xf32>
    %182 = math.rsqrt %181 : vector<16x1xf32>
    %183 = vector.broadcast %182 : vector<16x1xf32> to vector<16x128xf32>
    %184 = arith.mulf %174, %183 : vector<16x128xf32>
    %185 = vector.broadcast %167 : vector<1x128xf32> to vector<16x128xf32>
    %186 = arith.mulf %184, %185 : vector<16x128xf32>
    %187 = vector.broadcast %168 : vector<1x128xf32> to vector<16x128xf32>
    %188 = arith.addf %186, %187 : vector<16x128xf32>
    %c0_69 = arith.constant 0 : index
    %c0_70 = arith.constant 0 : index
    %189 = vector.load %arg14[%c0_69, %c0_70] : memref<16x128xf32, #tpu.memory_space<vmem>>, vector<16x128xf32>
    tpu.vector_store %arg14[%c0_69, %c0_70], %188 {strides = array<i32>} : memref<16x128xf32, #tpu.memory_space<vmem>>, vector<16x128xf32>,
    return
  }
}

module attributes {stable_mosaic.version = 11 : i64} {
  func.func @_encoder_layer_kernel(%arg0: memref<16x128xf32, #tpu.memory_space<vmem>>, %arg1: memref<2x8xf32, #tpu.memory_space<vmem>>, %arg2: memref<128x384xbf16, #tpu.memory_space<vmem>>, %arg3: memref<1x384xf32, #tpu.memory_space<vmem>>, %arg4: memref<128x128xbf16, #tpu.memory_space<vmem>>, %arg5: memref<1x128xf32, #tpu.memory_space<vmem>>, %arg6: memref<1x128xf32, #tpu.memory_space<vmem>>, %arg7: memref<1x128xf32, #tpu.memory_space<vmem>>, %arg8: memref<128x512xbf16, #tpu.memory_space<vmem>>, %arg9: memref<1x512xf32, #tpu.memory_space<vmem>>, %arg10: memref<512x128xbf16, #tpu.memory_space<vmem>>, %arg11: memref<1x128xf32, #tpu.memory_space<vmem>>, %arg12: memref<1x128xf32, #tpu.memory_space<vmem>>, %arg13: memref<1x128xf32, #tpu.memory_space<vmem>>, %arg14: memref<16x128xf32, #tpu.memory_space<vmem>>) attributes {dimension_semantics = [], scalar_prefetch = 0 : i64, scratch_operands = 0 : i64, tpu.core_type = #tpu.core_type<tc>} {
    %c0 = arith.constant 0 : index
    %c0_0 = arith.constant 0 : index
    %0 = vector.load %arg0[%c0, %c0_0] : memref<16x128xf32, #tpu.memory_space<vmem>>, vector<16x128xf32>
    %1 = arith.truncf %0 : vector<16x128xf32> to vector<16x128xbf16>
    %c0_1 = arith.constant 0 : index
    %c0_2 = arith.constant 0 : index
    %2 = vector.load %arg2[%c0_1, %c0_2] : memref<128x384xbf16, #tpu.memory_space<vmem>>, vector<128x384xbf16>
    %cst = arith.constant dense<0.000000e+00> : vector<16x384xf32>
    %3 = tpu.matmul %1, %2, %cst {dimension_numbers = #tpu.dot_dimension_numbers<[1], [0], [0], [1], [0, 0, 1, 1], [], []>} : vector<16x128xbf16>, vector<128x384xbf16>, vector<16x384xf32> -> vector<16x384xf32>
    %c0_3 = arith.constant 0 : index
    %c0_4 = arith.constant 0 : index
    %4 = vector.load %arg3[%c0_3, %c0_4] : memref<1x384xf32, #tpu.memory_space<vmem>>, vector<1x384xf32>
    %5 = vector.broadcast %4 : vector<1x384xf32> to vector<16x384xf32>
    %6 = arith.addf %3, %5 : vector<16x384xf32>
    %c0_5 = arith.constant 0 : index
    %c0_6 = arith.constant 0 : index
    %7 = vector.load %arg1[%c0_5, %c0_6] : memref<2x8xf32, #tpu.memory_space<vmem>>, vector<1x8xf32>
    %cst_7 = arith.constant 1.000000e+00 : f32
    %8 = vector.broadcast %cst_7 : f32 to vector<1x8xf32>
    %9 = arith.subf %8, %7 : vector<1x8xf32>
    %cst_8 = arith.constant -1.000000e+09 : f32
    %10 = vector.broadcast %cst_8 : f32 to vector<1x8xf32>
    %11 = arith.mulf %9, %10 : vector<1x8xf32>
    %12 = vector.extract_strided_slice %6 {offsets = [0, 0], sizes = [8, 64], strides = [1, 1]} : vector<16x384xf32> to vector<8x64xf32>
    %13 = arith.truncf %12 : vector<8x64xf32> to vector<8x64xbf16>
    %14 = vector.extract_strided_slice %6 {offsets = [0, 128], sizes = [8, 64], strides = [1, 1]} : vector<16x384xf32> to vector<8x64xf32>
    %15 = arith.truncf %14 : vector<8x64xf32> to vector<8x64xbf16>
    %16 = vector.extract_strided_slice %6 {offsets = [0, 256], sizes = [8, 64], strides = [1, 1]} : vector<16x384xf32> to vector<8x64xf32>
    %17 = arith.truncf %16 : vector<8x64xf32> to vector<8x64xbf16>
    %cst_9 = arith.constant dense<0.000000e+00> : vector<8x8xf32>
    %18 = tpu.matmul %13, %15, %cst_9 {dimension_numbers = #tpu.dot_dimension_numbers<[1], [1], [0], [0], [0, 0, 1, 0], [], []>} : vector<8x64xbf16>, vector<8x64xbf16>, vector<8x8xf32> -> vector<8x8xf32>
    %cst_10 = arith.constant 1.250000e-01 : f32
    %19 = vector.broadcast %cst_10 : f32 to vector<8x8xf32>
    %20 = arith.mulf %18, %19 : vector<8x8xf32>
    %21 = vector.broadcast %11 : vector<1x8xf32> to vector<8x8xf32>
    %22 = arith.addf %20, %21 : vector<8x8xf32>
    %cst_11 = arith.constant dense<0xFF800000> : vector<8xf32>
    %23 = vector.multi_reduction <maximumf>, %22, %cst_11 [1] : vector<8x8xf32> to vector<8xf32>
    %24 = vector.shape_cast %23 : vector<8xf32> to vector<8x1xf32>
    %25 = vector.broadcast %24 : vector<8x1xf32> to vector<8x8xf32>
    %26 = arith.subf %22, %25 : vector<8x8xf32>
    %27 = math.exp %26 : vector<8x8xf32>
    %cst_12 = arith.constant dense<0.000000e+00> : vector<8xf32>
    %28 = vector.multi_reduction <add>, %27, %cst_12 [1] : vector<8x8xf32> to vector<8xf32>
    %29 = vector.shape_cast %28 : vector<8xf32> to vector<8x1xf32>
    %30 = tpu.reciprocal %29 {approx = true} : vector<8x1xf32> -> vector<8x1xf32>
    %31 = vector.broadcast %30 : vector<8x1xf32> to vector<8x8xf32>
    %32 = arith.mulf %27, %31 : vector<8x8xf32>
    %33 = arith.truncf %32 : vector<8x8xf32> to vector<8x8xbf16>
    %cst_13 = arith.constant dense<0.000000e+00> : vector<8x64xf32>
    %34 = tpu.matmul %33, %17, %cst_13 {dimension_numbers = #tpu.dot_dimension_numbers<[1], [0], [0], [1], [0, 0, 1, 1], [], []>} : vector<8x8xbf16>, vector<8x64xbf16>, vector<8x64xf32> -> vector<8x64xf32>
    %35 = vector.extract_strided_slice %6 {offsets = [0, 64], sizes = [8, 64], strides = [1, 1]} : vector<16x384xf32> to vector<8x64xf32>
    %36 = arith.truncf %35 : vector<8x64xf32> to vector<8x64xbf16>
    %37 = vector.extract_strided_slice %6 {offsets = [0, 192], sizes = [8, 64], strides = [1, 1]} : vector<16x384xf32> to vector<8x64xf32>
    %38 = arith.truncf %37 : vector<8x64xf32> to vector<8x64xbf16>
    %39 = vector.extract_strided_slice %6 {offsets = [0, 320], sizes = [8, 64], strides = [1, 1]} : vector<16x384xf32> to vector<8x64xf32>
    %40 = arith.truncf %39 : vector<8x64xf32> to vector<8x64xbf16>
    %cst_14 = arith.constant dense<0.000000e+00> : vector<8x8xf32>
    %41 = tpu.matmul %36, %38, %cst_14 {dimension_numbers = #tpu.dot_dimension_numbers<[1], [1], [0], [0], [0, 0, 1, 0], [], []>} : vector<8x64xbf16>, vector<8x64xbf16>, vector<8x8xf32> -> vector<8x8xf32>
    %cst_15 = arith.constant 1.250000e-01 : f32
    %42 = vector.broadcast %cst_15 : f32 to vector<8x8xf32>
    %43 = arith.mulf %41, %42 : vector<8x8xf32>
    %44 = vector.broadcast %11 : vector<1x8xf32> to vector<8x8xf32>
    %45 = arith.addf %43, %44 : vector<8x8xf32>
    %cst_16 = arith.constant dense<0xFF800000> : vector<8xf32>
    %46 = vector.multi_reduction <maximumf>, %45, %cst_16 [1] : vector<8x8xf32> to vector<8xf32>
    %47 = vector.shape_cast %46 : vector<8xf32> to vector<8x1xf32>
    %48 = vector.broadcast %47 : vector<8x1xf32> to vector<8x8xf32>
    %49 = arith.subf %45, %48 : vector<8x8xf32>
    %50 = math.exp %49 : vector<8x8xf32>
    %cst_17 = arith.constant dense<0.000000e+00> : vector<8xf32>
    %51 = vector.multi_reduction <add>, %50, %cst_17 [1] : vector<8x8xf32> to vector<8xf32>
    %52 = vector.shape_cast %51 : vector<8xf32> to vector<8x1xf32>
    %53 = tpu.reciprocal %52 {approx = true} : vector<8x1xf32> -> vector<8x1xf32>
    %54 = vector.broadcast %53 : vector<8x1xf32> to vector<8x8xf32>
    %55 = arith.mulf %50, %54 : vector<8x8xf32>
    %56 = arith.truncf %55 : vector<8x8xf32> to vector<8x8xbf16>
    %cst_18 = arith.constant dense<0.000000e+00> : vector<8x64xf32>
    %57 = tpu.matmul %56, %40, %cst_18 {dimension_numbers = #tpu.dot_dimension_numbers<[1], [0], [0], [1], [0, 0, 1, 1], [], []>} : vector<8x8xbf16>, vector<8x64xbf16>, vector<8x64xf32> -> vector<8x64xf32>
    %58 = tpu.concatenate %34, %57 in 1 : vector<8x64xf32>, vector<8x64xf32> -> vector<8x128xf32>
    %c1 = arith.constant 1 : index
    %c0_19 = arith.constant 0 : index
    %59 = vector.load %arg1[%c1, %c0_19] : memref<2x8xf32, #tpu.memory_space<vmem>>, vector<1x8xf32>
    %cst_20 = arith.constant 1.000000e+00 : f32
    %60 = vector.broadcast %cst_20 : f32 to vector<1x8xf32>
    %61 = arith.subf %60, %59 : vector<1x8xf32>
    %cst_21 = arith.constant -1.000000e+09 : f32
    %62 = vector.broadcast %cst_21 : f32 to vector<1x8xf32>
    %63 = arith.mulf %61, %62 : vector<1x8xf32>
    %64 = vector.extract_strided_slice %6 {offsets = [8, 0], sizes = [8, 64], strides = [1, 1]} : vector<16x384xf32> to vector<8x64xf32>
    %65 = arith.truncf %64 : vector<8x64xf32> to vector<8x64xbf16>
    %66 = vector.extract_strided_slice %6 {offsets = [8, 128], sizes = [8, 64], strides = [1, 1]} : vector<16x384xf32> to vector<8x64xf32>
    %67 = arith.truncf %66 : vector<8x64xf32> to vector<8x64xbf16>
    %68 = vector.extract_strided_slice %6 {offsets = [8, 256], sizes = [8, 64], strides = [1, 1]} : vector<16x384xf32> to vector<8x64xf32>
    %69 = arith.truncf %68 : vector<8x64xf32> to vector<8x64xbf16>
    %cst_22 = arith.constant dense<0.000000e+00> : vector<8x8xf32>
    %70 = tpu.matmul %65, %67, %cst_22 {dimension_numbers = #tpu.dot_dimension_numbers<[1], [1], [0], [0], [0, 0, 1, 0], [], []>} : vector<8x64xbf16>, vector<8x64xbf16>, vector<8x8xf32> -> vector<8x8xf32>
    %cst_23 = arith.constant 1.250000e-01 : f32
    %71 = vector.broadcast %cst_23 : f32 to vector<8x8xf32>
    %72 = arith.mulf %70, %71 : vector<8x8xf32>
    %73 = vector.broadcast %63 : vector<1x8xf32> to vector<8x8xf32>
    %74 = arith.addf %72, %73 : vector<8x8xf32>
    %cst_24 = arith.constant dense<0xFF800000> : vector<8xf32>
    %75 = vector.multi_reduction <maximumf>, %74, %cst_24 [1] : vector<8x8xf32> to vector<8xf32>
    %76 = vector.shape_cast %75 : vector<8xf32> to vector<8x1xf32>
    %77 = vector.broadcast %76 : vector<8x1xf32> to vector<8x8xf32>
    %78 = arith.subf %74, %77 : vector<8x8xf32>
    %79 = math.exp %78 : vector<8x8xf32>
    %cst_25 = arith.constant dense<0.000000e+00> : vector<8xf32>
    %80 = vector.multi_reduction <add>, %79, %cst_25 [1] : vector<8x8xf32> to vector<8xf32>
    %81 = vector.shape_cast %80 : vector<8xf32> to vector<8x1xf32>
    %82 = tpu.reciprocal %81 {approx = true} : vector<8x1xf32> -> vector<8x1xf32>
    %83 = vector.broadcast %82 : vector<8x1xf32> to vector<8x8xf32>
    %84 = arith.mulf %79, %83 : vector<8x8xf32>
    %85 = arith.truncf %84 : vector<8x8xf32> to vector<8x8xbf16>
    %cst_26 = arith.constant dense<0.000000e+00> : vector<8x64xf32>
    %86 = tpu.matmul %85, %69, %cst_26 {dimension_numbers = #tpu.dot_dimension_numbers<[1], [0], [0], [1], [0, 0, 1, 1], [], []>} : vector<8x8xbf16>, vector<8x64xbf16>, vector<8x64xf32> -> vector<8x64xf32>
    %87 = vector.extract_strided_slice %6 {offsets = [8, 64], sizes = [8, 64], strides = [1, 1]} : vector<16x384xf32> to vector<8x64xf32>
    %88 = arith.truncf %87 : vector<8x64xf32> to vector<8x64xbf16>
    %89 = vector.extract_strided_slice %6 {offsets = [8, 192], sizes = [8, 64], strides = [1, 1]} : vector<16x384xf32> to vector<8x64xf32>
    %90 = arith.truncf %89 : vector<8x64xf32> to vector<8x64xbf16>
    %91 = vector.extract_strided_slice %6 {offsets = [8, 320], sizes = [8, 64], strides = [1, 1]} : vector<16x384xf32> to vector<8x64xf32>
    %92 = arith.truncf %91 : vector<8x64xf32> to vector<8x64xbf16>
    %cst_27 = arith.constant dense<0.000000e+00> : vector<8x8xf32>
    %93 = tpu.matmul %88, %90, %cst_27 {dimension_numbers = #tpu.dot_dimension_numbers<[1], [1], [0], [0], [0, 0, 1, 0], [], []>} : vector<8x64xbf16>, vector<8x64xbf16>, vector<8x8xf32> -> vector<8x8xf32>
    %cst_28 = arith.constant 1.250000e-01 : f32
    %94 = vector.broadcast %cst_28 : f32 to vector<8x8xf32>
    %95 = arith.mulf %93, %94 : vector<8x8xf32>
    %96 = vector.broadcast %63 : vector<1x8xf32> to vector<8x8xf32>
    %97 = arith.addf %95, %96 : vector<8x8xf32>
    %cst_29 = arith.constant dense<0xFF800000> : vector<8xf32>
    %98 = vector.multi_reduction <maximumf>, %97, %cst_29 [1] : vector<8x8xf32> to vector<8xf32>
    %99 = vector.shape_cast %98 : vector<8xf32> to vector<8x1xf32>
    %100 = vector.broadcast %99 : vector<8x1xf32> to vector<8x8xf32>
    %101 = arith.subf %97, %100 : vector<8x8xf32>
    %102 = math.exp %101 : vector<8x8xf32>
    %cst_30 = arith.constant dense<0.000000e+00> : vector<8xf32>
    %103 = vector.multi_reduction <add>, %102, %cst_30 [1] : vector<8x8xf32> to vector<8xf32>
    %104 = vector.shape_cast %103 : vector<8xf32> to vector<8x1xf32>
    %105 = tpu.reciprocal %104 {approx = true} : vector<8x1xf32> -> vector<8x1xf32>
    %106 = vector.broadcast %105 : vector<8x1xf32> to vector<8x8xf32>
    %107 = arith.mulf %102, %106 : vector<8x8xf32>
    %108 = arith.truncf %107 : vector<8x8xf32> to vector<8x8xbf16>
    %cst_31 = arith.constant dense<0.000000e+00> : vector<8x64xf32>
    %109 = tpu.matmul %108, %92, %cst_31 {dimension_numbers = #tpu.dot_dimension_numbers<[1], [0], [0], [1], [0, 0, 1, 1], [], []>} : vector<8x8xbf16>, vector<8x64xbf16>, vector<8x64xf32> -> vector<8x64xf32>
    %110 = tpu.concatenate %86, %109 in 1 : vector<8x64xf32>, vector<8x64xf32> -> vector<8x128xf32>
    %111 = tpu.concatenate %58, %110 in 0 : vector<8x128xf32>, vector<8x128xf32> -> vector<16x128xf32>
    %112 = arith.truncf %111 : vector<16x128xf32> to vector<16x128xbf16>
    %c0_32 = arith.constant 0 : index
    %c0_33 = arith.constant 0 : index
    %113 = vector.load %arg4[%c0_32, %c0_33] : memref<128x128xbf16, #tpu.memory_space<vmem>>, vector<128x128xbf16>
    %cst_34 = arith.constant dense<0.000000e+00> : vector<16x128xf32>
    %114 = tpu.matmul %112, %113, %cst_34 {dimension_numbers = #tpu.dot_dimension_numbers<[1], [0], [0], [1], [0, 0, 1, 1], [], []>} : vector<16x128xbf16>, vector<128x128xbf16>, vector<16x128xf32> -> vector<16x128xf32>
    %c0_35 = arith.constant 0 : index
    %c0_36 = arith.constant 0 : index
    %115 = vector.load %arg5[%c0_35, %c0_36] : memref<1x128xf32, #tpu.memory_space<vmem>>, vector<1x128xf32>
    %116 = vector.broadcast %115 : vector<1x128xf32> to vector<16x128xf32>
    %117 = arith.addf %114, %116 : vector<16x128xf32>
    %118 = arith.addf %117, %0 : vector<16x128xf32>
    %c0_37 = arith.constant 0 : index
    %c0_38 = arith.constant 0 : index
    %119 = vector.load %arg6[%c0_37, %c0_38] : memref<1x128xf32, #tpu.memory_space<vmem>>, vector<1x128xf32>
    %c0_39 = arith.constant 0 : index
    %c0_40 = arith.constant 0 : index
    %120 = vector.load %arg7[%c0_39, %c0_40] : memref<1x128xf32, #tpu.memory_space<vmem>>, vector<1x128xf32>
    %cst_41 = arith.constant dense<0.000000e+00> : vector<16xf32>
    %121 = vector.multi_reduction <add>, %118, %cst_41 [1] : vector<16x128xf32> to vector<16xf32>
    %122 = vector.shape_cast %121 : vector<16xf32> to vector<16x1xf32>
    %cst_42 = arith.constant 1.280000e+02 : f32
    %123 = vector.broadcast %cst_42 : f32 to vector<16x1xf32>
    %124 = arith.divf %122, %123 : vector<16x1xf32>
    %125 = vector.broadcast %124 : vector<16x1xf32> to vector<16x128xf32>
    %126 = arith.subf %118, %125 : vector<16x128xf32>
    %127 = arith.mulf %126, %126 : vector<16x128xf32>
    %cst_43 = arith.constant dense<0.000000e+00> : vector<16xf32>
    %128 = vector.multi_reduction <add>, %127, %cst_43 [1] : vector<16x128xf32> to vector<16xf32>
    %129 = vector.shape_cast %128 : vector<16xf32> to vector<16x1xf32>
    %cst_44 = arith.constant 1.280000e+02 : f32
    %130 = vector.broadcast %cst_44 : f32 to vector<16x1xf32>
    %131 = arith.divf %129, %130 : vector<16x1xf32>
    %cst_45 = arith.constant 9.99999996E-13 : f32
    %132 = vector.broadcast %cst_45 : f32 to vector<16x1xf32>
    %133 = arith.addf %131, %132 : vector<16x1xf32>
    %134 = math.rsqrt %133 : vector<16x1xf32>
    %135 = vector.broadcast %134 : vector<16x1xf32> to vector<16x128xf32>
    %136 = arith.mulf %126, %135 : vector<16x128xf32>
    %137 = vector.broadcast %119 : vector<1x128xf32> to vector<16x128xf32>
    %138 = arith.mulf %136, %137 : vector<16x128xf32>
    %139 = vector.broadcast %120 : vector<1x128xf32> to vector<16x128xf32>
    %140 = arith.addf %138, %139 : vector<16x128xf32>
    %141 = arith.truncf %140 : vector<16x128xf32> to vector<16x128xbf16>
    %c0_46 = arith.constant 0 : index
    %c0_47 = arith.constant 0 : index
    %142 = vector.load %arg8[%c0_46, %c0_47] : memref<128x512xbf16, #tpu.memory_space<vmem>>, vector<128x512xbf16>
    %cst_48 = arith.constant dense<0.000000e+00> : vector<16x512xf32>
    %143 = tpu.matmul %141, %142, %cst_48 {dimension_numbers = #tpu.dot_dimension_numbers<[1], [0], [0], [1], [0, 0, 1, 1], [], []>} : vector<16x128xbf16>, vector<128x512xbf16>, vector<16x512xf32> -> vector<16x512xf32>
    %c0_49 = arith.constant 0 : index
    %c0_50 = arith.constant 0 : index
    %144 = vector.load %arg9[%c0_49, %c0_50] : memref<1x512xf32, #tpu.memory_space<vmem>>, vector<1x512xf32>
    %145 = vector.broadcast %144 : vector<1x512xf32> to vector<16x512xf32>
    %146 = arith.addf %143, %145 : vector<16x512xf32>
    %cst_51 = arith.constant 5.000000e-01 : f32
    %147 = vector.broadcast %cst_51 : f32 to vector<16x512xf32>
    %148 = arith.mulf %147, %146 : vector<16x512xf32>
    %cst_52 = arith.constant 4.471500e-02 : f32
    %149 = vector.broadcast %cst_52 : f32 to vector<16x512xf32>
    %150 = arith.mulf %149, %146 : vector<16x512xf32>
    %151 = arith.mulf %150, %146 : vector<16x512xf32>
    %152 = arith.mulf %151, %146 : vector<16x512xf32>
    %153 = arith.addf %146, %152 : vector<16x512xf32>
    %cst_53 = arith.constant 0.797884583 : f32
    %154 = vector.broadcast %cst_53 : f32 to vector<16x512xf32>
    %155 = arith.mulf %154, %153 : vector<16x512xf32>
    %156 = math.tanh %155 : vector<16x512xf32>
    %cst_54 = arith.constant 1.000000e+00 : f32
    %157 = vector.broadcast %cst_54 : f32 to vector<16x512xf32>
    %158 = arith.addf %157, %156 : vector<16x512xf32>
    %159 = arith.mulf %148, %158 : vector<16x512xf32>
    %160 = arith.truncf %159 : vector<16x512xf32> to vector<16x512xbf16>
    %c0_55 = arith.constant 0 : index
    %c0_56 = arith.constant 0 : index
    %161 = vector.load %arg10[%c0_55, %c0_56] : memref<512x128xbf16, #tpu.memory_space<vmem>>, vector<512x128xbf16>
    %cst_57 = arith.constant dense<0.000000e+00> : vector<16x128xf32>
    %162 = tpu.matmul %160, %161, %cst_57 {dimension_numbers = #tpu.dot_dimension_numbers<[1], [0], [0], [1], [0, 0, 1, 1], [], []>} : vector<16x512xbf16>, vector<512x128xbf16>, vector<16x128xf32> -> vector<16x128xf32>
    %c0_58 = arith.constant 0 : index
    %c0_59 = arith.constant 0 : index
    %163 = vector.load %arg11[%c0_58, %c0_59] : memref<1x128xf32, #tpu.memory_space<vmem>>, vector<1x128xf32>
    %164 = vector.broadcast %163 : vector<1x128xf32> to vector<16x128xf32>
    %165 = arith.addf %162, %164 : vector<16x128xf32>
    %166 = arith.addf %165, %140 : vector<16x128xf32>
    %c0_60 = arith.constant 0 : index
    %c0_61 = arith.constant 0 : index
    %167 = vector.load %arg12[%c0_60, %c0_61] : memref<1x128xf32, #tpu.memory_space<vmem>>, vector<1x128xf32>
    %c0_62 = arith.constant 0 : index
    %c0_63 = arith.constant 0 : index
    %168 = vector.load %arg13[%c0_62, %c0_63] : memref<1x128xf32, #tpu.memory_space<vmem>>, vector<1x128xf32>
    %cst_64 = arith.constant dense<0.000000e+00> : vector<16xf32>
    %169 = vector.multi_reduction <add>, %166, %cst_64 [1] : vector<16x128xf32> to vector<16xf32>
    %170 = vector.shape_cast %169 : vector<16xf32> to vector<16x1xf32>
    %cst_65 = arith.constant 1.280000e+02 : f32
    %171 = vector.broadcast %cst_65 : f32 to vector<16x1xf32>
    %172 = arith.divf %170, %171 : vector<16x1xf32>
    %173 = vector.broadcast %172 : vector<16x1xf32> to vector<16x128xf32>
    %174 = arith.subf %166, %173 : vector<16x128xf32>
    %175 = arith.mulf %174, %174 : vector<16x128xf32>
    %cst_66 = arith.constant dense<0.000000e+00> : vector<16xf32>
    %176 = vector.multi_reduction <add>, %175, %cst_66 [1] : vector<16x128xf32> to vector<16xf32>
    %177 = vector.shape_cast %176 : vector<16xf32> to vector<16x1xf32>
    %cst_67 = arith.constant 1.280000e+02 : f32
    %178 = vector.broadcast %cst_67 : f32 to vector<16x1xf32>
    %179 = arith.divf %177, %178 : vector<16x1xf32>
    %cst_68 = arith.constant 9.99999996E-13 : f32
    %180 = vector.broadcast %cst_68 : f32 to vector<16x1xf32>
    %181 = arith.addf %179, %180 : vector<16x1xf32>
    %182 = math.rsqrt %181 : vector<16x1xf32>
    %183 = vector.broadcast %182 : vector<16x1xf32> to vector<16x128xf32>
    %184 = arith.mulf %174, %183 : vector<16x128xf32>
    %185 = vector.broadcast %167 : vector<1x128xf32> to vector<16x128xf32>
    %186 = arith.mulf %184, %185 : vector<16x128xf32>
    %187 = vector.broadcast %168 : vector<1x128xf32> to vector<16x128xf32>
    %188 = arith.addf %186, %187 : vector<16x128xf32>
    %c0_69 = arith.constant 0 : index
    %c0_70 = arith.constant 0 : index
    %189 = vector.load %arg14[%c0_69, %c0_70] : memref<16x128xf32, #tpu.memory_space<vmem>>, vector<16x128xf32>
    tpu.vector_store %arg14[%c0_69, %c0_70], %188 {strides = array<i32>} : memref<16x128xf32, #tpu.memory_space<vmem>>, vector<16x128xf32>,
    return
  }
}

</mosaic_0001>

<bundles_post_ra>
// kernel: bert_base_uncased_forward.4
= control target key start
LH: loop header
LB: loop body
LE: loop exit
PB: predicated region body
PF: predicated region fallthrough
CT: control target
= control target key end

     0   :  { %s107_s0 = inlined_call_operand.vmem [shape: f32[16,128], index: 0, kind: input, shape index: {}]   ;;  %s108_s1 = inlined_call_operand.vmem [shape: f32[1,128], index: 1, kind: input, shape index: {}]   ;;  %s109_s2 = inlined_call_operand.vmem [shape: f32[1,128], index: 2, kind: input, shape index: {}]   ;;  %s110_s3 = inlined_call_operand.vmem [shape: f32[16,128], index: 3, kind: output, shape index: {}]  }
   0x1   :  { %v14_v0 = vld [vmem:[%s107_s0] sm:$0xff]  ;;  %v15_v1 = vld [vmem:[%s107_s0 + $0x8] sm:$0xff] }
   0x2   :  { %18 = vadd.xlane.f32.xlu0 %v14_v0  ;;  %v63_v17 = vld [vmem:[%s108_s1] ss:$0 sm:$0xff] }
   0x3   :  { %v64_v19 = vld [vmem:[%s109_s2] ss:$0 sm:$0xff] }
   0x6   :  { %20 = vadd.xlane.f32.xlu0 %v15_v1 }
  0x8b   :  { %v19_v2 = vpop.xlane.xlu0 %18 }
  0x8c   :  { %v23_v3 = vmul.f32 0.0078125, %v19_v2 }
  0x8e   :  { %v25_v4 = vsub.f32 %v14_v0, %v23_v3 }
  0x8f   :  { %v21_v5 = vpop.xlane.xlu0 %20 }
  0x90   :  { %v24_v6 = vmul.f32 0.0078125, %v21_v5  ;;  %v27_v7 = vmul.f32 %v25_v4, %v25_v4 }
  0x92   :  { %v26_v8 = vsub.f32 %v15_v1, %v24_v6  ;;  %29 = vadd.xlane.f32.xlu1 %v27_v7 }
  0x94   :  { %v28_v9 = vmul.f32 %v26_v8, %v26_v8 }
  0x96   :  { %31 = vadd.xlane.f32.xlu1 %v28_v9 }
 0x11b   :  { %v30_v10 = vpop.xlane.xlu1 %29 }
 0x11c   :  { %v33_v11 = vmul.f32 0.0078125, %v30_v10 }
 0x11e   :  { %v35_v12 = vadd.f32 1e-12, %v33_v11 }
 0x11f   :  { %v32_v13 = vpop.xlane.xlu1 %31 }
 0x120   :  { %65 = vrsqrt.f32 %v35_v12  ;;  %v34_v14 = vmul.f32 0.0078125, %v32_v13 }
 0x122   :  { %v36_v15 = vadd.f32 1e-12, %v34_v14 }
 0x124   :  { %67 = vrsqrt.f32 %v36_v15 }
 0x12d   :  { %v66_v16 = vpop.eup %65 }
 0x12e   :  { %v39_v18 = vmul.f32 %v66_v16, %v25_v4 }
 0x130   :  { %v47_v20 = vmul.f32 %v63_v17, %v39_v18 }
 0x131   :  { %v68_v21 = vpop.eup %67 }
 0x132   :  { %v55_v22 = vadd.f32 %v64_v19, %v47_v20  ;;  %v40_v23 = vmul.f32 %v68_v21, %v26_v8 }
 0x134   :  { %57 = vst [vmem:[%s110_s3] sm:$0xff] %v55_v22  ;;  %v48_v24 = vmul.f32 %v63_v17, %v40_v23 }
 0x136   :  { %v56_v25 = vadd.f32 %v64_v19, %v48_v24 }
 0x138   :  { %58 = vst [vmem:[%s110_s3 + $0x8] sm:$0xff] %v56_v25 }

// kernel: bert_base_uncased_forward.7
= control target key start
LH: loop header
LB: loop body
LE: loop exit
PB: predicated region body
PF: predicated region fallthrough
CT: control target
= control target key end

     0   :  { %v388_v1 = vmov 0.0   ;;  %vm389_vm0 = vmmov 0   ;;  %s484_s0 = inlined_call_operand.vmem [shape: f32[16,128], index: 0, kind: input, shape index: {}]   ;;  %s485_s1 = inlined_call_operand.vmem [shape: bf16[128,128], index: 1, kind: input, shape index: {}]   ;;  %s486_s2 = inlined_call_operand.vmem [shape: f32[1,128], index: 2, kind: input, shape index: {}]   ;;  %s487_s3 = inlined_call_operand.vmem [shape: bf16[128,128], index: 3, kind: input, shape index: {}]   ;;  %s488_s4 = inlined_call_operand.vmem [shape: f32[1,128], index: 4, kind: input, shape index: {}]   ;;  %s489_s5 = inlined_call_operand.hbm [shape: f32[2,128], index: 5, kind: output, shape index: {}]  }
   0x1   :  { %v348_v0 = vld [vmem:[%s485_s1 + $0x38] sm:$0xff]   ;;  %305 = vmatprep.subr.bf16.mxu0 %v388_v1  ;;  %325 = vmatprep.subr.bf16.mxu1 %v388_v1  ;;  %v349_v2 = vld [vmem:[%s485_s1 + $0x30] sm:$0xff]   ;;  %v350_v3 = vld [vmem:[%s485_s1 + $0x28] sm:$0xff]  }
   0x2   :  { %306 = vmatpush3.bf16.msra.mxu0 %v348_v0  ;;  %321 = vmatprep.mubr.msk.bf16.mxu0 %vm389_vm0, %v388_v1  ;;  %v356_v4 = vld [vmem:[%s487_s3 + $0x38] sm:$0xff]   ;;  %v351_v5 = vld [vmem:[%s485_s1 + $0x20] sm:$0xff]   ;;  %v357_v6 = vld [vmem:[%s487_s3 + $0x30] sm:$0xff]  }
   0x3   :  { %307 = vmatprep.subr.bf16.mxu0 %v388_v1  ;;  %341 = vmatprep.mubr.msk.bf16.mxu1 %vm389_vm0, %v388_v1  ;;  %v352_v7 = vld [vmem:[%s485_s1 + $0x18] sm:$0xff]   ;;  %v358_v8 = vld [vmem:[%s487_s3 + $0x28] sm:$0xff]  }
   0x4   :  { %326 = vmatpush3.bf16.msra.mxu1 %v356_v4 }
   0x5   :  { %327 = vmatprep.subr.bf16.mxu1 %v388_v1 }
   0x6   :  { %308 = vmatpush3.bf16.msra.mxu0 %v349_v2 }
   0x7   :  { %309 = vmatprep.subr.bf16.mxu0 %v388_v1 }
   0x8   :  { %328 = vmatpush3.bf16.msra.mxu1 %v357_v6 }
   0xa   :  { %310 = vmatpush3.bf16.msra.mxu0 %v350_v3 }
   0xb   :  { %311 = vmatprep.subr.bf16.mxu0 %v388_v1 }
   0xe   :  { %312 = vmatpush3.bf16.msra.mxu0 %v351_v5 }
   0xf   :  { %313 = vmatprep.subr.bf16.mxu0 %v388_v1 }
  0x10   :  { %10 = vsyncpa [#allocation3], 0  ;;  %329 = vmatprep.subr.bf16.mxu1 %v388_v1  ;;  %v353_v9 = vld [vmem:[%s485_s1 + $0x10] sm:$0xff]   ;;  %v23_v10 = vld [vmem:[%s484_s0 + $0x8] sm:$0x1]  ;;  %vm27_vm1 = vcmask 1040384  }
  0x11   :  { %330 = vmatpush3.bf16.msra.mxu1 %v358_v8  ;;  %v354_v11 = vld [vmem:[%s485_s1 + $0x8] sm:$0xff]   ;;  %v25_v12 = vrot.slane %v23_v10, 7  ;;  %v22_v13 = vld [vmem:[%s484_s0] sm:$0x1]  ;;  %v360_v18 = vld [vmem:[%s487_s3 + $0x18] sm:$0xff]  }
  0x12   :  { %314 = vmatpush3.bf16.msra.mxu0 %v352_v7  ;;  %331 = vmatprep.subr.bf16.mxu1 %v388_v1  ;;  %v355_v14 = vld [vmem:[%s485_s1] sm:$0xff]   ;;  %v361_v19 = vld [vmem:[%s487_s3 + $0x10] sm:$0xff]   ;;  %v362_v20 = vld [vmem:[%s487_s3 + $0x8] sm:$0xff]  }
  0x13   :  { %315 = vmatprep.subr.bf16.mxu0 %v388_v1  ;;  %v28_v15 = vsel %vm27_vm1, %v22_v13, %v25_v12  ;;  %v359_v17 = vld [vmem:[%s487_s3 + $0x20] sm:$0xff]  }
  0x14   :  { %v29_v16 = vpack.c.bf16 %v28_v15, %v28_v15  ;;  %v363_v21 = vld [vmem:[%s487_s3] sm:$0xff]   ;;  %s390_s3 = smov [#allocation2]  }
  0x15   :  { %332 = vmatpush3.bf16.msra.mxu1 %v359_v17  ;;  %v269_v22 = vld [vmem:[%s486_s2] ss:$0 sm:$0xff]  ;;  %s261_s6 = sshll.u32 %s390_s3, 4  ;;  %s262_s6 = int_to_ptr.vmem [resolvable:$true] %s261_s6 }
  0x16   :  { %316 = vmatpush3.bf16.msra.mxu0 %v353_v9  ;;  %333 = vmatprep.subr.bf16.mxu1 %v388_v1  ;;  %v278_v30 = vld [vmem:[%s488_s4] ss:$0 sm:$0xff]  ;;  %s366_s2 = scalar_lea.vmem %s262_s6, 32  ;;  %p371_p1 = scmp.lt.s32.totalorder %s262_s6, %s262_s6 }
  0x17   :  { %317 = vmatprep.subr.bf16.mxu0 %v388_v1  ;;  %p367_p0 = scmp.ne.s32.totalorder %s262_s6, %s366_s2  ;;  %p372_p2 = scmp.lt.s32.totalorder %s366_s2, %s366_s2 }
  0x19   :  { %334 = vmatpush3.bf16.msra.mxu1 %v360_v18  ;;  %p373_p3 = por %p372_p2, %p371_p1 }
  0x1a   :  { %318 = vmatpush3.bf16.msra.mxu0 %v354_v11  ;;  %335 = vmatprep.subr.bf16.mxu1 %v388_v1 }
  0x1b   :  { %319 = vmatprep.subr.bf16.mxu0 %v388_v1  ;;  %p374_p4 = pnand %p373_p3, %p367_p0 }
  0x1d   :  { %336 = vmatpush3.bf16.msra.mxu1 %v361_v19 }
  0x1e   :  { %320 = vmatpush3.bf16.msra.mxu0 %v355_v14  ;;  %337 = vmatprep.subr.bf16.mxu1 %v388_v1 }
  0x21   :  { %322 = vmatmul.mubr.bf16.vlgmr.msra.gmra.mxu0 %v29_v16  ;;  %338 = vmatpush3.bf16.msra.mxu1 %v362_v20 }
  0x22   :  { %339 = vmatprep.subr.bf16.mxu1 %v388_v1 }
  0x25   :  { %340 = vmatpush3.bf16.msra.mxu1 %v363_v21 }
  0xe1   :  { %v135_v23 = vpop.f32.mrf.mxu0 }
  0xe2   :  { %v136_v24 = vadd.f32 %v269_v22, %v135_v23 }
  0xe3   :  { %v323_v25 = vpop.f32.mrf.mxu0 }
  0xe4   :  { %364 = vtanh.f32 %v136_v24 }
  0xe5   :  { %v138_v26 = vpop.f32.mrf.mxu0 }
  0xe7   :  { %v324_v27 = vpop.f32.mrf.mxu0 }
  0xf1   :  { %v365_v28 = vpop.eup %364 }
  0xf2   :  { %v142_v29 = vpack.c.bf16 %v365_v28, %v365_v28 }
  0xf4   :  { %342 = vmatmul.mubr.bf16.vlgmr.msra.gmra.mxu1 %v142_v29 }
 0x1b4   :  { %v248_v31 = vpop.f32.mrf.mxu1 }
 0x1b5   :  { %v249_v32 = vadd.f32 %v278_v30, %v248_v31 }
 0x1b6   :  { %v343_v33 = vpop.f32.mrf.mxu1 }
 0x1b7   :  { %254 = vst [vmem:[#allocation2] sm:$0x3] %v249_v32 }
 0x1b8   :  { %v251_v34 = vpop.f32.mrf.mxu1 }
 0x1b9   :  { %377 = shalt.err (!%p374_p4)
}
 0x1ba   :  { %264 = dma.vmem_to_hbm [thread:$0]  %s262_s6, 32, %s489_s5, [#allocation3]   ;;  %v344_v35 = vpop.f32.mrf.mxu1 }
 0x1bb   :  { %386 = dma.done.wait [#allocation3], 32  }
 0x1bc   :  { %387 = vsyncadd [#allocation3], 4294967264 }
 0x1bd   :  { %268 = vsyncpa [#allocation3], 1 }

// kernel: bert_base_uncased_forward.5
= control target key start
LH: loop header
LB: loop body
LE: loop exit
PB: predicated region body
PF: predicated region fallthrough
CT: control target
= control target key end

     0   :  { %19 = vsyncpa [#allocation3], 0  ;;  %s2702_s0 = inlined_call_operand.vmem [shape: f32[16,128], index: 0, kind: input, shape index: {}]   ;;  %s2703_s1 = inlined_call_operand.vmem [shape: f32[2,8], index: 1, kind: input, shape index: {}]   ;;  %s2704_s2 = inlined_call_operand.vmem [shape: bf16[128,384], index: 2, kind: input, shape index: {}]   ;;  %s2705_s3 = inlined_call_operand.vmem [shape: f32[1,384], index: 3, kind: input, shape index: {}]   ;;  %s2706_s4 = inlined_call_operand.hbm [shape: bf16[128,128], index: 4, kind: input, shape index: {}]   ;;  %s2707_s5 = inlined_call_operand.vmem [shape: f32[1,128], index: 5, kind: input, shape index: {}]   ;;  %s2708_s6 = inlined_call_operand.vmem [shape: f32[1,128], index: 6, kind: input, shape index: {}]   ;;  %s2709_s7 = inlined_call_operand.vmem [shape: f32[1,128], index: 7, kind: input, shape index: {}]   ;;  %s2710_s8 = inlined_call_operand.vmem [shape: bf16[128,512], index: 8, kind: input, shape index: {}]   ;;  %s2711_s9 = inlined_call_operand.vmem [shape: f32[1,512], index: 9, kind: input, shape index: {}]   ;;  %s2712_s10 = inlined_call_operand.hbm [shape: bf16[512,128], index: 10, kind: input, shape index: {}]   ;;  %s2713_s11 = inlined_call_operand.vmem [shape: f32[1,128], index: 11, kind: input, shape index: {}]   ;;  %s2714_s12 = inlined_call_operand.vmem [shape: f32[1,128], index: 12, kind: input, shape index: {}]   ;;  %s2715_s13 = inlined_call_operand.vmem [shape: f32[1,128], index: 13, kind: input, shape index: {}]   ;;  %s2716_s14 = inlined_call_operand.vmem [shape: f32[16,128], index: 14, kind: output, shape index: {}]  }
   0x1   :  { %20 = vsyncpa [#allocation5], 0  ;;  %s2235_s29 = smov [#allocation2]  }
   0x2   :  { %s34_s30 = sshll.u32 %s2235_s29, 4  ;;  %s35_s30 = int_to_ptr.vmem [resolvable:$true] %s34_s30 }
   0x3   :  { %s2199_s15 = scalar_lea.vmem %s35_s30, 1024  ;;  %p2204_p1 = scmp.lt.s32.totalorder %s35_s30, %s35_s30 }
   0x4   :  { %p2200_p0 = scmp.ne.s32.totalorder %s35_s30, %s2199_s15  ;;  %p2205_p2 = scmp.lt.s32.totalorder %s2199_s15, %s2199_s15 }
   0x6   :  { %p2206_p3 = por %p2205_p2, %p2204_p1 }
   0x8   :  { %p2207_p4 = pnand %p2206_p3, %p2200_p0 }
   0xa   :  { %2210 = shalt.err (!%p2207_p4)
}
   0xb   :  { %s2236_s16 = smov 64   ;;  %s2237_s17 = smov 4  }
   0xc   :  { %40 = dma.hbm_to_vmem [thread:$0]  %s2706_s4, 1024, %s35_s30, [#allocation3], %s2236_s16, %s2236_s16, %s2237_s17  }
   0xd   :  { %s2238_s20 = smov [#allocation4]  }
   0xe   :  { %s56_s21 = sshll.u32 %s2238_s20, 4  ;;  %s57_s21 = int_to_ptr.vmem [resolvable:$true] %s56_s21 }
   0xf   :  { %s2219_s22 = scalar_lea.vmem %s57_s21, 4096  ;;  %p2224_p6 = scmp.lt.s32.totalorder %s57_s21, %s57_s21 }
  0x10   :  { %p2220_p5 = scmp.ne.s32.totalorder %s57_s21, %s2219_s22  ;;  %p2225_p7 = scmp.lt.s32.totalorder %s2219_s22, %s2219_s22 }
  0x12   :  { %p2226_p8 = por %p2225_p7, %p2224_p6 }
  0x14   :  { %p2227_p9 = pnand %p2226_p8, %p2220_p5 }
  0x16   :  { %2230 = shalt.err (!%p2227_p9)
}
  0x17   :  { %62 = dma.hbm_to_vmem [thread:$0]  %s2712_s10, 4096, %s57_s21, [#allocation5], %s2236_s16, %s2236_s16, %s2237_s17  }
  0x18   :  { %2231 = dma.done.wait [#allocation3], 1024  }
  0x19   :  { %2232 = vsyncadd [#allocation3], 4294966272 }
  0x1a   :  { %2233 = dma.done.wait [#allocation5], 4096  }
  0x1b   :  { %2234 = vsyncadd [#allocation5], 4294963200  ;;  %v2239_v0 = vmov 0   ;;  %v2240_v1 = vmov 0.0   ;;  %v2031_v2 = vld [vmem:[%s2704_s2 + $0xac] ss:$12 sps:$4 sm:$0xff]   ;;  %v113_v29 = vlaneseq }
  0x1c   :  { %288 = vmatprep.mubr.bf16.mxu0 %v2239_v0  ;;  %1931 = vmatprep.subr.bf16.mxu1 %v2240_v1  ;;  %v2033_v3 = vld [vmem:[%s2704_s2 + $0xa8] ss:$12 sps:$4 sm:$0xff]   ;;  %v2036_v5 = vld [vmem:[%s2704_s2 + $0x90] ss:$12 sps:$4 sm:$0xff]   ;;  %v2039_v7 = vld [vmem:[%s2704_s2 + $0x78] ss:$12 sps:$4 sm:$0xff]  }
  0x1d   :  { %256 = vmatprep.subr.bf16.mxu0 %v2031_v2  ;;  %v2034_v4 = vld [vmem:[%s2704_s2 + $0x94] ss:$12 sps:$4 sm:$0xff]   ;;  %v2037_v6 = vld [vmem:[%s2704_s2 + $0x7c] ss:$12 sps:$4 sm:$0xff]   ;;  %v2040_v8 = vld [vmem:[%s2704_s2 + $0x64] ss:$12 sps:$4 sm:$0xff]  }
  0x1e   :  { %257 = vmatpush1.bf16.msra.mxu0 %v2033_v3  ;;  %v2042_v9 = vld [vmem:[%s2704_s2 + $0x60] ss:$12 sps:$4 sm:$0xff]   ;;  %v2055_v11 = vld [vmem:[%s2704_s2 + $0xb0] ss:$12 sps:$4 sm:$0xff]   ;;  %v2056_v12 = vld [vmem:[%s2704_s2 + $0x98] ss:$12 sps:$4 sm:$0xff]  }
  0x1f   :  { %258 = vmatprep.subr.bf16.mxu0 %v2034_v4  ;;  %v2043_v10 = vld [vmem:[%s2704_s2 + $0x4c] ss:$12 sps:$4 sm:$0xff]   ;;  %1932 = vmatpush3.bf16.msra.mxu1 %v2055_v11  ;;  %v2045_v13 = vld [vmem:[%s2704_s2 + $0x48] ss:$12 sps:$4 sm:$0xff]   ;;  %v2048_v16 = vld [vmem:[%s2704_s2 + $0x30] ss:$12 sps:$4 sm:$0xff]  }
  0x20   :  { %1933 = vmatprep.subr.bf16.mxu1 %v2240_v1  ;;  %v2046_v14 = vld [vmem:[%s2704_s2 + $0x34] ss:$12 sps:$4 sm:$0xff]   ;;  %v2049_v17 = vld [vmem:[%s2704_s2 + $0x1c] ss:$12 sps:$4 sm:$0xff]   ;;  %v2051_v19 = vld [vmem:[%s2704_s2 + $0x18] ss:$12 sps:$4 sm:$0xff]  }
  0x21   :  { %v2057_v15 = vld [vmem:[%s2704_s2 + $0x80] ss:$12 sps:$4 sm:$0xff]   ;;  %v2058_v18 = vld [vmem:[%s2704_s2 + $0x68] ss:$12 sps:$4 sm:$0xff]   ;;  %v2052_v20 = vld [vmem:[%s2704_s2 + $0x4] ss:$12 sps:$4 sm:$0xff]  }
  0x22   :  { %259 = vmatpush1.bf16.msra.mxu0 %v2036_v5  ;;  %v2059_v21 = vld [vmem:[%s2704_s2 + $0x50] ss:$12 sps:$4 sm:$0xff]   ;;  %v2054_v22 = vld [vmem:[%s2704_s2] ss:$12 sps:$4 sm:$0xff]   ;;  %v2060_v25 = vld [vmem:[%s2704_s2 + $0x38] ss:$12 sps:$4 sm:$0xff]  }
  0x23   :  { %260 = vmatprep.subr.bf16.mxu0 %v2037_v6  ;;  %1934 = vmatpush3.bf16.msra.mxu1 %v2056_v12  ;;  %v2398_v23 = vld [vmem:[%s2702_s0] sm:$0xff]  ;;  %v2403_v24 = vld [vmem:[%s2702_s0 + $0x8] sm:$0xff]  ;;  %vm2241_vm0 = vmmov 0   ;;  %v2428_v30 = vshrl.u32 %v113_v29, 7  ;;  %vm346_vm1 = vcmask 523264   ;;  %vm415_vm2 = vcmask 1043456  }
  0x24   :  { %1935 = vmatprep.subr.bf16.mxu1 %v2240_v1  ;;  %v78_v26 = vpack.c.bf16 %v2403_v24, %v2398_v23  ;;  %v2061_v27 = vld [vmem:[%s2704_s2 + $0x20] ss:$12 sps:$4 sm:$0xff]   ;;  %v2062_v28 = vld [vmem:[%s2704_s2 + $0x8] ss:$12 sps:$4 sm:$0xff]   ;;  %1947 = vmatprep.mubr.msk.bf16.mxu1 %vm2241_vm0, %v2240_v1  ;;  %vm399_vm3 = vcmask 64512  }
  0x25   :  { %v119_v31 = vsub.s32 1, %v2428_v30  ;;  %v2432_v32 = vsub.s32 0, %v2428_v30  ;;  %v111_v33 = vld [vmem:[%s2705_s3] sm:$0x7]  ;;  %v123_v50 = vsub.s32 2, %v2428_v30 }
  0x26   :  { %261 = vmatpush1.bf16.msra.mxu0 %v2039_v7  ;;  %v340_v60 = vld [vmem:[%s2703_s1] sm:$0x1] }
  0x27   :  { %262 = vmatprep.subr.bf16.mxu0 %v2040_v8  ;;  %1936 = vmatpush3.bf16.msra.mxu1 %v2057_v15  ;;  %v120_v34 = vrot.slane %v111_v33, %v119_v31  ;;  %v116_v36 = vrot.slane %v111_v33, %v2432_v32  ;;  %v124_v51 = vrot.slane %v111_v33, %v123_v50  ;;  %v341_v61 = vsub.f32 1.0, %v340_v60 }
  0x28   :  { %1937 = vmatprep.subr.bf16.mxu1 %v2240_v1 }
  0x29   :  { %v342_v62 = vmul.f32 -1e+09, %v341_v61 }
  0x2a   :  { %263 = vmatpush1.bf16.msra.mxu0 %v2042_v9 }
  0x2b   :  { %264 = vmatprep.subr.bf16.mxu0 %v2043_v10  ;;  %1938 = vmatpush3.bf16.msra.mxu1 %v2058_v18  ;;  %v2464_v63 = vrot.slane %v342_v62, %v2432_v32  ;;  %v579_v18 = vld [vmem:[%s2703_s1 + $0x1] sm:$0x1] }
  0x2c   :  { %1939 = vmatprep.subr.bf16.mxu1 %v2240_v1 }
  0x2e   :  { %265 = vmatpush1.bf16.msra.mxu0 %v2045_v13 }
  0x2f   :  { %266 = vmatprep.subr.bf16.mxu0 %v2046_v14  ;;  %1940 = vmatpush3.bf16.msra.mxu1 %v2059_v21 }
  0x30   :  { %1941 = vmatprep.subr.bf16.mxu1 %v2240_v1 }
  0x32   :  { %267 = vmatpush1.bf16.msra.mxu0 %v2048_v16 }
  0x33   :  { %268 = vmatprep.subr.bf16.mxu0 %v2049_v17  ;;  %1942 = vmatpush3.bf16.msra.mxu1 %v2060_v25 }
  0x34   :  { %1943 = vmatprep.subr.bf16.mxu1 %v2240_v1 }
  0x36   :  { %269 = vmatpush1.bf16.msra.mxu0 %v2051_v19  ;;  %v580_v19 = vsub.f32 1.0, %v579_v18 }
  0x37   :  { %270 = vmatprep.subr.bf16.mxu0 %v2052_v20  ;;  %1944 = vmatpush3.bf16.msra.mxu1 %v2061_v27 }
  0x38   :  { %1945 = vmatprep.subr.bf16.mxu1 %v2240_v1  ;;  %v581_v20 = vmul.f32 -1e+09, %v580_v19 }
  0x3a   :  { %271 = vmatpush1.bf16.msra.mxu0 %v2054_v22  ;;  %v635_v22 = vrot.slane %v581_v20, %v2432_v32 }
  0x3b   :  { %1975 = vmatprep.subr.bf16.mxu0 %v2240_v1  ;;  %1946 = vmatpush3.bf16.msra.mxu1 %v2062_v28 }
  0x3c   :  { %1951 = vmatprep.subr.bf16.mxu1 %v2240_v1 }
  0x3d   :  { %289 = vmatmul.mubr.bf16.vlgmr.msra.gmra.mxu0 %v78_v26 }
  0x3e   :  { %1977 = vmatprep.mubr.msk.bf16.mxu0 %vm2241_vm0, %v2240_v1  ;;  %1948 = vmatmul.mubr.bf16.vlgmr.msra.gmra.mxu1 %v78_v26 }
  0x3f   :  { %1953 = vmatprep.mubr.msk.bf16.mxu1 %vm2241_vm0, %v2240_v1 }
  0xfd   :  { %v290_v35 = vpop.f32.mrf.mxu0 }
  0xfe   :  { %v291_v40 = vadd.f32 %v290_v35, %v116_v36  ;;  %v333_v52 = vpop.f32.mrf.mxu1 }
  0xff   :  { %v292_v37 = vpop.f32.mrf.mxu0  ;;  %v334_v53 = vadd.f32 %v333_v52, %v124_v51 }
 0x100   :  { %v293_v38 = vadd.f32 %v292_v37, %v120_v34  ;;  %v343_v45 = vpack.c.bf16 %v291_v40, %v291_v40  ;;  %v1949_v54 = vpop.f32.mrf.mxu1 }
 0x101   :  { %v294_v39 = vpop.f32.mrf.mxu0  ;;  %v345_v55 = vpack.c.bf16 %v334_v53, %v334_v53 }
 0x102   :  { %v344_v41 = vpack.c.bf16 %v293_v38, %v293_v38  ;;  %v295_v46 = vadd.f32 %v294_v39, %v116_v36  ;;  %v336_v56 = vpop.f32.mrf.mxu1 }
 0x103   :  { %v296_v42 = vpop.f32.mrf.mxu0  ;;  %v417_v57 = vsel %vm415_vm2, %v345_v55, 0  ;;  %v2457_v58 = vadd.f32 %v336_v56, %v124_v51 }
 0x104   :  { %v351_v43 = vsel %vm346_vm1, %v344_v41, 0  ;;  %v297_v44 = vadd.f32 %v296_v42, %v120_v34  ;;  %463 = vrot.lane.b32.xlu1 %v344_v41, %s2236_s16  ;;  %v582_v49 = vpack.c.bf16 %v295_v46, %v295_v46  ;;  %v1950_v59 = vpop.f32.mrf.mxu1 }
 0x105   :  { %1952 = vmatpush3.bf16.xpose.msra.mxu1 %v351_v43 }
 0x106   :  { %v583_v47 = vpack.c.bf16 %v297_v44, %v297_v44  ;;  %1957 = vmatprep.subr.bf16.mxu1 %v2240_v1 }
 0x108   :  { %v589_v48 = vsel %vm346_vm1, %v583_v47, 0  ;;  %460 = vrot.lane.b32.xlu1 %v343_v45, %s2236_s16 }
 0x109   :  { %1976 = vmatpush3.bf16.xpose.msra.mxu0 %v589_v48 }
 0x10a   :  { %1987 = vmatprep.subr.bf16.mxu0 %v2240_v1 }
 0x10c   :  { %696 = vrot.lane.b32.xlu1 %v582_v49, %s2236_s16  ;;  %1954 = vmatmul.mubr.msk.bf16.vlgmr.msra.gmra.mxu1 %vm346_vm1, %v343_v45 }
 0x10d   :  { %1959 = vmatprep.mubr.msk.bf16.mxu1 %vm2241_vm0, %v2240_v1  ;;  %1958 = vmatpush3.bf16.msra.mxu1 %v417_v57 }
 0x10e   :  { %1963 = vmatprep.subr.bf16.mxu1 %v2240_v1 }
 0x110   :  { %1978 = vmatmul.mubr.msk.bf16.vlgmr.msra.gmra.mxu0 %vm346_vm1, %v582_v49 }
 0x111   :  { %1989 = vmatprep.mubr.msk.bf16.mxu0 %vm2241_vm0, %v2240_v1 }
 0x176   :  { %v464_v27 = vpop.permute.xlu1 %463 }
 0x177   :  { %v469_v39 = vsel %vm346_vm1, %v464_v27, 0 }
 0x17a   :  { %v461_v34 = vpop.permute.xlu1 %460 }
 0x17e   :  { %v697_v35 = vpop.permute.xlu1 %696 }
 0x1cc   :  { %v387_v2 = vpop.f32.mrf.mxu1 }
 0x1cd   :  { %v393_v3 = vmul.f32 0.125, %v387_v2 }
 0x1ce   :  { %v1955_v4 = vpop.f32.mrf.mxu1 }
 0x1cf   :  { %v398_v5 = vadd.f32 %v2464_v63, %v393_v3 }
 0x1d0   :  { %v390_v6 = vpop.f32.mrf.mxu1  ;;  %v625_v7 = vpop.f32.mrf.mxu0 }
 0x1d1   :  { %v400_v8 = vsel %vm399_vm3, %v398_v5, -inf  ;;  %v631_v21 = vmul.f32 0.125, %v625_v7 }
 0x1d2   :  { %v1979_v9 = vpop.f32.mrf.mxu0  ;;  %401 = vmax.xlane.f32.xlu0 %v400_v8  ;;  %v1956_v10 = vpop.f32.mrf.mxu1 }
 0x1d3   :  { %v636_v25 = vadd.f32 %v635_v22, %v631_v21 }
 0x1d4   :  { %v628_v11 = vpop.f32.mrf.mxu0 }
 0x1d5   :  { %v637_v26 = vsel %vm399_vm3, %v636_v25, -inf }
 0x1d6   :  { %v1980_v12 = vpop.f32.mrf.mxu0 }
 0x25b   :  { %v402_v13 = vpop.xlane.xlu0 %401 }
 0x25c   :  { %v403_v14 = vsub.f32 %v398_v5, %v402_v13 }
 0x25e   :  { %v404_v15 = vmul.f32 1.442695, %v403_v14 }
 0x260   :  { %2151 = vpow2.f32 %v404_v15  ;;  %v584_v15 = vpack.c.bf16 %v2457_v58, %v2457_v58 }
 0x26d   :  { %v2152_v16 = vpop.eup %2151 }
 0x26e   :  { %v406_v17 = vsel %vm399_vm3, %v2152_v16, 0.0 }
 0x26f   :  { %407 = vadd.xlane.f32.xlu0 %v406_v17 }
 0x285   :  { %699 = vrot.lane.b32.xlu0 %v583_v47, %s2236_s16 }
 0x2a4   :  { %638 = vmax.xlane.f32.xlu0 %v637_v26 }
 0x2ba   :  { %526 = vrot.lane.b32.xlu0 %v345_v55, %s2236_s16 }
 0x2f8   :  { %v408_v28 = vpop.xlane.xlu0 %407 }
 0x2f9   :  { %2153 = vrcp.f32 %v408_v28 }
 0x2fc   :  { %v700_v29 = vpop.permute.xlu0 %699 }
 0x2fd   :  { %v705_v33 = vsel %vm346_vm1, %v700_v29, 0 }
 0x2fe   :  { %1988 = vmatpush3.bf16.xpose.msra.mxu0 %v705_v33 }
 0x2ff   :  { %1999 = vmatprep.subr.bf16.mxu0 %v2240_v1 }
 0x305   :  { %1990 = vmatmul.mubr.msk.bf16.vlgmr.msra.gmra.mxu0 %vm346_vm1, %v697_v35  ;;  %v2063_v35 = vld [vmem:[#allocation2 + $0x38] sm:$0xff]  }
 0x306   :  { %v2154_v36 = vpop.eup %2153  ;;  %2015 = vmatprep.mubr.msk.bf16.mxu0 %vm2241_vm0, %v2240_v1  ;;  %2000 = vmatpush3.bf16.msra.mxu0 %v2063_v35  ;;  %v2097_v35 = vld [vmem:[%s2710_s8 + $0x64] ss:$16 sps:$4 sm:$0xff]  }
 0x307   :  { %v410_v37 = vmul.f32 %v2154_v36, %v2152_v16  ;;  %v2064_v36 = vld [vmem:[#allocation2 + $0x30] sm:$0xff]   ;;  %2001 = vmatprep.subr.bf16.mxu0 %v2240_v1 }
 0x309   :  { %v411_v38 = vpack.c.bf16 %v410_v37, %v410_v37  ;;  %v2065_v37 = vld [vmem:[#allocation2 + $0x28] sm:$0xff]  }
 0x30a   :  { %2002 = vmatpush3.bf16.msra.mxu0 %v2064_v36  ;;  %v2100_v36 = vld [vmem:[%s2710_s8 + $0x6c] ss:$16 sps:$4 sm:$0xff]  }
 0x30b   :  { %1960 = vmatmul.mubr.msk.bf16.vlgmr.msra.gmra.mxu1 %vm399_vm3, %v411_v38  ;;  %2003 = vmatprep.subr.bf16.mxu0 %v2240_v1  ;;  %v2066_v38 = vld [vmem:[#allocation2 + $0x20] sm:$0xff]  }
 0x30c   :  { %1964 = vmatpush3.bf16.xpose.msra.mxu1 %v469_v39  ;;  %1965 = vmatprep.mubr.msk.bf16.mxu1 %vm2241_vm0, %v2240_v1  ;;  %v2067_v39 = vld [vmem:[#allocation2 + $0x18] sm:$0xff]  }
 0x30d   :  { %1969 = vmatprep.subr.bf16.mxu1 %v2240_v1 }
 0x30e   :  { %2004 = vmatpush3.bf16.msra.mxu0 %v2065_v37  ;;  %v2095_v37 = vld [vmem:[%s2710_s8 + $0x60] ss:$16 sps:$4 sm:$0xff]  }
 0x30f   :  { %2005 = vmatprep.subr.bf16.mxu0 %v2240_v1 }
 0x312   :  { %2006 = vmatpush3.bf16.msra.mxu0 %v2066_v38  ;;  %v2098_v38 = vld [vmem:[%s2710_s8 + $0x68] ss:$16 sps:$4 sm:$0xff]  }
 0x313   :  { %1966 = vmatmul.mubr.msk.bf16.vlgmr.msra.gmra.mxu1 %vm346_vm1, %v461_v34  ;;  %2007 = vmatprep.subr.bf16.mxu0 %v2240_v1 }
 0x314   :  { %1971 = vmatprep.mubr.msk.bf16.mxu1 %vm2241_vm0, %v2240_v1 }
 0x316   :  { %2008 = vmatpush3.bf16.msra.mxu0 %v2067_v39  ;;  %v2103_v39 = vld [vmem:[%s2710_s8 + $0x44] ss:$16 sps:$4 sm:$0xff]  }
 0x317   :  { %2009 = vmatprep.subr.bf16.mxu0 %v2240_v1 }
 0x32d   :  { %v639_v40 = vpop.xlane.xlu0 %638 }
 0x32e   :  { %v640_v2 = vsub.f32 %v636_v25, %v639_v40  ;;  %v653_v25 = vsel %vm415_vm2, %v584_v15, 0  ;;  %v2068_v40 = vld [vmem:[#allocation2 + $0x10] sm:$0xff]  }
 0x32f   :  { %2010 = vmatpush3.bf16.msra.mxu0 %v2068_v40  ;;  %v2106_v40 = vld [vmem:[%s2710_s8 + $0x4c] ss:$16 sps:$4 sm:$0xff]  }
 0x330   :  { %v641_v5 = vmul.f32 1.442695, %v640_v2  ;;  %2011 = vmatprep.subr.bf16.mxu0 %v2240_v1 }
 0x331   :  { %v527_v41 = vpop.permute.xlu0 %526 }
 0x332   :  { %v532_v42 = vsel %vm415_vm2, %v527_v41, 0  ;;  %v2069_v41 = vld [vmem:[#allocation2 + $0x8] sm:$0xff]  }
 0x333   :  { %1970 = vmatpush3.bf16.msra.mxu1 %v532_v42  ;;  %2012 = vmatpush3.bf16.msra.mxu0 %v2069_v41  ;;  %v2101_v41 = vld [vmem:[%s2710_s8 + $0x40] ss:$16 sps:$4 sm:$0xff]  }
 0x334   :  { %1981 = vmatprep.subr.bf16.mxu1 %v2240_v1  ;;  %2013 = vmatprep.subr.bf16.mxu0 %v2240_v1 }
 0x3c5   :  { %v741_v43 = vpop.f32.mrf.mxu0 }
 0x3c6   :  { %v747_v53 = vmul.f32 0.125, %v741_v43 }
 0x3c7   :  { %v1991_v44 = vpop.f32.mrf.mxu0 }
 0x3c8   :  { %v748_v60 = vadd.f32 %v747_v53, %v635_v22 }
 0x3c9   :  { %v744_v45 = vpop.f32.mrf.mxu0 }
 0x3ca   :  { %v749_v62 = vsel %vm399_vm3, %v748_v60, -inf }
 0x3cb   :  { %v2491_v46 = vpop.f32.mrf.mxu1  ;;  %v1992_v47 = vpop.f32.mrf.mxu0 }
 0x3cc   :  { %v2070_v47 = vld [vmem:[#allocation2] sm:$0xff]  }
 0x3cd   :  { %v1961_v48 = vpop.f32.mrf.mxu1  ;;  %2014 = vmatpush3.bf16.msra.mxu0 %v2070_v47  ;;  %v2110_v47 = vld [vmem:[%s2710_s8 + $0x28] ss:$16 sps:$4 sm:$0xff]  }
 0x3cf   :  { %v456_v49 = vpop.f32.mrf.mxu1 }
 0x3d1   :  { %v1962_v51 = vpop.f32.mrf.mxu1 }
 0x3d3   :  { %v505_v52 = vpop.f32.mrf.mxu1 }
 0x3d4   :  { %v511_v54 = vmul.f32 0.125, %v505_v52 }
 0x3d5   :  { %v1967_v55 = vpop.f32.mrf.mxu1 }
 0x3d6   :  { %v512_v56 = vadd.f32 %v511_v54, %v2464_v63 }
 0x3d7   :  { %v508_v57 = vpop.f32.mrf.mxu1 }
 0x3d8   :  { %v513_v59 = vsel %vm399_vm3, %v512_v56, -inf }
 0x3d9   :  { %514 = vmax.xlane.f32.xlu1 %v513_v59  ;;  %v1968_v61 = vpop.f32.mrf.mxu1 }
 0x3dd   :  { %750 = vmax.xlane.f32.xlu1 %v749_v62 }
 0x462   :  { %v515_v3 = vpop.xlane.xlu1 %514 }
 0x463   :  { %v516_v4 = vsub.f32 %v512_v56, %v515_v3  ;;  %v1775_v3 = vld [vmem:[%s2707_s5] ss:$0 sm:$0xff] }
 0x465   :  { %v517_v6 = vmul.f32 1.442695, %v516_v4 }
 0x466   :  { %v751_v7 = vpop.xlane.xlu1 %750 }
 0x467   :  { %2155 = vpow2.f32 %v517_v6  ;;  %v752_v8 = vsub.f32 %v748_v60, %v751_v7 }
 0x468   :  { %2157 = vpow2.f32 %v641_v5 }
 0x469   :  { %v753_v9 = vmul.f32 1.442695, %v752_v8 }
 0x46b   :  { %2159 = vpow2.f32 %v753_v9 }
 0x474   :  { %v2156_v63 = vpop.eup %2155 }
 0x475   :  { %v519_v10 = vsel %vm399_vm3, %v2156_v63, 0.0  ;;  %v2158_v11 = vpop.eup %2157 }
 0x476   :  { %520 = vadd.xlane.f32.xlu1 %v519_v10  ;;  %v643_v12 = vsel %vm399_vm3, %v2158_v11, 0.0 }
 0x478   :  { %v2160_v13 = vpop.eup %2159 }
 0x479   :  { %v755_v14 = vsel %vm399_vm3, %v2160_v13, 0.0 }
 0x47a   :  { %644 = vadd.xlane.f32.xlu1 %v643_v12 }
 0x47e   :  { %756 = vadd.xlane.f32.xlu1 %v755_v14 }
 0x48f   :  { %762 = vrot.lane.b32.xlu1 %v584_v15, %s2236_s16 }
 0x4ff   :  { %v521_v16 = vpop.xlane.xlu1 %520 }
 0x500   :  { %2161 = vrcp.f32 %v521_v16 }
 0x503   :  { %v645_v17 = vpop.xlane.xlu1 %644 }
 0x504   :  { %2163 = vrcp.f32 %v645_v17 }
 0x507   :  { %v757_v18 = vpop.xlane.xlu1 %756 }
 0x508   :  { %2165 = vrcp.f32 %v757_v18 }
 0x50b   :  { %v763_v26 = vpop.permute.xlu1 %762 }
 0x50c   :  { %v768_v29 = vsel %vm415_vm2, %v763_v26, 0  ;;  %v2083_v26 = vld [vmem:[%s2710_s8 + $0xa0] ss:$16 sps:$4 sm:$0xff]  }
 0x50d   :  { %v2162_v19 = vpop.eup %2161 }
 0x50e   :  { %v523_v20 = vmul.f32 %v2162_v19, %v2156_v63  ;;  %v2079_v19 = vld [vmem:[%s2710_s8 + $0xc4] ss:$16 sps:$4 sm:$0xff]  }
 0x510   :  { %v524_v21 = vpack.c.bf16 %v523_v20, %v523_v20  ;;  %v2082_v20 = vld [vmem:[%s2710_s8 + $0xcc] ss:$16 sps:$4 sm:$0xff]  }
 0x511   :  { %v2164_v22 = vpop.eup %2163 }
 0x512   :  { %1972 = vmatmul.mubr.msk.bf16.vlgmr.msra.gmra.mxu1 %vm399_vm3, %v524_v21  ;;  %v647_v58 = vmul.f32 %v2164_v22, %v2158_v11  ;;  %v2074_v11 = vld [vmem:[%s2710_s8 + $0xe8] ss:$16 sps:$4 sm:$0xff]   ;;  %v2077_v21 = vld [vmem:[%s2710_s8 + $0xc0] ss:$16 sps:$4 sm:$0xff]  }
 0x513   :  { %1982 = vmatpush3.bf16.msra.mxu1 %v653_v25  ;;  %1983 = vmatprep.mubr.msk.bf16.mxu1 %vm2241_vm0, %v2240_v1  ;;  %v2080_v22 = vld [vmem:[%s2710_s8 + $0xc8] ss:$16 sps:$4 sm:$0xff]   ;;  %v2085_v25 = vld [vmem:[%s2710_s8 + $0xa4] ss:$16 sps:$4 sm:$0xff]  }
 0x514   :  { %1993 = vmatprep.subr.bf16.mxu1 %v2240_v1  ;;  %v648_v27 = vpack.c.bf16 %v647_v58, %v647_v58  ;;  %v2088_v58 = vld [vmem:[%s2710_s8 + $0xac] ss:$16 sps:$4 sm:$0xff]  }
 0x515   :  { %v2166_v28 = vpop.eup %2165 }
 0x516   :  { %v759_v33 = vmul.f32 %v2166_v28, %v2160_v13  ;;  %v2089_v28 = vld [vmem:[%s2710_s8 + $0x80] ss:$16 sps:$4 sm:$0xff]  }
 0x518   :  { %v760_v34 = vpack.c.bf16 %v759_v33, %v759_v33  ;;  %v2092_v33 = vld [vmem:[%s2710_s8 + $0x88] ss:$16 sps:$4 sm:$0xff]  }
 0x51a   :  { %1984 = vmatmul.mubr.msk.bf16.vlgmr.msra.gmra.mxu1 %vm399_vm3, %v648_v27  ;;  %v2086_v27 = vld [vmem:[%s2710_s8 + $0xa8] ss:$16 sps:$4 sm:$0xff]  }
 0x51b   :  { %1994 = vmatpush3.bf16.msra.mxu1 %v768_v29  ;;  %1995 = vmatprep.mubr.msk.bf16.mxu1 %vm2241_vm0, %v2240_v1  ;;  %v2091_v29 = vld [vmem:[%s2710_s8 + $0x84] ss:$16 sps:$4 sm:$0xff]  }
 0x522   :  { %1996 = vmatmul.mubr.msk.bf16.vlgmr.msra.gmra.mxu1 %vm399_vm3, %v760_v34  ;;  %v2094_v34 = vld [vmem:[%s2710_s8 + $0x8c] ss:$16 sps:$4 sm:$0xff]  }
 0x523   :  { %1218 = vmatprep.mubr.bf16.mxu1 %v2239_v0 }
 0x5d2   :  { %v568_v42 = vpop.f32.mrf.mxu1 }
 0x5d4   :  { %v1973_v43 = vpop.f32.mrf.mxu1 }
 0x5d5   :  { %v2109_v43 = vld [vmem:[%s2710_s8 + $0x24] ss:$16 sps:$4 sm:$0xff]  }
 0x5d6   :  { %v571_v44 = vpop.f32.mrf.mxu1 }
 0x5d7   :  { %v2112_v44 = vld [vmem:[%s2710_s8 + $0x2c] ss:$16 sps:$4 sm:$0xff]  }
 0x5d8   :  { %v1974_v45 = vpop.f32.mrf.mxu1 }
 0x5d9   :  { %v2107_v45 = vld [vmem:[%s2710_s8 + $0x20] ss:$16 sps:$4 sm:$0xff]  }
 0x5da   :  { %v689_v48 = vpop.f32.mrf.mxu1 }
 0x5dc   :  { %v1985_v49 = vpop.f32.mrf.mxu1 }
 0x5dd   :  { %v2118_v49 = vld [vmem:[%s2710_s8 + $0xc] ss:$16 sps:$4 sm:$0xff]  }
 0x5de   :  { %v692_v51 = vpop.f32.mrf.mxu1 }
 0x5df   :  { %v2113_v51 = vld [vmem:[%s2710_s8] ss:$16 sps:$4 sm:$0xff]  }
 0x5e0   :  { %v1986_v52 = vpop.f32.mrf.mxu1 }
 0x5e1   :  { %v2116_v52 = vld [vmem:[%s2710_s8 + $0x8] ss:$16 sps:$4 sm:$0xff]  }
 0x5e2   :  { %v804_v53 = vpop.f32.mrf.mxu1 }
 0x5e3   :  { %v2026_v54 = vpack.i.bf16 %v804_v53, %v568_v42  ;;  %v2104_v42 = vld [vmem:[%s2710_s8 + $0x48] ss:$16 sps:$4 sm:$0xff]  }
 0x5e4   :  { %v1997_v55 = vpop.f32.mrf.mxu1 }
 0x5e5   :  { %2027 = vrot.lane.b32.xlu1 %v2026_v54, %s2236_s16 }
 0x5e6   :  { %v807_v56 = vpop.f32.mrf.mxu1 }
 0x5e8   :  { %v1998_v57 = vpop.f32.mrf.mxu1 }
 0x657   :  { %v2028_v59 = vpop.permute.xlu1 %2027 }
 0x658   :  { %v2030_v60 = vunpack.i.h.bf16 %v2028_v59  ;;  %v2029_v1 = vunpack.i.l.bf16 %v2028_v59 }
 0x65a   :  { %v814_v61 = vsel %vm346_vm1, %v689_v48, %v2030_v60  ;;  %v578_v62 = vsel %vm346_vm1, %v2491_v46, %v2029_v1  ;;  %v2073_v46 = vld [vmem:[%s2710_s8 + $0xe4] ss:$16 sps:$4 sm:$0xff]  }
 0x65b   :  { %v815_v2 = vpack.c.bf16 %v814_v61, %v578_v62  ;;  %1186 = vmatprep.subr.bf16.mxu1 %v2073_v46  ;;  %v2115_v48 = vld [vmem:[%s2710_s8 + $0x4] ss:$16 sps:$4 sm:$0xff]   ;;  %v1784_v61 = vld [vmem:[%s2708_s6] ss:$0 sm:$0xff] }
 0x65c   :  { %v2123_v46 = vld [vmem:[#allocation4 + $0x70] sm:$0xff]  }
 0x65d   :  { %2016 = vmatmul.mubr.bf16.vlgmr.msra.gmra.mxu0 %v815_v2 }
 0x65e   :  { %1261 = vmatprep.mubr.bf16.mxu0 %v2239_v0  ;;  %v2071_v0 = vld [vmem:[%s2710_s8 + $0xe0] ss:$16 sps:$4 sm:$0xff]  }
 0x65f   :  { %1187 = vmatpush1.bf16.msra.mxu1 %v2071_v0  ;;  %v2122_v0 = vld [vmem:[#allocation4 + $0xb8] sm:$0xff]  }
 0x660   :  { %1188 = vmatprep.subr.bf16.mxu1 %v2079_v19  ;;  %v2134_v19 = vld [vmem:[#allocation4 + $0xa0] sm:$0xff]  }
 0x663   :  { %1189 = vmatpush1.bf16.msra.mxu1 %v2077_v21  ;;  %v2136_v21 = vld [vmem:[#allocation4 + $0xd8] sm:$0xff]  }
 0x664   :  { %1190 = vmatprep.subr.bf16.mxu1 %v2085_v25  ;;  %v2138_v25 = vld [vmem:[#allocation4 + $0x98] sm:$0xff]  }
 0x667   :  { %1191 = vmatpush1.bf16.msra.mxu1 %v2083_v26  ;;  %v2140_v26 = vld [vmem:[#allocation4 + $0xd0] sm:$0xff]  }
 0x668   :  { %1192 = vmatprep.subr.bf16.mxu1 %v2091_v29  ;;  %v2143_v29 = vld [vmem:[#allocation4 + $0x48] sm:$0xff]  }
 0x66b   :  { %1193 = vmatpush1.bf16.msra.mxu1 %v2089_v28  ;;  %v2142_v28 = vld [vmem:[#allocation4 + $0x90] sm:$0xff]  }
 0x66c   :  { %1194 = vmatprep.subr.bf16.mxu1 %v2097_v35  ;;  %v2146_v35 = vld [vmem:[#allocation4 + $0x88] sm:$0xff]  }
 0x66f   :  { %1195 = vmatpush1.bf16.msra.mxu1 %v2095_v37  ;;  %v2148_v37 = vld [vmem:[#allocation4 + $0xc0] sm:$0xff]  }
 0x670   :  { %1196 = vmatprep.subr.bf16.mxu1 %v2103_v39  ;;  %v2150_v39 = vld [vmem:[#allocation4 + $0x80] sm:$0xff]  }
 0x673   :  { %1197 = vmatpush1.bf16.msra.mxu1 %v2101_v41  ;;  %v1020_v41 = vsub.s32 3, %v2428_v30 }
 0x674   :  { %1198 = vmatprep.subr.bf16.mxu1 %v2109_v43 }
 0x677   :  { %1199 = vmatpush1.bf16.msra.mxu1 %v2107_v45 }
 0x678   :  { %1200 = vmatprep.subr.bf16.mxu1 %v2115_v48 }
 0x67b   :  { %1201 = vmatpush1.bf16.msra.mxu1 %v2113_v51 }
 0x71d   :  { %v921_v4 = vpop.f32.mrf.mxu0 }
 0x71e   :  { %v922_v5 = vadd.f32 %v1775_v3, %v921_v4  ;;  %v1785_v4 = vld [vmem:[%s2709_s7] ss:$0 sm:$0xff] }
 0x71f   :  { %v2017_v6 = vpop.f32.mrf.mxu0 }
 0x720   :  { %v928_v7 = vadd.f32 %v922_v5, %v2398_v23  ;;  %v2076_v23 = vld [vmem:[%s2710_s8 + $0xec] ss:$16 sps:$4 sm:$0xff]  }
 0x721   :  { %v924_v8 = vpop.f32.mrf.mxu0  ;;  %1229 = vmatprep.subr.bf16.mxu0 %v2076_v23  ;;  %v2125_v23 = vld [vmem:[#allocation4 + $0x30] sm:$0xff]  }
 0x722   :  { %v925_v9 = vadd.f32 %v1775_v3, %v924_v8  ;;  %932 = vadd.xlane.f32.xlu0 %v928_v7  ;;  %1230 = vmatpush1.bf16.msra.mxu0 %v2074_v11  ;;  %v2124_v11 = vld [vmem:[#allocation4 + $0xf0] sm:$0xff]  }
 0x723   :  { %v2018_v63 = vpop.f32.mrf.mxu0  ;;  %1231 = vmatprep.subr.bf16.mxu0 %v2082_v20  ;;  %v2135_v20 = vld [vmem:[#allocation4 + $0x58] sm:$0xff]  }
 0x724   :  { %v929_v10 = vadd.f32 %v925_v9, %v2403_v24  ;;  %v2119_v9 = vld [vmem:[#allocation4 + $0x78] sm:$0xff]  }
 0x725   :  { %v2120_v63 = vld [vmem:[#allocation4 + $0xf8] sm:$0xff]   ;;  %1887 = vmatprep.subr.bf16.mxu1 %v2119_v9 }
 0x726   :  { %934 = vadd.xlane.f32.xlu1 %v929_v10  ;;  %1232 = vmatpush1.bf16.msra.mxu0 %v2080_v22  ;;  %v2137_v22 = vld [vmem:[#allocation4 + $0x18] sm:$0xff]  }
 0x727   :  { %1233 = vmatprep.subr.bf16.mxu0 %v2088_v58  ;;  %v2139_v58 = vld [vmem:[#allocation4 + $0x50] sm:$0xff]  }
 0x72a   :  { %1234 = vmatpush1.bf16.msra.mxu0 %v2086_v27  ;;  %v2141_v27 = vld [vmem:[#allocation4 + $0x10] sm:$0xff]  }
 0x72b   :  { %1235 = vmatprep.subr.bf16.mxu0 %v2094_v34  ;;  %v2145_v34 = vld [vmem:[#allocation4 + $0x8] sm:$0xff]  }
 0x72e   :  { %1236 = vmatpush1.bf16.msra.mxu0 %v2092_v33  ;;  %v2144_v33 = vld [vmem:[#allocation4 + $0xc8] sm:$0xff]  }
 0x72f   :  { %1237 = vmatprep.subr.bf16.mxu0 %v2100_v36  ;;  %v2147_v36 = vld [vmem:[#allocation4 + $0x40] sm:$0xff]  }
 0x732   :  { %1238 = vmatpush1.bf16.msra.mxu0 %v2098_v38  ;;  %v2149_v38 = vld [vmem:[#allocation4] sm:$0xff]  }
 0x733   :  { %1239 = vmatprep.subr.bf16.mxu0 %v2106_v40  ;;  %v1004_v40 = vld [vmem:[%s2711_s9] sm:$0xf] }
 0x734   :  { %v1017_v43 = vrot.slane %v1004_v40, %v123_v50  ;;  %v1021_v45 = vrot.slane %v1004_v40, %v1020_v41 }
 0x736   :  { %1240 = vmatpush1.bf16.msra.mxu0 %v2104_v42  ;;  %v1009_v42 = vrot.slane %v1004_v40, %v2432_v32 }
 0x737   :  { %1241 = vmatprep.subr.bf16.mxu0 %v2112_v44  ;;  %v1013_v44 = vrot.slane %v1004_v40, %v119_v31 }
 0x73a   :  { %1242 = vmatpush1.bf16.msra.mxu0 %v2110_v47 }
 0x73b   :  { %1243 = vmatprep.subr.bf16.mxu0 %v2118_v49 }
 0x73e   :  { %1244 = vmatpush1.bf16.msra.mxu0 %v2116_v52 }
 0x73f   :  { %1909 = vmatprep.subr.bf16.mxu0 %v2120_v63 }
 0x7ab   :  { %v933_v24 = vpop.xlane.xlu0 %932 }
 0x7ac   :  { %v937_v12 = vmul.f32 0.0078125, %v933_v24  ;;  %v2126_v24 = vld [vmem:[#allocation4 + $0xb0] sm:$0xff]  }
 0x7ae   :  { %v2542_v13 = vsub.f32 %v928_v7, %v937_v12  ;;  %v2127_v12 = vld [vmem:[#allocation4 + $0x68] sm:$0xff]  }
 0x7af   :  { %v935_v14 = vpop.xlane.xlu1 %934 }
 0x7b0   :  { %v938_v15 = vmul.f32 0.0078125, %v935_v14  ;;  %v941_v16 = vmul.f32 %v2542_v13, %v2542_v13  ;;  %v2129_v14 = vld [vmem:[#allocation4 + $0x28] sm:$0xff]  }
 0x7b2   :  { %v2546_v17 = vsub.f32 %v929_v10, %v938_v15  ;;  %943 = vadd.xlane.f32.xlu0 %v941_v16  ;;  %v2121_v10 = vld [vmem:[#allocation4 + $0x38] sm:$0xff]   ;;  %v2130_v15 = vld [vmem:[#allocation4 + $0xa8] sm:$0xff]   ;;  %v2131_v16 = vld [vmem:[#allocation4 + $0x60] sm:$0xff]  }
 0x7b4   :  { %v942_v18 = vmul.f32 %v2546_v17, %v2546_v17 }
 0x7b6   :  { %945 = vadd.xlane.f32.xlu0 %v942_v18  ;;  %v2133_v18 = vld [vmem:[#allocation4 + $0x20] sm:$0xff]  }
 0x83b   :  { %v944_v53 = vpop.xlane.xlu0 %943 }
 0x83c   :  { %v947_v54 = vmul.f32 0.0078125, %v944_v53 }
 0x83e   :  { %v949_v55 = vadd.f32 1e-12, %v947_v54 }
 0x83f   :  { %v946_v56 = vpop.xlane.xlu0 %945 }
 0x840   :  { %2167 = vrsqrt.f32 %v949_v55  ;;  %v948_v57 = vmul.f32 0.0078125, %v946_v56 }
 0x842   :  { %v950_v59 = vadd.f32 1e-12, %v948_v57 }
 0x844   :  { %2169 = vrsqrt.f32 %v950_v59 }
 0x84d   :  { %v2168_v60 = vpop.eup %2167 }
 0x84e   :  { %v953_v1 = vmul.f32 %v2168_v60, %v2542_v13  ;;  %v2128_v13 = vld [vmem:[#allocation4 + $0xe8] sm:$0xff]  }
 0x850   :  { %v961_v3 = vmul.f32 %v1784_v61, %v953_v1 }
 0x851   :  { %v2170_v62 = vpop.eup %2169 }
 0x852   :  { %v954_v2 = vmul.f32 %v2170_v62, %v2546_v17  ;;  %v2642_v6 = vadd.f32 %v1785_v4, %v961_v3  ;;  %v2132_v17 = vld [vmem:[#allocation4 + $0xe0] sm:$0xff]  }
 0x854   :  { %v962_v5 = vmul.f32 %v1784_v61, %v954_v2 }
 0x856   :  { %v2644_v7 = vadd.f32 %v1785_v4, %v962_v5 }
 0x858   :  { %v971_v8 = vpack.c.bf16 %v2644_v7, %v2642_v6 }
 0x85a   :  { %1219 = vmatmul.mubr.bf16.vlgmr.msra.gmra.mxu1 %v971_v8  ;;  %1262 = vmatmul.mubr.bf16.vlgmr.msra.gmra.mxu0 %v971_v8 }
 0x85b   :  { %1888 = vmatpush3.bf16.msra.mxu1 %v2121_v10  ;;  %1910 = vmatpush3.bf16.msra.mxu0 %v2122_v0 }
 0x85c   :  { %1889 = vmatprep.subr.bf16.mxu1 %v2123_v46  ;;  %1911 = vmatprep.subr.bf16.mxu0 %v2124_v11 }
 0x85f   :  { %1890 = vmatpush3.bf16.msra.mxu1 %v2125_v23  ;;  %1912 = vmatpush3.bf16.msra.mxu0 %v2126_v24 }
 0x860   :  { %1891 = vmatprep.subr.bf16.mxu1 %v2127_v12  ;;  %1913 = vmatprep.subr.bf16.mxu0 %v2128_v13 }
 0x863   :  { %1892 = vmatpush3.bf16.msra.mxu1 %v2129_v14  ;;  %1914 = vmatpush3.bf16.msra.mxu0 %v2130_v15 }
 0x864   :  { %1893 = vmatprep.subr.bf16.mxu1 %v2131_v16  ;;  %1915 = vmatprep.subr.bf16.mxu0 %v2132_v17 }
 0x867   :  { %1894 = vmatpush3.bf16.msra.mxu1 %v2133_v18  ;;  %1916 = vmatpush3.bf16.msra.mxu0 %v2134_v19 }
 0x868   :  { %1895 = vmatprep.subr.bf16.mxu1 %v2135_v20  ;;  %1917 = vmatprep.subr.bf16.mxu0 %v2136_v21 }
 0x86b   :  { %1896 = vmatpush3.bf16.msra.mxu1 %v2137_v22  ;;  %1918 = vmatpush3.bf16.msra.mxu0 %v2138_v25 }
 0x86c   :  { %1897 = vmatprep.subr.bf16.mxu1 %v2139_v58  ;;  %1919 = vmatprep.subr.bf16.mxu0 %v2140_v26 }
 0x86f   :  { %1898 = vmatpush3.bf16.msra.mxu1 %v2141_v27  ;;  %1920 = vmatpush3.bf16.msra.mxu0 %v2142_v28 }
 0x870   :  { %1899 = vmatprep.subr.bf16.mxu1 %v2143_v29  ;;  %1921 = vmatprep.subr.bf16.mxu0 %v2144_v33 }
 0x873   :  { %1900 = vmatpush3.bf16.msra.mxu1 %v2145_v34  ;;  %1922 = vmatpush3.bf16.msra.mxu0 %v2146_v35 }
 0x874   :  { %1901 = vmatprep.subr.bf16.mxu1 %v2147_v36  ;;  %1923 = vmatprep.subr.bf16.mxu0 %v2148_v37 }
 0x877   :  { %1902 = vmatpush3.bf16.msra.mxu1 %v2149_v38  ;;  %1924 = vmatpush3.bf16.msra.mxu0 %v2150_v39 }
 0x91a   :  { %v1220_v47 = vpop.f32.mrf.mxu1  ;;  %v1263_v48 = vpop.f32.mrf.mxu0 }
 0x91b   :  { %v2657_v49 = vadd.f32 %v1220_v47, %v1009_v42  ;;  %v2659_v51 = vadd.f32 %v1263_v48, %v1017_v43 }
 0x91c   :  { %v1222_v52 = vpop.f32.mrf.mxu1  ;;  %v1265_v53 = vpop.f32.mrf.mxu0 }
 0x91d   :  { %v1280_v54 = vmul.f32 0.044715, %v2657_v49  ;;  %v1282_v55 = vmul.f32 0.044715, %v2659_v51  ;;  %v1223_v32 = vadd.f32 %v1222_v52, %v1013_v44  ;;  %v2663_v56 = vadd.f32 %v1265_v53, %v1021_v45 }
 0x91e   :  { %v1224_v50 = vpop.f32.mrf.mxu1  ;;  %v1267_v57 = vpop.f32.mrf.mxu0  ;;  %v1272_v52 = vmul.f32 0.5, %v2657_v49 }
 0x91f   :  { %v1288_v30 = vmul.f32 %v1280_v54, %v2657_v49  ;;  %v1290_v31 = vmul.f32 %v1282_v55, %v2659_v51  ;;  %v1281_v59 = vmul.f32 0.044715, %v1223_v32  ;;  %v1283_v60 = vmul.f32 0.044715, %v2663_v56 }
 0x920   :  { %v1225_v1 = vadd.f32 %v1224_v50, %v1009_v42  ;;  %v2668_v61 = vadd.f32 %v1267_v57, %v1017_v43  ;;  %v1226_v62 = vpop.f32.mrf.mxu1  ;;  %v1269_v2 = vpop.f32.mrf.mxu0  ;;  %v1273_v47 = vmul.f32 0.5, %v1223_v32 }
 0x921   :  { %v1296_v3 = vmul.f32 %v1288_v30, %v2657_v49  ;;  %v1298_v4 = vmul.f32 %v1290_v31, %v2659_v51  ;;  %v1289_v5 = vmul.f32 %v1281_v59, %v1223_v32  ;;  %v1291_v8 = vmul.f32 %v1283_v60, %v2663_v56 }
 0x922   :  { %v1284_v9 = vmul.f32 0.044715, %v1225_v1  ;;  %v1286_v63 = vmul.f32 0.044715, %v2668_v61  ;;  %v1227_v10 = vadd.f32 %v1226_v62, %v1013_v44  ;;  %v1270_v0 = vadd.f32 %v1269_v2, %v1021_v45 }
 0x923   :  { %v1304_v46 = vadd.f32 %v1296_v3, %v2657_v49  ;;  %v1306_v11 = vadd.f32 %v1298_v4, %v2659_v51  ;;  %v1297_v23 = vmul.f32 %v1289_v5, %v1223_v32  ;;  %v1299_v24 = vmul.f32 %v1291_v8, %v2663_v56 }
 0x924   :  { %v1292_v12 = vmul.f32 %v1284_v9, %v1225_v1  ;;  %v1294_v13 = vmul.f32 %v1286_v63, %v2668_v61  ;;  %v1285_v14 = vmul.f32 0.044715, %v1227_v10  ;;  %v1287_v15 = vmul.f32 0.044715, %v1270_v0 }
 0x925   :  { %v1312_v16 = vmul.f32 0.7978846, %v1304_v46  ;;  %v1314_v17 = vmul.f32 0.7978846, %v1306_v11  ;;  %v1305_v18 = vadd.f32 %v1297_v23, %v1223_v32  ;;  %v1307_v58 = vadd.f32 %v1299_v24, %v2663_v56 }
 0x926   :  { %v1300_v19 = vmul.f32 %v1292_v12, %v1225_v1  ;;  %v1302_v20 = vmul.f32 %v1294_v13, %v2668_v61  ;;  %v1293_v21 = vmul.f32 %v1285_v14, %v1227_v10  ;;  %v1295_v22 = vmul.f32 %v1287_v15, %v1270_v0  ;;  %v1818_v13 = vld [vmem:[%s2713_s11] ss:$0 sm:$0xff] }
 0x927   :  { %v1313_v25 = vmul.f32 0.7978846, %v1305_v18  ;;  %2171 = vtanh.f32 %v1312_v16  ;;  %v1315_v33 = vmul.f32 0.7978846, %v1307_v58  ;;  %v1276_v50 = vmul.f32 0.5, %v1225_v1 }
 0x928   :  { %v1308_v26 = vadd.f32 %v1300_v19, %v1225_v1  ;;  %v1310_v27 = vadd.f32 %v1302_v20, %v2668_v61  ;;  %v1301_v28 = vmul.f32 %v1293_v21, %v1227_v10  ;;  %2173 = vtanh.f32 %v1314_v17 }
 0x929   :  { %v1303_v29 = vmul.f32 %v1295_v22, %v1270_v0  ;;  %2175 = vtanh.f32 %v1313_v25  ;;  %v1277_v59 = vmul.f32 0.5, %v1227_v10  ;;  %v1278_v62 = vmul.f32 0.5, %v2668_v61 }
 0x92a   :  { %v1316_v34 = vmul.f32 0.7978846, %v1308_v26  ;;  %v1318_v35 = vmul.f32 0.7978846, %v1310_v27  ;;  %v1309_v36 = vadd.f32 %v1301_v28, %v1227_v10  ;;  %2177 = vtanh.f32 %v1315_v33 }
 0x92b   :  { %v1311_v37 = vadd.f32 %v1303_v29, %v1270_v0  ;;  %v1275_v3 = vmul.f32 0.5, %v2663_v56  ;;  %v1279_v4 = vmul.f32 0.5, %v1270_v0  ;;  %v1274_v49 = vmul.f32 0.5, %v2659_v51 }
 0x92c   :  { %2179 = vtanh.f32 %v1316_v34  ;;  %v1317_v38 = vmul.f32 0.7978846, %v1309_v36 }
 0x92d   :  { %2181 = vtanh.f32 %v1318_v35  ;;  %v1319_v39 = vmul.f32 0.7978846, %v1311_v37 }
 0x92e   :  { %2183 = vtanh.f32 %v1317_v38 }
 0x92f   :  { %2185 = vtanh.f32 %v1319_v39 }
 0x934   :  { %v2172_v40 = vpop.eup %2171 }
 0x935   :  { %v2174_v41 = vpop.eup %2173  ;;  %v1328_v57 = vadd.f32 1.0, %v2172_v40 }
 0x936   :  { %v2176_v42 = vpop.eup %2175  ;;  %v1330_v2 = vadd.f32 1.0, %v2174_v41 }
 0x937   :  { %v2178_v43 = vpop.eup %2177  ;;  %v1329_v48 = vadd.f32 1.0, %v2176_v42  ;;  %v1336_v11 = vmul.f32 %v1328_v57, %v1272_v52  ;;  %v1852_v52 = vld [vmem:[%s2715_s13] ss:$0 sm:$0xff] }
 0x938   :  { %v1331_v55 = vadd.f32 1.0, %v2178_v43  ;;  %v1338_v24 = vmul.f32 %v1330_v2, %v1274_v49 }
 0x939   :  { %v2180_v44 = vpop.eup %2179  ;;  %v1337_v8 = vmul.f32 %v1329_v48, %v1273_v47  ;;  %v1851_v47 = vld [vmem:[%s2714_s12] ss:$0 sm:$0xff] }
 0x93a   :  { %v2182_v45 = vpop.eup %2181  ;;  %v1332_v53 = vadd.f32 1.0, %v2180_v44  ;;  %v1339_v46 = vmul.f32 %v1331_v55, %v1275_v3 }
 0x93b   :  { %v2184_v54 = vpop.eup %2183  ;;  %v1334_v30 = vadd.f32 1.0, %v2182_v45 }
 0x93c   :  { %v2186_v31 = vpop.eup %2185  ;;  %v1333_v60 = vadd.f32 1.0, %v2184_v54  ;;  %v1340_v32 = vmul.f32 %v1332_v53, %v1276_v50 }
 0x93d   :  { %v1335_v5 = vadd.f32 1.0, %v2186_v31  ;;  %v1342_v63 = vmul.f32 %v1334_v30, %v1278_v62 }
 0x93e   :  { %v1341_v9 = vmul.f32 %v1333_v60, %v1277_v59  ;;  %v1344_v12 = vpack.c.bf16 %v1340_v32, %v1336_v11 }
 0x93f   :  { %v1343_v1 = vmul.f32 %v1335_v5, %v1279_v4  ;;  %v1346_v61 = vpack.c.bf16 %v1342_v63, %v1338_v24 }
 0x940   :  { %v1345_v23 = vpack.c.bf16 %v1341_v9, %v1337_v8 }
 0x941   :  { %v1347_v10 = vpack.c.bf16 %v1343_v1, %v1339_v46 }
 0x942   :  { %1643 = vmatprep.mubr.bf16.mxu1 %v1345_v23 }
 0x943   :  { %1684 = vmatprep.mubr.bf16.mxu0 %v1347_v10  ;;  %1644 = vmatmul.mubr.bf16.vlgmr.msra.gmra.mxu1 %v1344_v12 }
 0x944   :  { %1685 = vmatmul.mubr.bf16.vlgmr.msra.gmra.mxu0 %v1346_v61 }
 0xa03   :  { %v1903_v56 = vpop.f32.mrf.mxu1 }
 0xa04   :  { %v1925_v0 = vpop.f32.mrf.mxu0 }
 0xa05   :  { %v1904_v51 = vpop.f32.mrf.mxu1 }
 0xa06   :  { %v1905_v14 = vadd.f32 %v1904_v51, %v1903_v56  ;;  %v1926_v15 = vpop.f32.mrf.mxu0 }
 0xa07   :  { %v1906_v16 = vpop.f32.mrf.mxu1  ;;  %v1927_v18 = vadd.f32 %v1926_v15, %v1925_v0 }
 0xa08   :  { %v1646_v17 = vadd.f32 %v1905_v14, %v1818_v13  ;;  %v1928_v19 = vpop.f32.mrf.mxu0 }
 0xa09   :  { %v1907_v20 = vpop.f32.mrf.mxu1 }
 0xa0a   :  { %v1687_v21 = vadd.f32 %v1927_v18, %v1646_v17  ;;  %v1908_v22 = vadd.f32 %v1907_v20, %v1906_v16  ;;  %v1929_v25 = vpop.f32.mrf.mxu0 }
 0xa0b   :  { %v1930_v26 = vadd.f32 %v1929_v25, %v1928_v19 }
 0xa0c   :  { %v1649_v58 = vadd.f32 %v1908_v22, %v1818_v13  ;;  %v1693_v27 = vadd.f32 %v1687_v21, %v2642_v6 }
 0xa0e   :  { %v1690_v28 = vadd.f32 %v1930_v26, %v1649_v58  ;;  %1697 = vadd.xlane.f32.xlu1 %v1693_v27 }
 0xa10   :  { %v1694_v29 = vadd.f32 %v1690_v28, %v2644_v7 }
 0xa12   :  { %1699 = vadd.xlane.f32.xlu0 %v1694_v29 }
 0xa97   :  { %v1698_v33 = vpop.xlane.xlu1 %1697 }
 0xa98   :  { %v1701_v34 = vmul.f32 0.0078125, %v1698_v33 }
 0xa9a   :  { %v1703_v35 = vsub.f32 %v1693_v27, %v1701_v34 }
 0xa9b   :  { %v1700_v36 = vpop.xlane.xlu0 %1699 }
 0xa9c   :  { %v1702_v37 = vmul.f32 0.0078125, %v1700_v36  ;;  %v1705_v38 = vmul.f32 %v1703_v35, %v1703_v35 }
 0xa9e   :  { %v1704_v39 = vsub.f32 %v1694_v29, %v1702_v37  ;;  %1707 = vadd.xlane.f32.xlu1 %v1705_v38 }
 0xaa0   :  { %v1706_v40 = vmul.f32 %v1704_v39, %v1704_v39 }
 0xaa2   :  { %1709 = vadd.xlane.f32.xlu0 %v1706_v40 }
 0xb27   :  { %v1708_v41 = vpop.xlane.xlu1 %1707 }
 0xb28   :  { %v1711_v42 = vmul.f32 0.0078125, %v1708_v41 }
 0xb2a   :  { %v1713_v43 = vadd.f32 1e-12, %v1711_v42 }
 0xb2b   :  { %v1710_v44 = vpop.xlane.xlu0 %1709 }
 0xb2c   :  { %2187 = vrsqrt.f32 %v1713_v43  ;;  %v1712_v6 = vmul.f32 0.0078125, %v1710_v44 }
 0xb2e   :  { %v1714_v45 = vadd.f32 1e-12, %v1712_v6 }
 0xb30   :  { %2189 = vrsqrt.f32 %v1714_v45 }
 0xb39   :  { %v2188_v7 = vpop.eup %2187 }
 0xb3a   :  { %v1717_v48 = vmul.f32 %v2188_v7, %v1703_v35 }
 0xb3c   :  { %v1725_v53 = vmul.f32 %v1851_v47, %v1717_v48 }
 0xb3d   :  { %v2190_v54 = vpop.eup %2189 }
 0xb3e   :  { %v1733_v55 = vadd.f32 %v1852_v52, %v1725_v53  ;;  %v1718_v50 = vmul.f32 %v2190_v54, %v1704_v39 }
 0xb40   :  { %1735 = vst [vmem:[%s2716_s14] sm:$0xff] %v1733_v55  ;;  %v1726_v57 = vmul.f32 %v1851_v47, %v1718_v50 }
 0xb42   :  { %v1734_v30 = vadd.f32 %v1852_v52, %v1726_v57 }
 0xb44   :  { %1736 = vst [vmem:[%s2716_s14 + $0x8] sm:$0xff] %v1734_v30 }
 0xb45   :  { %1741 = vsyncpa [#allocation3], 1 }
 0xb46   :  { %1742 = vsyncpa [#allocation5], 1 }

// kernel: bert_base_uncased_forward.6
= control target key start
LH: loop header
LB: loop body
LE: loop exit
PB: predicated region body
PF: predicated region fallthrough
CT: control target
= control target key end

     0   :  { %v2158_v1 = vmov 0   ;;  %v2159_v2 = vmov 0.0   ;;  %vm2160_vm0 = vmmov 0   ;;  %v85_v29 = vlaneseq  ;;  %s2161_s17 = smov 64   ;;  %s2732_s2 = inlined_call_operand.vmem [shape: bf16[128,384], index: 2, kind: input, shape index: {}]   ;;  %s2733_s0 = inlined_call_operand.vmem [shape: f32[16,128], index: 0, kind: input, shape index: {}]   ;;  %s2734_s3 = inlined_call_operand.vmem [shape: f32[1,384], index: 3, kind: input, shape index: {}]   ;;  %s2735_s1 = inlined_call_operand.vmem [shape: f32[2,8], index: 1, kind: input, shape index: {}]   ;;  %s2736_s4 = inlined_call_operand.vmem [shape: bf16[128,128], index: 4, kind: input, shape index: {}]   ;;  %s2737_s5 = inlined_call_operand.vmem [shape: f32[1,128], index: 5, kind: input, shape index: {}]   ;;  %s2738_s8 = inlined_call_operand.vmem [shape: bf16[128,512], index: 8, kind: input, shape index: {}]   ;;  %s2739_s6 = inlined_call_operand.vmem [shape: f32[1,128], index: 6, kind: input, shape index: {}]   ;;  %s2740_s7 = inlined_call_operand.vmem [shape: f32[1,128], index: 7, kind: input, shape index: {}]   ;;  %s2741_s10 = inlined_call_operand.vmem [shape: bf16[512,128], index: 10, kind: input, shape index: {}]   ;;  %s2742_s9 = inlined_call_operand.vmem [shape: f32[1,512], index: 9, kind: input, shape index: {}]   ;;  %s2743_s11 = inlined_call_operand.vmem [shape: f32[1,128], index: 11, kind: input, shape index: {}]   ;;  %s2744_s12 = inlined_call_operand.vmem [shape: f32[1,128], index: 12, kind: input, shape index: {}]   ;;  %s2745_s13 = inlined_call_operand.vmem [shape: f32[1,128], index: 13, kind: input, shape index: {}]   ;;  %s2746_s14 = inlined_call_operand.vmem [shape: f32[16,128], index: 14, kind: output, shape index: {}]  }
   0x1   :  { %v1998_v0 = vld [vmem:[%s2732_s2 + $0xac] ss:$12 sps:$4 sm:$0xff]   ;;  %260 = vmatprep.mubr.bf16.mxu0 %v2158_v1  ;;  %1901 = vmatprep.subr.bf16.mxu1 %v2159_v2  ;;  %v2000_v3 = vld [vmem:[%s2732_s2 + $0xa8] ss:$12 sps:$4 sm:$0xff]   ;;  %v2003_v5 = vld [vmem:[%s2732_s2 + $0x90] ss:$12 sps:$4 sm:$0xff]  }
   0x2   :  { %228 = vmatprep.subr.bf16.mxu0 %v1998_v0  ;;  %v2001_v4 = vld [vmem:[%s2732_s2 + $0x94] ss:$12 sps:$4 sm:$0xff]   ;;  %v2004_v6 = vld [vmem:[%s2732_s2 + $0x7c] ss:$12 sps:$4 sm:$0xff]   ;;  %v2006_v7 = vld [vmem:[%s2732_s2 + $0x78] ss:$12 sps:$4 sm:$0xff]   ;;  %1917 = vmatprep.mubr.msk.bf16.mxu1 %vm2160_vm0, %v2159_v2 }
   0x3   :  { %229 = vmatpush1.bf16.msra.mxu0 %v2000_v3  ;;  %v2007_v8 = vld [vmem:[%s2732_s2 + $0x64] ss:$12 sps:$4 sm:$0xff]   ;;  %v2009_v9 = vld [vmem:[%s2732_s2 + $0x60] ss:$12 sps:$4 sm:$0xff]   ;;  %v2012_v13 = vld [vmem:[%s2732_s2 + $0x48] ss:$12 sps:$4 sm:$0xff]  }
   0x4   :  { %230 = vmatprep.subr.bf16.mxu0 %v2001_v4  ;;  %v2010_v10 = vld [vmem:[%s2732_s2 + $0x4c] ss:$12 sps:$4 sm:$0xff]   ;;  %v2022_v11 = vld [vmem:[%s2732_s2 + $0xb0] ss:$12 sps:$4 sm:$0xff]   ;;  %v2013_v14 = vld [vmem:[%s2732_s2 + $0x34] ss:$12 sps:$4 sm:$0xff]  }
   0x5   :  { %1902 = vmatpush3.bf16.msra.mxu1 %v2022_v11  ;;  %v2023_v12 = vld [vmem:[%s2732_s2 + $0x98] ss:$12 sps:$4 sm:$0xff]   ;;  %v2024_v15 = vld [vmem:[%s2732_s2 + $0x80] ss:$12 sps:$4 sm:$0xff]   ;;  %v2015_v16 = vld [vmem:[%s2732_s2 + $0x30] ss:$12 sps:$4 sm:$0xff]  }
   0x6   :  { %1903 = vmatprep.subr.bf16.mxu1 %v2159_v2  ;;  %v2016_v17 = vld [vmem:[%s2732_s2 + $0x1c] ss:$12 sps:$4 sm:$0xff]   ;;  %v2018_v19 = vld [vmem:[%s2732_s2 + $0x18] ss:$12 sps:$4 sm:$0xff]   ;;  %v2021_v22 = vld [vmem:[%s2732_s2] ss:$12 sps:$4 sm:$0xff]  }
   0x7   :  { %231 = vmatpush1.bf16.msra.mxu0 %v2003_v5  ;;  %v2025_v18 = vld [vmem:[%s2732_s2 + $0x68] ss:$12 sps:$4 sm:$0xff]   ;;  %v2019_v20 = vld [vmem:[%s2732_s2 + $0x4] ss:$12 sps:$4 sm:$0xff]   ;;  %v2028_v27 = vld [vmem:[%s2732_s2 + $0x20] ss:$12 sps:$4 sm:$0xff]  }
   0x8   :  { %232 = vmatprep.subr.bf16.mxu0 %v2004_v6  ;;  %v2026_v21 = vld [vmem:[%s2732_s2 + $0x50] ss:$12 sps:$4 sm:$0xff]   ;;  %v2308_v23 = vld [vmem:[%s2733_s0] sm:$0xff]  ;;  %v2313_v24 = vld [vmem:[%s2733_s0 + $0x8] sm:$0xff]  ;;  %v2338_v30 = vshrl.u32 %v85_v29, 7  ;;  %vm318_vm1 = vcmask 523264  }
   0x9   :  { %1904 = vmatpush3.bf16.msra.mxu1 %v2023_v12  ;;  %v50_v25 = vpack.c.bf16 %v2313_v24, %v2308_v23  ;;  %v2027_v26 = vld [vmem:[%s2732_s2 + $0x38] ss:$12 sps:$4 sm:$0xff]   ;;  %v2029_v28 = vld [vmem:[%s2732_s2 + $0x8] ss:$12 sps:$4 sm:$0xff]   ;;  %v83_v33 = vld [vmem:[%s2734_s3] sm:$0x7] }
   0xa   :  { %1905 = vmatprep.subr.bf16.mxu1 %v2159_v2  ;;  %v91_v31 = vsub.s32 1, %v2338_v30  ;;  %v2342_v32 = vsub.s32 0, %v2338_v30  ;;  %v95_v50 = vsub.s32 2, %v2338_v30  ;;  %vm387_vm2 = vcmask 1043456   ;;  %v312_v60 = vld [vmem:[%s2735_s1] sm:$0x1] }
   0xb   :  { %233 = vmatpush1.bf16.msra.mxu0 %v2006_v7  ;;  %v313_v61 = vsub.f32 1.0, %v312_v60  ;;  %vm371_vm3 = vcmask 64512  }
   0xc   :  { %234 = vmatprep.subr.bf16.mxu0 %v2007_v8  ;;  %v92_v34 = vrot.slane %v83_v33, %v91_v31  ;;  %v88_v36 = vrot.slane %v83_v33, %v2342_v32  ;;  %v96_v51 = vrot.slane %v83_v33, %v95_v50 }
   0xd   :  { %1906 = vmatpush3.bf16.msra.mxu1 %v2024_v15  ;;  %v314_v62 = vmul.f32 -1e+09, %v313_v61 }
   0xe   :  { %1907 = vmatprep.subr.bf16.mxu1 %v2159_v2 }
   0xf   :  { %235 = vmatpush1.bf16.msra.mxu0 %v2009_v9  ;;  %v2374_v63 = vrot.slane %v314_v62, %v2342_v32 }
  0x10   :  { %236 = vmatprep.subr.bf16.mxu0 %v2010_v10 }
  0x11   :  { %1908 = vmatpush3.bf16.msra.mxu1 %v2025_v18  ;;  %v551_v18 = vld [vmem:[%s2735_s1 + $0x1] sm:$0x1] }
  0x12   :  { %1909 = vmatprep.subr.bf16.mxu1 %v2159_v2 }
  0x13   :  { %237 = vmatpush1.bf16.msra.mxu0 %v2012_v13 }
  0x14   :  { %238 = vmatprep.subr.bf16.mxu0 %v2013_v14 }
  0x15   :  { %1910 = vmatpush3.bf16.msra.mxu1 %v2026_v21 }
  0x16   :  { %1911 = vmatprep.subr.bf16.mxu1 %v2159_v2 }
  0x17   :  { %239 = vmatpush1.bf16.msra.mxu0 %v2015_v16 }
  0x18   :  { %240 = vmatprep.subr.bf16.mxu0 %v2016_v17 }
  0x19   :  { %1912 = vmatpush3.bf16.msra.mxu1 %v2027_v26 }
  0x1a   :  { %1913 = vmatprep.subr.bf16.mxu1 %v2159_v2 }
  0x1b   :  { %241 = vmatpush1.bf16.msra.mxu0 %v2018_v19  ;;  %v552_v19 = vsub.f32 1.0, %v551_v18 }
  0x1c   :  { %242 = vmatprep.subr.bf16.mxu0 %v2019_v20 }
  0x1d   :  { %1914 = vmatpush3.bf16.msra.mxu1 %v2028_v27  ;;  %v553_v20 = vmul.f32 -1e+09, %v552_v19 }
  0x1e   :  { %1915 = vmatprep.subr.bf16.mxu1 %v2159_v2 }
  0x1f   :  { %243 = vmatpush1.bf16.msra.mxu0 %v2021_v22  ;;  %v607_v22 = vrot.slane %v553_v20, %v2342_v32 }
  0x20   :  { %1945 = vmatprep.subr.bf16.mxu0 %v2159_v2 }
  0x21   :  { %1916 = vmatpush3.bf16.msra.mxu1 %v2029_v28 }
  0x22   :  { %261 = vmatmul.mubr.bf16.vlgmr.msra.gmra.mxu0 %v50_v25  ;;  %1921 = vmatprep.subr.bf16.mxu1 %v2159_v2 }
  0x23   :  { %1947 = vmatprep.mubr.msk.bf16.mxu0 %vm2160_vm0, %v2159_v2 }
  0x24   :  { %1918 = vmatmul.mubr.bf16.vlgmr.msra.gmra.mxu1 %v50_v25 }
  0x25   :  { %1923 = vmatprep.mubr.msk.bf16.mxu1 %vm2160_vm0, %v2159_v2 }
  0xe2   :  { %v262_v35 = vpop.f32.mrf.mxu0 }
  0xe3   :  { %v263_v40 = vadd.f32 %v262_v35, %v88_v36 }
  0xe4   :  { %v264_v37 = vpop.f32.mrf.mxu0  ;;  %v305_v52 = vpop.f32.mrf.mxu1 }
  0xe5   :  { %v265_v38 = vadd.f32 %v264_v37, %v92_v34  ;;  %v315_v45 = vpack.c.bf16 %v263_v40, %v263_v40  ;;  %v306_v53 = vadd.f32 %v305_v52, %v96_v51 }
  0xe6   :  { %v266_v39 = vpop.f32.mrf.mxu0  ;;  %v1919_v54 = vpop.f32.mrf.mxu1 }
  0xe7   :  { %v316_v41 = vpack.c.bf16 %v265_v38, %v265_v38  ;;  %v267_v46 = vadd.f32 %v266_v39, %v88_v36  ;;  %v317_v55 = vpack.c.bf16 %v306_v53, %v306_v53 }
  0xe8   :  { %v268_v42 = vpop.f32.mrf.mxu0  ;;  %v308_v56 = vpop.f32.mrf.mxu1 }
  0xe9   :  { %v323_v43 = vsel %vm318_vm1, %v316_v41, 0  ;;  %v269_v44 = vadd.f32 %v268_v42, %v92_v34  ;;  %435 = vrot.lane.b32.xlu1 %v316_v41, %s2161_s17  ;;  %v554_v49 = vpack.c.bf16 %v267_v46, %v267_v46  ;;  %v389_v57 = vsel %vm387_vm2, %v317_v55, 0 }
  0xea   :  { %1922 = vmatpush3.bf16.xpose.msra.mxu1 %v323_v43  ;;  %v2367_v58 = vadd.f32 %v308_v56, %v96_v51  ;;  %v1920_v59 = vpop.f32.mrf.mxu1 }
  0xeb   :  { %v555_v47 = vpack.c.bf16 %v269_v44, %v269_v44  ;;  %1927 = vmatprep.subr.bf16.mxu1 %v2159_v2 }
  0xed   :  { %v561_v48 = vsel %vm318_vm1, %v555_v47, 0  ;;  %432 = vrot.lane.b32.xlu1 %v315_v45, %s2161_s17 }
  0xee   :  { %1946 = vmatpush3.bf16.xpose.msra.mxu0 %v561_v48 }
  0xef   :  { %1957 = vmatprep.subr.bf16.mxu0 %v2159_v2 }
  0xf1   :  { %668 = vrot.lane.b32.xlu1 %v554_v49, %s2161_s17  ;;  %1924 = vmatmul.mubr.msk.bf16.vlgmr.msra.gmra.mxu1 %vm318_vm1, %v315_v45 }
  0xf2   :  { %1929 = vmatprep.mubr.msk.bf16.mxu1 %vm2160_vm0, %v2159_v2  ;;  %1928 = vmatpush3.bf16.msra.mxu1 %v389_v57 }
  0xf3   :  { %1933 = vmatprep.subr.bf16.mxu1 %v2159_v2 }
  0xf5   :  { %1948 = vmatmul.mubr.msk.bf16.vlgmr.msra.gmra.mxu0 %vm318_vm1, %v554_v49 }
  0xf6   :  { %1959 = vmatprep.mubr.msk.bf16.mxu0 %vm2160_vm0, %v2159_v2 }
 0x15b   :  { %v436_v27 = vpop.permute.xlu1 %435 }
 0x15c   :  { %v441_v39 = vsel %vm318_vm1, %v436_v27, 0 }
 0x15f   :  { %v433_v34 = vpop.permute.xlu1 %432 }
 0x163   :  { %v669_v35 = vpop.permute.xlu1 %668 }
 0x1b1   :  { %v359_v0 = vpop.f32.mrf.mxu1 }
 0x1b2   :  { %v365_v3 = vmul.f32 0.125, %v359_v0 }
 0x1b3   :  { %v1925_v4 = vpop.f32.mrf.mxu1 }
 0x1b4   :  { %v370_v5 = vadd.f32 %v2374_v63, %v365_v3 }
 0x1b5   :  { %v362_v6 = vpop.f32.mrf.mxu1  ;;  %v597_v7 = vpop.f32.mrf.mxu0 }
 0x1b6   :  { %v372_v8 = vsel %vm371_vm3, %v370_v5, -inf  ;;  %v603_v21 = vmul.f32 0.125, %v597_v7 }
 0x1b7   :  { %v1949_v9 = vpop.f32.mrf.mxu0  ;;  %373 = vmax.xlane.f32.xlu0 %v372_v8  ;;  %v1926_v10 = vpop.f32.mrf.mxu1 }
 0x1b8   :  { %v608_v25 = vadd.f32 %v607_v22, %v603_v21 }
 0x1b9   :  { %v600_v11 = vpop.f32.mrf.mxu0 }
 0x1ba   :  { %v609_v26 = vsel %vm371_vm3, %v608_v25, -inf }
 0x1bb   :  { %v1950_v12 = vpop.f32.mrf.mxu0 }
 0x240   :  { %v374_v13 = vpop.xlane.xlu0 %373 }
 0x241   :  { %v375_v14 = vsub.f32 %v370_v5, %v374_v13 }
 0x243   :  { %v376_v15 = vmul.f32 1.442695, %v375_v14 }
 0x245   :  { %2118 = vpow2.f32 %v376_v15  ;;  %v556_v15 = vpack.c.bf16 %v2367_v58, %v2367_v58 }
 0x252   :  { %v2119_v16 = vpop.eup %2118 }
 0x253   :  { %v378_v17 = vsel %vm371_vm3, %v2119_v16, 0.0 }
 0x254   :  { %379 = vadd.xlane.f32.xlu0 %v378_v17 }
 0x26a   :  { %671 = vrot.lane.b32.xlu0 %v555_v47, %s2161_s17 }
 0x289   :  { %610 = vmax.xlane.f32.xlu0 %v609_v26 }
 0x29f   :  { %498 = vrot.lane.b32.xlu0 %v317_v55, %s2161_s17 }
 0x2dd   :  { %v380_v28 = vpop.xlane.xlu0 %379 }
 0x2de   :  { %2120 = vrcp.f32 %v380_v28 }
 0x2e1   :  { %v672_v29 = vpop.permute.xlu0 %671 }
 0x2e2   :  { %v677_v33 = vsel %vm318_vm1, %v672_v29, 0 }
 0x2e3   :  { %1958 = vmatpush3.bf16.xpose.msra.mxu0 %v677_v33 }
 0x2e4   :  { %1969 = vmatprep.subr.bf16.mxu0 %v2159_v2 }
 0x2ea   :  { %1960 = vmatmul.mubr.msk.bf16.vlgmr.msra.gmra.mxu0 %vm318_vm1, %v669_v35  ;;  %v2030_v35 = vld [vmem:[%s2736_s4 + $0x38] sm:$0xff]  }
 0x2eb   :  { %v2121_v36 = vpop.eup %2120  ;;  %1985 = vmatprep.mubr.msk.bf16.mxu0 %vm2160_vm0, %v2159_v2  ;;  %1970 = vmatpush3.bf16.msra.mxu0 %v2030_v35  ;;  %v2064_v35 = vld [vmem:[%s2738_s8 + $0x64] ss:$16 sps:$4 sm:$0xff]  }
 0x2ec   :  { %v382_v37 = vmul.f32 %v2121_v36, %v2119_v16  ;;  %v2031_v36 = vld [vmem:[%s2736_s4 + $0x30] sm:$0xff]   ;;  %1971 = vmatprep.subr.bf16.mxu0 %v2159_v2 }
 0x2ee   :  { %v383_v38 = vpack.c.bf16 %v382_v37, %v382_v37  ;;  %v2032_v37 = vld [vmem:[%s2736_s4 + $0x28] sm:$0xff]  }
 0x2ef   :  { %1972 = vmatpush3.bf16.msra.mxu0 %v2031_v36  ;;  %v2067_v36 = vld [vmem:[%s2738_s8 + $0x6c] ss:$16 sps:$4 sm:$0xff]  }
 0x2f0   :  { %1930 = vmatmul.mubr.msk.bf16.vlgmr.msra.gmra.mxu1 %vm371_vm3, %v383_v38  ;;  %1973 = vmatprep.subr.bf16.mxu0 %v2159_v2  ;;  %v2033_v38 = vld [vmem:[%s2736_s4 + $0x20] sm:$0xff]  }
 0x2f1   :  { %1934 = vmatpush3.bf16.xpose.msra.mxu1 %v441_v39  ;;  %1935 = vmatprep.mubr.msk.bf16.mxu1 %vm2160_vm0, %v2159_v2  ;;  %v2034_v39 = vld [vmem:[%s2736_s4 + $0x18] sm:$0xff]  }
 0x2f2   :  { %1939 = vmatprep.subr.bf16.mxu1 %v2159_v2 }
 0x2f3   :  { %1974 = vmatpush3.bf16.msra.mxu0 %v2032_v37  ;;  %v2062_v37 = vld [vmem:[%s2738_s8 + $0x60] ss:$16 sps:$4 sm:$0xff]  }
 0x2f4   :  { %1975 = vmatprep.subr.bf16.mxu0 %v2159_v2 }
 0x2f7   :  { %1976 = vmatpush3.bf16.msra.mxu0 %v2033_v38  ;;  %v2065_v38 = vld [vmem:[%s2738_s8 + $0x68] ss:$16 sps:$4 sm:$0xff]  }
 0x2f8   :  { %1936 = vmatmul.mubr.msk.bf16.vlgmr.msra.gmra.mxu1 %vm318_vm1, %v433_v34  ;;  %1977 = vmatprep.subr.bf16.mxu0 %v2159_v2 }
 0x2f9   :  { %1941 = vmatprep.mubr.msk.bf16.mxu1 %vm2160_vm0, %v2159_v2 }
 0x2fb   :  { %1978 = vmatpush3.bf16.msra.mxu0 %v2034_v39  ;;  %v2070_v39 = vld [vmem:[%s2738_s8 + $0x44] ss:$16 sps:$4 sm:$0xff]  }
 0x2fc   :  { %1979 = vmatprep.subr.bf16.mxu0 %v2159_v2 }
 0x312   :  { %v611_v40 = vpop.xlane.xlu0 %610 }
 0x313   :  { %v612_v0 = vsub.f32 %v608_v25, %v611_v40  ;;  %v625_v25 = vsel %vm387_vm2, %v556_v15, 0  ;;  %v2035_v40 = vld [vmem:[%s2736_s4 + $0x10] sm:$0xff]  }
 0x314   :  { %1980 = vmatpush3.bf16.msra.mxu0 %v2035_v40  ;;  %v2073_v40 = vld [vmem:[%s2738_s8 + $0x4c] ss:$16 sps:$4 sm:$0xff]  }
 0x315   :  { %v613_v5 = vmul.f32 1.442695, %v612_v0  ;;  %1981 = vmatprep.subr.bf16.mxu0 %v2159_v2 }
 0x316   :  { %v499_v41 = vpop.permute.xlu0 %498 }
 0x317   :  { %v504_v42 = vsel %vm387_vm2, %v499_v41, 0  ;;  %v2036_v41 = vld [vmem:[%s2736_s4 + $0x8] sm:$0xff]  }
 0x318   :  { %1940 = vmatpush3.bf16.msra.mxu1 %v504_v42  ;;  %1982 = vmatpush3.bf16.msra.mxu0 %v2036_v41  ;;  %v2068_v41 = vld [vmem:[%s2738_s8 + $0x40] ss:$16 sps:$4 sm:$0xff]  }
 0x319   :  { %1951 = vmatprep.subr.bf16.mxu1 %v2159_v2  ;;  %1983 = vmatprep.subr.bf16.mxu0 %v2159_v2 }
 0x3aa   :  { %v713_v43 = vpop.f32.mrf.mxu0 }
 0x3ab   :  { %v719_v53 = vmul.f32 0.125, %v713_v43 }
 0x3ac   :  { %v1961_v44 = vpop.f32.mrf.mxu0 }
 0x3ad   :  { %v720_v60 = vadd.f32 %v719_v53, %v607_v22 }
 0x3ae   :  { %v716_v45 = vpop.f32.mrf.mxu0 }
 0x3af   :  { %v721_v62 = vsel %vm371_vm3, %v720_v60, -inf }
 0x3b0   :  { %v2401_v46 = vpop.f32.mrf.mxu1  ;;  %v1962_v47 = vpop.f32.mrf.mxu0 }
 0x3b1   :  { %v2037_v47 = vld [vmem:[%s2736_s4] sm:$0xff]  }
 0x3b2   :  { %v1931_v48 = vpop.f32.mrf.mxu1  ;;  %1984 = vmatpush3.bf16.msra.mxu0 %v2037_v47  ;;  %v2077_v47 = vld [vmem:[%s2738_s8 + $0x28] ss:$16 sps:$4 sm:$0xff]  }
 0x3b4   :  { %v428_v49 = vpop.f32.mrf.mxu1 }
 0x3b6   :  { %v1932_v51 = vpop.f32.mrf.mxu1 }
 0x3b8   :  { %v477_v52 = vpop.f32.mrf.mxu1 }
 0x3b9   :  { %v483_v54 = vmul.f32 0.125, %v477_v52 }
 0x3ba   :  { %v1937_v55 = vpop.f32.mrf.mxu1 }
 0x3bb   :  { %v484_v56 = vadd.f32 %v483_v54, %v2374_v63 }
 0x3bc   :  { %v480_v57 = vpop.f32.mrf.mxu1 }
 0x3bd   :  { %v485_v59 = vsel %vm371_vm3, %v484_v56, -inf }
 0x3be   :  { %486 = vmax.xlane.f32.xlu1 %v485_v59  ;;  %v1938_v61 = vpop.f32.mrf.mxu1 }
 0x3c2   :  { %722 = vmax.xlane.f32.xlu1 %v721_v62 }
 0x447   :  { %v487_v3 = vpop.xlane.xlu1 %486 }
 0x448   :  { %v488_v4 = vsub.f32 %v484_v56, %v487_v3  ;;  %v1745_v3 = vld [vmem:[%s2737_s5] ss:$0 sm:$0xff] }
 0x44a   :  { %v489_v6 = vmul.f32 1.442695, %v488_v4 }
 0x44b   :  { %v723_v7 = vpop.xlane.xlu1 %722 }
 0x44c   :  { %2122 = vpow2.f32 %v489_v6  ;;  %v724_v8 = vsub.f32 %v720_v60, %v723_v7 }
 0x44d   :  { %2124 = vpow2.f32 %v613_v5 }
 0x44e   :  { %v725_v9 = vmul.f32 1.442695, %v724_v8 }
 0x450   :  { %2126 = vpow2.f32 %v725_v9 }
 0x459   :  { %v2123_v63 = vpop.eup %2122 }
 0x45a   :  { %v491_v10 = vsel %vm371_vm3, %v2123_v63, 0.0  ;;  %v2125_v11 = vpop.eup %2124 }
 0x45b   :  { %492 = vadd.xlane.f32.xlu1 %v491_v10  ;;  %v615_v12 = vsel %vm371_vm3, %v2125_v11, 0.0 }
 0x45d   :  { %v2127_v13 = vpop.eup %2126 }
 0x45e   :  { %v727_v14 = vsel %vm371_vm3, %v2127_v13, 0.0 }
 0x45f   :  { %616 = vadd.xlane.f32.xlu1 %v615_v12 }
 0x463   :  { %728 = vadd.xlane.f32.xlu1 %v727_v14 }
 0x474   :  { %734 = vrot.lane.b32.xlu1 %v556_v15, %s2161_s17 }
 0x4e4   :  { %v493_v16 = vpop.xlane.xlu1 %492 }
 0x4e5   :  { %2128 = vrcp.f32 %v493_v16 }
 0x4e8   :  { %v617_v17 = vpop.xlane.xlu1 %616 }
 0x4e9   :  { %2130 = vrcp.f32 %v617_v17 }
 0x4ec   :  { %v729_v18 = vpop.xlane.xlu1 %728 }
 0x4ed   :  { %2132 = vrcp.f32 %v729_v18 }
 0x4f0   :  { %v735_v26 = vpop.permute.xlu1 %734 }
 0x4f1   :  { %v740_v29 = vsel %vm387_vm2, %v735_v26, 0  ;;  %v2050_v26 = vld [vmem:[%s2738_s8 + $0xa0] ss:$16 sps:$4 sm:$0xff]  }
 0x4f2   :  { %v2129_v19 = vpop.eup %2128 }
 0x4f3   :  { %v495_v20 = vmul.f32 %v2129_v19, %v2123_v63  ;;  %v2046_v19 = vld [vmem:[%s2738_s8 + $0xc4] ss:$16 sps:$4 sm:$0xff]  }
 0x4f5   :  { %v496_v21 = vpack.c.bf16 %v495_v20, %v495_v20  ;;  %v2049_v20 = vld [vmem:[%s2738_s8 + $0xcc] ss:$16 sps:$4 sm:$0xff]  }
 0x4f6   :  { %v2131_v22 = vpop.eup %2130 }
 0x4f7   :  { %1942 = vmatmul.mubr.msk.bf16.vlgmr.msra.gmra.mxu1 %vm371_vm3, %v496_v21  ;;  %v619_v58 = vmul.f32 %v2131_v22, %v2125_v11  ;;  %v2041_v11 = vld [vmem:[%s2738_s8 + $0xe8] ss:$16 sps:$4 sm:$0xff]   ;;  %v2044_v21 = vld [vmem:[%s2738_s8 + $0xc0] ss:$16 sps:$4 sm:$0xff]  }
 0x4f8   :  { %1952 = vmatpush3.bf16.msra.mxu1 %v625_v25  ;;  %1953 = vmatprep.mubr.msk.bf16.mxu1 %vm2160_vm0, %v2159_v2  ;;  %v2047_v22 = vld [vmem:[%s2738_s8 + $0xc8] ss:$16 sps:$4 sm:$0xff]   ;;  %v2052_v25 = vld [vmem:[%s2738_s8 + $0xa4] ss:$16 sps:$4 sm:$0xff]  }
 0x4f9   :  { %1963 = vmatprep.subr.bf16.mxu1 %v2159_v2  ;;  %v620_v27 = vpack.c.bf16 %v619_v58, %v619_v58  ;;  %v2055_v58 = vld [vmem:[%s2738_s8 + $0xac] ss:$16 sps:$4 sm:$0xff]  }
 0x4fa   :  { %v2133_v28 = vpop.eup %2132 }
 0x4fb   :  { %v731_v33 = vmul.f32 %v2133_v28, %v2127_v13  ;;  %v2056_v28 = vld [vmem:[%s2738_s8 + $0x80] ss:$16 sps:$4 sm:$0xff]  }
 0x4fd   :  { %v732_v34 = vpack.c.bf16 %v731_v33, %v731_v33  ;;  %v2059_v33 = vld [vmem:[%s2738_s8 + $0x88] ss:$16 sps:$4 sm:$0xff]  }
 0x4ff   :  { %1954 = vmatmul.mubr.msk.bf16.vlgmr.msra.gmra.mxu1 %vm371_vm3, %v620_v27  ;;  %v2053_v27 = vld [vmem:[%s2738_s8 + $0xa8] ss:$16 sps:$4 sm:$0xff]  }
 0x500   :  { %1964 = vmatpush3.bf16.msra.mxu1 %v740_v29  ;;  %1965 = vmatprep.mubr.msk.bf16.mxu1 %vm2160_vm0, %v2159_v2  ;;  %v2058_v29 = vld [vmem:[%s2738_s8 + $0x84] ss:$16 sps:$4 sm:$0xff]  }
 0x507   :  { %1966 = vmatmul.mubr.msk.bf16.vlgmr.msra.gmra.mxu1 %vm371_vm3, %v732_v34  ;;  %v2061_v34 = vld [vmem:[%s2738_s8 + $0x8c] ss:$16 sps:$4 sm:$0xff]  }
 0x508   :  { %1190 = vmatprep.mubr.bf16.mxu1 %v2158_v1 }
 0x5b7   :  { %v540_v42 = vpop.f32.mrf.mxu1 }
 0x5b9   :  { %v1943_v43 = vpop.f32.mrf.mxu1 }
 0x5ba   :  { %v2076_v43 = vld [vmem:[%s2738_s8 + $0x24] ss:$16 sps:$4 sm:$0xff]  }
 0x5bb   :  { %v543_v44 = vpop.f32.mrf.mxu1 }
 0x5bc   :  { %v2079_v44 = vld [vmem:[%s2738_s8 + $0x2c] ss:$16 sps:$4 sm:$0xff]  }
 0x5bd   :  { %v1944_v45 = vpop.f32.mrf.mxu1 }
 0x5be   :  { %v2074_v45 = vld [vmem:[%s2738_s8 + $0x20] ss:$16 sps:$4 sm:$0xff]  }
 0x5bf   :  { %v661_v48 = vpop.f32.mrf.mxu1 }
 0x5c1   :  { %v1955_v49 = vpop.f32.mrf.mxu1 }
 0x5c2   :  { %v2085_v49 = vld [vmem:[%s2738_s8 + $0xc] ss:$16 sps:$4 sm:$0xff]  }
 0x5c3   :  { %v664_v51 = vpop.f32.mrf.mxu1 }
 0x5c4   :  { %v2080_v51 = vld [vmem:[%s2738_s8] ss:$16 sps:$4 sm:$0xff]  }
 0x5c5   :  { %v1956_v52 = vpop.f32.mrf.mxu1 }
 0x5c6   :  { %v2083_v52 = vld [vmem:[%s2738_s8 + $0x8] ss:$16 sps:$4 sm:$0xff]  }
 0x5c7   :  { %v776_v53 = vpop.f32.mrf.mxu1 }
 0x5c8   :  { %v1993_v54 = vpack.i.bf16 %v776_v53, %v540_v42  ;;  %v2071_v42 = vld [vmem:[%s2738_s8 + $0x48] ss:$16 sps:$4 sm:$0xff]  }
 0x5c9   :  { %v1967_v55 = vpop.f32.mrf.mxu1 }
 0x5ca   :  { %1994 = vrot.lane.b32.xlu1 %v1993_v54, %s2161_s17 }
 0x5cb   :  { %v779_v56 = vpop.f32.mrf.mxu1 }
 0x5cd   :  { %v1968_v2 = vpop.f32.mrf.mxu1 }
 0x63c   :  { %v1995_v57 = vpop.permute.xlu1 %1994 }
 0x63d   :  { %v1997_v59 = vunpack.i.h.bf16 %v1995_v57  ;;  %v1996_v60 = vunpack.i.l.bf16 %v1995_v57 }
 0x63f   :  { %v786_v61 = vsel %vm318_vm1, %v661_v48, %v1997_v59  ;;  %v550_v62 = vsel %vm318_vm1, %v2401_v46, %v1996_v60  ;;  %v2040_v46 = vld [vmem:[%s2738_s8 + $0xe4] ss:$16 sps:$4 sm:$0xff]  }
 0x640   :  { %v787_v0 = vpack.c.bf16 %v786_v61, %v550_v62  ;;  %1158 = vmatprep.subr.bf16.mxu1 %v2040_v46  ;;  %v2082_v48 = vld [vmem:[%s2738_s8 + $0x4] ss:$16 sps:$4 sm:$0xff]   ;;  %v1754_v61 = vld [vmem:[%s2739_s6] ss:$0 sm:$0xff] }
 0x641   :  { %v2090_v46 = vld [vmem:[%s2741_s10 + $0x70] sm:$0xff]  }
 0x642   :  { %1986 = vmatmul.mubr.bf16.vlgmr.msra.gmra.mxu0 %v787_v0 }
 0x643   :  { %1233 = vmatprep.mubr.bf16.mxu0 %v2158_v1  ;;  %v2038_v1 = vld [vmem:[%s2738_s8 + $0xe0] ss:$16 sps:$4 sm:$0xff]  }
 0x644   :  { %1159 = vmatpush1.bf16.msra.mxu1 %v2038_v1  ;;  %v2089_v1 = vld [vmem:[%s2741_s10 + $0xb8] sm:$0xff]  }
 0x645   :  { %1160 = vmatprep.subr.bf16.mxu1 %v2046_v19  ;;  %v2101_v19 = vld [vmem:[%s2741_s10 + $0xa0] sm:$0xff]  }
 0x648   :  { %1161 = vmatpush1.bf16.msra.mxu1 %v2044_v21  ;;  %v2103_v21 = vld [vmem:[%s2741_s10 + $0xd8] sm:$0xff]  }
 0x649   :  { %1162 = vmatprep.subr.bf16.mxu1 %v2052_v25  ;;  %v2105_v25 = vld [vmem:[%s2741_s10 + $0x98] sm:$0xff]  }
 0x64c   :  { %1163 = vmatpush1.bf16.msra.mxu1 %v2050_v26  ;;  %v2107_v26 = vld [vmem:[%s2741_s10 + $0xd0] sm:$0xff]  }
 0x64d   :  { %1164 = vmatprep.subr.bf16.mxu1 %v2058_v29  ;;  %v2110_v29 = vld [vmem:[%s2741_s10 + $0x48] sm:$0xff]  }
 0x650   :  { %1165 = vmatpush1.bf16.msra.mxu1 %v2056_v28  ;;  %v2109_v28 = vld [vmem:[%s2741_s10 + $0x90] sm:$0xff]  }
 0x651   :  { %1166 = vmatprep.subr.bf16.mxu1 %v2064_v35  ;;  %v2113_v35 = vld [vmem:[%s2741_s10 + $0x88] sm:$0xff]  }
 0x654   :  { %1167 = vmatpush1.bf16.msra.mxu1 %v2062_v37  ;;  %v2115_v37 = vld [vmem:[%s2741_s10 + $0xc0] sm:$0xff]  }
 0x655   :  { %1168 = vmatprep.subr.bf16.mxu1 %v2070_v39  ;;  %v2117_v39 = vld [vmem:[%s2741_s10 + $0x80] sm:$0xff]  }
 0x658   :  { %1169 = vmatpush1.bf16.msra.mxu1 %v2068_v41  ;;  %v992_v41 = vsub.s32 3, %v2338_v30 }
 0x659   :  { %1170 = vmatprep.subr.bf16.mxu1 %v2076_v43 }
 0x65c   :  { %1171 = vmatpush1.bf16.msra.mxu1 %v2074_v45 }
 0x65d   :  { %1172 = vmatprep.subr.bf16.mxu1 %v2082_v48 }
 0x660   :  { %1173 = vmatpush1.bf16.msra.mxu1 %v2080_v51 }
 0x702   :  { %v893_v4 = vpop.f32.mrf.mxu0 }
 0x703   :  { %v894_v5 = vadd.f32 %v1745_v3, %v893_v4  ;;  %v1755_v4 = vld [vmem:[%s2740_s7] ss:$0 sm:$0xff] }
 0x704   :  { %v1987_v6 = vpop.f32.mrf.mxu0 }
 0x705   :  { %v900_v7 = vadd.f32 %v894_v5, %v2308_v23  ;;  %v2043_v23 = vld [vmem:[%s2738_s8 + $0xec] ss:$16 sps:$4 sm:$0xff]  }
 0x706   :  { %v896_v8 = vpop.f32.mrf.mxu0  ;;  %1201 = vmatprep.subr.bf16.mxu0 %v2043_v23  ;;  %v2092_v23 = vld [vmem:[%s2741_s10 + $0x30] sm:$0xff]  }
 0x707   :  { %v897_v9 = vadd.f32 %v1745_v3, %v896_v8  ;;  %904 = vadd.xlane.f32.xlu0 %v900_v7  ;;  %1202 = vmatpush1.bf16.msra.mxu0 %v2041_v11  ;;  %v2091_v11 = vld [vmem:[%s2741_s10 + $0xf0] sm:$0xff]  }
 0x708   :  { %v1988_v63 = vpop.f32.mrf.mxu0  ;;  %1203 = vmatprep.subr.bf16.mxu0 %v2049_v20  ;;  %v2102_v20 = vld [vmem:[%s2741_s10 + $0x58] sm:$0xff]  }
 0x709   :  { %v901_v10 = vadd.f32 %v897_v9, %v2313_v24  ;;  %v2086_v9 = vld [vmem:[%s2741_s10 + $0x78] sm:$0xff]  }
 0x70a   :  { %v2087_v63 = vld [vmem:[%s2741_s10 + $0xf8] sm:$0xff]   ;;  %1857 = vmatprep.subr.bf16.mxu1 %v2086_v9 }
 0x70b   :  { %906 = vadd.xlane.f32.xlu1 %v901_v10  ;;  %1204 = vmatpush1.bf16.msra.mxu0 %v2047_v22  ;;  %v2104_v22 = vld [vmem:[%s2741_s10 + $0x18] sm:$0xff]  }
 0x70c   :  { %1205 = vmatprep.subr.bf16.mxu0 %v2055_v58  ;;  %v2106_v58 = vld [vmem:[%s2741_s10 + $0x50] sm:$0xff]  }
 0x70f   :  { %1206 = vmatpush1.bf16.msra.mxu0 %v2053_v27  ;;  %v2108_v27 = vld [vmem:[%s2741_s10 + $0x10] sm:$0xff]  }
 0x710   :  { %1207 = vmatprep.subr.bf16.mxu0 %v2061_v34  ;;  %v2112_v34 = vld [vmem:[%s2741_s10 + $0x8] sm:$0xff]  }
 0x713   :  { %1208 = vmatpush1.bf16.msra.mxu0 %v2059_v33  ;;  %v2111_v33 = vld [vmem:[%s2741_s10 + $0xc8] sm:$0xff]  }
 0x714   :  { %1209 = vmatprep.subr.bf16.mxu0 %v2067_v36  ;;  %v2114_v36 = vld [vmem:[%s2741_s10 + $0x40] sm:$0xff]  }
 0x717   :  { %1210 = vmatpush1.bf16.msra.mxu0 %v2065_v38  ;;  %v2116_v38 = vld [vmem:[%s2741_s10] sm:$0xff]  }
 0x718   :  { %1211 = vmatprep.subr.bf16.mxu0 %v2073_v40  ;;  %v976_v40 = vld [vmem:[%s2742_s9] sm:$0xf] }
 0x719   :  { %v989_v43 = vrot.slane %v976_v40, %v95_v50  ;;  %v993_v45 = vrot.slane %v976_v40, %v992_v41 }
 0x71b   :  { %1212 = vmatpush1.bf16.msra.mxu0 %v2071_v42  ;;  %v981_v42 = vrot.slane %v976_v40, %v2342_v32 }
 0x71c   :  { %1213 = vmatprep.subr.bf16.mxu0 %v2079_v44  ;;  %v985_v44 = vrot.slane %v976_v40, %v91_v31 }
 0x71f   :  { %1214 = vmatpush1.bf16.msra.mxu0 %v2077_v47 }
 0x720   :  { %1215 = vmatprep.subr.bf16.mxu0 %v2085_v49 }
 0x723   :  { %1216 = vmatpush1.bf16.msra.mxu0 %v2083_v52 }
 0x724   :  { %1879 = vmatprep.subr.bf16.mxu0 %v2087_v63 }
 0x790   :  { %v905_v24 = vpop.xlane.xlu0 %904 }
 0x791   :  { %v909_v12 = vmul.f32 0.0078125, %v905_v24  ;;  %v2093_v24 = vld [vmem:[%s2741_s10 + $0xb0] sm:$0xff]  }
 0x793   :  { %v2476_v13 = vsub.f32 %v900_v7, %v909_v12  ;;  %v2094_v12 = vld [vmem:[%s2741_s10 + $0x68] sm:$0xff]  }
 0x794   :  { %v907_v14 = vpop.xlane.xlu1 %906 }
 0x795   :  { %v910_v15 = vmul.f32 0.0078125, %v907_v14  ;;  %v913_v16 = vmul.f32 %v2476_v13, %v2476_v13  ;;  %v2096_v14 = vld [vmem:[%s2741_s10 + $0x28] sm:$0xff]  }
 0x797   :  { %v2480_v17 = vsub.f32 %v901_v10, %v910_v15  ;;  %915 = vadd.xlane.f32.xlu0 %v913_v16  ;;  %v2088_v10 = vld [vmem:[%s2741_s10 + $0x38] sm:$0xff]   ;;  %v2097_v15 = vld [vmem:[%s2741_s10 + $0xa8] sm:$0xff]   ;;  %v2098_v16 = vld [vmem:[%s2741_s10 + $0x60] sm:$0xff]  }
 0x799   :  { %v914_v18 = vmul.f32 %v2480_v17, %v2480_v17 }
 0x79b   :  { %917 = vadd.xlane.f32.xlu0 %v914_v18  ;;  %v2100_v18 = vld [vmem:[%s2741_s10 + $0x20] sm:$0xff]  }
 0x820   :  { %v916_v53 = vpop.xlane.xlu0 %915 }
 0x821   :  { %v919_v54 = vmul.f32 0.0078125, %v916_v53 }
 0x823   :  { %v921_v55 = vadd.f32 1e-12, %v919_v54 }
 0x824   :  { %v918_v56 = vpop.xlane.xlu0 %917 }
 0x825   :  { %2134 = vrsqrt.f32 %v921_v55  ;;  %v920_v2 = vmul.f32 0.0078125, %v918_v56 }
 0x827   :  { %v922_v57 = vadd.f32 1e-12, %v920_v2 }
 0x829   :  { %2136 = vrsqrt.f32 %v922_v57 }
 0x832   :  { %v2135_v59 = vpop.eup %2134 }
 0x833   :  { %v925_v60 = vmul.f32 %v2135_v59, %v2476_v13  ;;  %v2095_v13 = vld [vmem:[%s2741_s10 + $0xe8] sm:$0xff]  }
 0x835   :  { %v933_v3 = vmul.f32 %v1754_v61, %v925_v60 }
 0x836   :  { %v2137_v62 = vpop.eup %2136 }
 0x837   :  { %v926_v0 = vmul.f32 %v2137_v62, %v2480_v17  ;;  %v2576_v6 = vadd.f32 %v1755_v4, %v933_v3  ;;  %v2099_v17 = vld [vmem:[%s2741_s10 + $0xe0] sm:$0xff]  }
 0x839   :  { %v934_v5 = vmul.f32 %v1754_v61, %v926_v0 }
 0x83b   :  { %v2578_v7 = vadd.f32 %v1755_v4, %v934_v5 }
 0x83d   :  { %v943_v8 = vpack.c.bf16 %v2578_v7, %v2576_v6 }
 0x83f   :  { %1191 = vmatmul.mubr.bf16.vlgmr.msra.gmra.mxu1 %v943_v8  ;;  %1234 = vmatmul.mubr.bf16.vlgmr.msra.gmra.mxu0 %v943_v8 }
 0x840   :  { %1858 = vmatpush3.bf16.msra.mxu1 %v2088_v10  ;;  %1880 = vmatpush3.bf16.msra.mxu0 %v2089_v1 }
 0x841   :  { %1859 = vmatprep.subr.bf16.mxu1 %v2090_v46  ;;  %1881 = vmatprep.subr.bf16.mxu0 %v2091_v11 }
 0x844   :  { %1860 = vmatpush3.bf16.msra.mxu1 %v2092_v23  ;;  %1882 = vmatpush3.bf16.msra.mxu0 %v2093_v24 }
 0x845   :  { %1861 = vmatprep.subr.bf16.mxu1 %v2094_v12  ;;  %1883 = vmatprep.subr.bf16.mxu0 %v2095_v13 }
 0x848   :  { %1862 = vmatpush3.bf16.msra.mxu1 %v2096_v14  ;;  %1884 = vmatpush3.bf16.msra.mxu0 %v2097_v15 }
 0x849   :  { %1863 = vmatprep.subr.bf16.mxu1 %v2098_v16  ;;  %1885 = vmatprep.subr.bf16.mxu0 %v2099_v17 }
 0x84c   :  { %1864 = vmatpush3.bf16.msra.mxu1 %v2100_v18  ;;  %1886 = vmatpush3.bf16.msra.mxu0 %v2101_v19 }
 0x84d   :  { %1865 = vmatprep.subr.bf16.mxu1 %v2102_v20  ;;  %1887 = vmatprep.subr.bf16.mxu0 %v2103_v21 }
 0x850   :  { %1866 = vmatpush3.bf16.msra.mxu1 %v2104_v22  ;;  %1888 = vmatpush3.bf16.msra.mxu0 %v2105_v25 }
 0x851   :  { %1867 = vmatprep.subr.bf16.mxu1 %v2106_v58  ;;  %1889 = vmatprep.subr.bf16.mxu0 %v2107_v26 }
 0x854   :  { %1868 = vmatpush3.bf16.msra.mxu1 %v2108_v27  ;;  %1890 = vmatpush3.bf16.msra.mxu0 %v2109_v28 }
 0x855   :  { %1869 = vmatprep.subr.bf16.mxu1 %v2110_v29  ;;  %1891 = vmatprep.subr.bf16.mxu0 %v2111_v33 }
 0x858   :  { %1870 = vmatpush3.bf16.msra.mxu1 %v2112_v34  ;;  %1892 = vmatpush3.bf16.msra.mxu0 %v2113_v35 }
 0x859   :  { %1871 = vmatprep.subr.bf16.mxu1 %v2114_v36  ;;  %1893 = vmatprep.subr.bf16.mxu0 %v2115_v37 }
 0x85c   :  { %1872 = vmatpush3.bf16.msra.mxu1 %v2116_v38  ;;  %1894 = vmatpush3.bf16.msra.mxu0 %v2117_v39 }
 0x8ff   :  { %v1192_v47 = vpop.f32.mrf.mxu1  ;;  %v1235_v48 = vpop.f32.mrf.mxu0 }
 0x900   :  { %v2687_v49 = vadd.f32 %v1192_v47, %v981_v42  ;;  %v2689_v51 = vadd.f32 %v1235_v48, %v989_v43 }
 0x901   :  { %v1194_v52 = vpop.f32.mrf.mxu1  ;;  %v1237_v53 = vpop.f32.mrf.mxu0 }
 0x902   :  { %v1252_v54 = vmul.f32 0.044715, %v2687_v49  ;;  %v1254_v55 = vmul.f32 0.044715, %v2689_v51  ;;  %v1195_v32 = vadd.f32 %v1194_v52, %v985_v44  ;;  %v2693_v56 = vadd.f32 %v1237_v53, %v993_v45 }
 0x903   :  { %v1196_v50 = vpop.f32.mrf.mxu1  ;;  %v1239_v2 = vpop.f32.mrf.mxu0  ;;  %v1244_v52 = vmul.f32 0.5, %v2687_v49 }
 0x904   :  { %v1260_v30 = vmul.f32 %v1252_v54, %v2687_v49  ;;  %v1262_v31 = vmul.f32 %v1254_v55, %v2689_v51  ;;  %v1253_v57 = vmul.f32 0.044715, %v1195_v32  ;;  %v1255_v59 = vmul.f32 0.044715, %v2693_v56 }
 0x905   :  { %v1197_v60 = vadd.f32 %v1196_v50, %v981_v42  ;;  %v2698_v61 = vadd.f32 %v1239_v2, %v989_v43  ;;  %v1198_v62 = vpop.f32.mrf.mxu1  ;;  %v1241_v0 = vpop.f32.mrf.mxu0  ;;  %v1245_v47 = vmul.f32 0.5, %v1195_v32 }
 0x906   :  { %v1268_v3 = vmul.f32 %v1260_v30, %v2687_v49  ;;  %v1270_v4 = vmul.f32 %v1262_v31, %v2689_v51  ;;  %v1261_v5 = vmul.f32 %v1253_v57, %v1195_v32  ;;  %v1263_v8 = vmul.f32 %v1255_v59, %v2693_v56 }
 0x907   :  { %v1256_v9 = vmul.f32 0.044715, %v1197_v60  ;;  %v1258_v63 = vmul.f32 0.044715, %v2698_v61  ;;  %v1199_v10 = vadd.f32 %v1198_v62, %v985_v44  ;;  %v1242_v1 = vadd.f32 %v1241_v0, %v993_v45 }
 0x908   :  { %v1276_v46 = vadd.f32 %v1268_v3, %v2687_v49  ;;  %v1278_v11 = vadd.f32 %v1270_v4, %v2689_v51  ;;  %v1269_v23 = vmul.f32 %v1261_v5, %v1195_v32  ;;  %v1271_v24 = vmul.f32 %v1263_v8, %v2693_v56 }
 0x909   :  { %v1264_v12 = vmul.f32 %v1256_v9, %v1197_v60  ;;  %v1266_v13 = vmul.f32 %v1258_v63, %v2698_v61  ;;  %v1257_v14 = vmul.f32 0.044715, %v1199_v10  ;;  %v1259_v15 = vmul.f32 0.044715, %v1242_v1 }
 0x90a   :  { %v1284_v16 = vmul.f32 0.7978846, %v1276_v46  ;;  %v1286_v17 = vmul.f32 0.7978846, %v1278_v11  ;;  %v1277_v18 = vadd.f32 %v1269_v23, %v1195_v32  ;;  %v1279_v58 = vadd.f32 %v1271_v24, %v2693_v56 }
 0x90b   :  { %v1272_v19 = vmul.f32 %v1264_v12, %v1197_v60  ;;  %v1274_v20 = vmul.f32 %v1266_v13, %v2698_v61  ;;  %v1265_v21 = vmul.f32 %v1257_v14, %v1199_v10  ;;  %v1267_v22 = vmul.f32 %v1259_v15, %v1242_v1  ;;  %v1788_v13 = vld [vmem:[%s2743_s11] ss:$0 sm:$0xff] }
 0x90c   :  { %v1285_v25 = vmul.f32 0.7978846, %v1277_v18  ;;  %2138 = vtanh.f32 %v1284_v16  ;;  %v1287_v33 = vmul.f32 0.7978846, %v1279_v58  ;;  %v1248_v50 = vmul.f32 0.5, %v1197_v60 }
 0x90d   :  { %v1280_v26 = vadd.f32 %v1272_v19, %v1197_v60  ;;  %v1282_v27 = vadd.f32 %v1274_v20, %v2698_v61  ;;  %v1273_v28 = vmul.f32 %v1265_v21, %v1199_v10  ;;  %2140 = vtanh.f32 %v1286_v17 }
 0x90e   :  { %v1275_v29 = vmul.f32 %v1267_v22, %v1242_v1  ;;  %2142 = vtanh.f32 %v1285_v25  ;;  %v1249_v57 = vmul.f32 0.5, %v1199_v10  ;;  %v1250_v62 = vmul.f32 0.5, %v2698_v61 }
 0x90f   :  { %v1288_v34 = vmul.f32 0.7978846, %v1280_v26  ;;  %v1290_v35 = vmul.f32 0.7978846, %v1282_v27  ;;  %v1281_v36 = vadd.f32 %v1273_v28, %v1199_v10  ;;  %2144 = vtanh.f32 %v1287_v33 }
 0x910   :  { %v1283_v37 = vadd.f32 %v1275_v29, %v1242_v1  ;;  %v1247_v3 = vmul.f32 0.5, %v2693_v56  ;;  %v1251_v4 = vmul.f32 0.5, %v1242_v1  ;;  %v1246_v49 = vmul.f32 0.5, %v2689_v51 }
 0x911   :  { %2146 = vtanh.f32 %v1288_v34  ;;  %v1289_v38 = vmul.f32 0.7978846, %v1281_v36 }
 0x912   :  { %2148 = vtanh.f32 %v1290_v35  ;;  %v1291_v39 = vmul.f32 0.7978846, %v1283_v37 }
 0x913   :  { %2150 = vtanh.f32 %v1289_v38 }
 0x914   :  { %2152 = vtanh.f32 %v1291_v39 }
 0x919   :  { %v2139_v40 = vpop.eup %2138 }
 0x91a   :  { %v2141_v41 = vpop.eup %2140  ;;  %v1300_v2 = vadd.f32 1.0, %v2139_v40 }
 0x91b   :  { %v2143_v42 = vpop.eup %2142  ;;  %v1302_v0 = vadd.f32 1.0, %v2141_v41 }
 0x91c   :  { %v2145_v43 = vpop.eup %2144  ;;  %v1301_v48 = vadd.f32 1.0, %v2143_v42  ;;  %v1308_v11 = vmul.f32 %v1300_v2, %v1244_v52  ;;  %v1822_v52 = vld [vmem:[%s2745_s13] ss:$0 sm:$0xff] }
 0x91d   :  { %v1303_v55 = vadd.f32 1.0, %v2145_v43  ;;  %v1310_v24 = vmul.f32 %v1302_v0, %v1246_v49 }
 0x91e   :  { %v2147_v44 = vpop.eup %2146  ;;  %v1309_v8 = vmul.f32 %v1301_v48, %v1245_v47  ;;  %v1821_v47 = vld [vmem:[%s2744_s12] ss:$0 sm:$0xff] }
 0x91f   :  { %v2149_v45 = vpop.eup %2148  ;;  %v1304_v53 = vadd.f32 1.0, %v2147_v44  ;;  %v1311_v46 = vmul.f32 %v1303_v55, %v1247_v3 }
 0x920   :  { %v2151_v54 = vpop.eup %2150  ;;  %v1306_v30 = vadd.f32 1.0, %v2149_v45 }
 0x921   :  { %v2153_v31 = vpop.eup %2152  ;;  %v1305_v59 = vadd.f32 1.0, %v2151_v54  ;;  %v1312_v32 = vmul.f32 %v1304_v53, %v1248_v50 }
 0x922   :  { %v1307_v5 = vadd.f32 1.0, %v2153_v31  ;;  %v1314_v63 = vmul.f32 %v1306_v30, %v1250_v62 }
 0x923   :  { %v1313_v9 = vmul.f32 %v1305_v59, %v1249_v57  ;;  %v1316_v12 = vpack.c.bf16 %v1312_v32, %v1308_v11 }
 0x924   :  { %v1315_v60 = vmul.f32 %v1307_v5, %v1251_v4  ;;  %v1318_v61 = vpack.c.bf16 %v1314_v63, %v1310_v24 }
 0x925   :  { %v1317_v23 = vpack.c.bf16 %v1313_v9, %v1309_v8 }
 0x926   :  { %v1319_v10 = vpack.c.bf16 %v1315_v60, %v1311_v46 }
 0x927   :  { %1615 = vmatprep.mubr.bf16.mxu1 %v1317_v23 }
 0x928   :  { %1656 = vmatprep.mubr.bf16.mxu0 %v1319_v10  ;;  %1616 = vmatmul.mubr.bf16.vlgmr.msra.gmra.mxu1 %v1316_v12 }
 0x929   :  { %1657 = vmatmul.mubr.bf16.vlgmr.msra.gmra.mxu0 %v1318_v61 }
 0x9e8   :  { %v1873_v56 = vpop.f32.mrf.mxu1 }
 0x9e9   :  { %v1895_v1 = vpop.f32.mrf.mxu0 }
 0x9ea   :  { %v1874_v51 = vpop.f32.mrf.mxu1 }
 0x9eb   :  { %v1875_v14 = vadd.f32 %v1874_v51, %v1873_v56  ;;  %v1896_v15 = vpop.f32.mrf.mxu0 }
 0x9ec   :  { %v1876_v16 = vpop.f32.mrf.mxu1  ;;  %v1897_v18 = vadd.f32 %v1896_v15, %v1895_v1 }
 0x9ed   :  { %v1618_v17 = vadd.f32 %v1875_v14, %v1788_v13  ;;  %v1898_v19 = vpop.f32.mrf.mxu0 }
 0x9ee   :  { %v1877_v20 = vpop.f32.mrf.mxu1 }
 0x9ef   :  { %v1659_v21 = vadd.f32 %v1897_v18, %v1618_v17  ;;  %v1878_v22 = vadd.f32 %v1877_v20, %v1876_v16  ;;  %v1899_v25 = vpop.f32.mrf.mxu0 }
 0x9f0   :  { %v1900_v26 = vadd.f32 %v1899_v25, %v1898_v19 }
 0x9f1   :  { %v1621_v58 = vadd.f32 %v1878_v22, %v1788_v13  ;;  %v1665_v27 = vadd.f32 %v1659_v21, %v2576_v6 }
 0x9f3   :  { %v1662_v28 = vadd.f32 %v1900_v26, %v1621_v58  ;;  %1669 = vadd.xlane.f32.xlu1 %v1665_v27 }
 0x9f5   :  { %v1666_v29 = vadd.f32 %v1662_v28, %v2578_v7 }
 0x9f7   :  { %1671 = vadd.xlane.f32.xlu0 %v1666_v29 }
 0xa7c   :  { %v1670_v33 = vpop.xlane.xlu1 %1669 }
 0xa7d   :  { %v1673_v34 = vmul.f32 0.0078125, %v1670_v33 }
 0xa7f   :  { %v1675_v35 = vsub.f32 %v1665_v27, %v1673_v34 }
 0xa80   :  { %v1672_v36 = vpop.xlane.xlu0 %1671 }
 0xa81   :  { %v1674_v37 = vmul.f32 0.0078125, %v1672_v36  ;;  %v1677_v38 = vmul.f32 %v1675_v35, %v1675_v35 }
 0xa83   :  { %v1676_v39 = vsub.f32 %v1666_v29, %v1674_v37  ;;  %1679 = vadd.xlane.f32.xlu1 %v1677_v38 }
 0xa85   :  { %v1678_v40 = vmul.f32 %v1676_v39, %v1676_v39 }
 0xa87   :  { %1681 = vadd.xlane.f32.xlu0 %v1678_v40 }
 0xb0c   :  { %v1680_v41 = vpop.xlane.xlu1 %1679 }
 0xb0d   :  { %v1683_v42 = vmul.f32 0.0078125, %v1680_v41 }
 0xb0f   :  { %v1685_v43 = vadd.f32 1e-12, %v1683_v42 }
 0xb10   :  { %v1682_v44 = vpop.xlane.xlu0 %1681 }
 0xb11   :  { %2154 = vrsqrt.f32 %v1685_v43  ;;  %v1684_v6 = vmul.f32 0.0078125, %v1682_v44 }
 0xb13   :  { %v1686_v45 = vadd.f32 1e-12, %v1684_v6 }
 0xb15   :  { %2156 = vrsqrt.f32 %v1686_v45 }
 0xb1e   :  { %v2155_v7 = vpop.eup %2154 }
 0xb1f   :  { %v1689_v48 = vmul.f32 %v2155_v7, %v1675_v35 }
 0xb21   :  { %v1697_v53 = vmul.f32 %v1821_v47, %v1689_v48 }
 0xb22   :  { %v2157_v54 = vpop.eup %2156 }
 0xb23   :  { %v1705_v55 = vadd.f32 %v1822_v52, %v1697_v53  ;;  %v1690_v50 = vmul.f32 %v2157_v54, %v1676_v39 }
 0xb25   :  { %1707 = vst [vmem:[%s2746_s14] sm:$0xff] %v1705_v55  ;;  %v1698_v2 = vmul.f32 %v1821_v47, %v1690_v50 }
 0xb27   :  { %v1706_v30 = vadd.f32 %v1822_v52, %v1698_v2 }
 0xb29   :  { %1708 = vst [vmem:[%s2746_s14 + $0x8] sm:$0xff] %v1706_v30 }

</bundles_post_ra>
